<compile_context>
chip_gen: v5e
topology: v5e:2x2
jax: 0.10.0
libtpu: 0.0.40
codegen_flags: <defaults>
</compile_context>

<pallas_src>
import numpy as np

import jax
import jax.numpy as jnp
from jax.experimental import pallas as pl
from jax.experimental.pallas import tpu as pltpu


# Static architecture for map_type='am' (matches the PyTorch module).
_KERNELS = [(5, 5), (3, 3), (3, 3)]
_STRIDES = [(2, 2), (1, 1), (1, 1)]
_CHANNELS = [32, 64, 32]


def _round_up(x, m):
    return (x + m - 1) // m * m


# --------------------------------------------------------------------------- #
# One-time (build-time) parameter re-layout.  All im2col / stride / flatten
# bookkeeping is pushed into the weights so the kernel only needs 2-D matmuls,
# 8-aligned contiguous row slices and elementwise ops.
# --------------------------------------------------------------------------- #
def _make_row_selector(batch, h_in, in_rows, kh, stride, ho):
    """0/1 matrix (kh * G, in_rows), G = pad8(batch * ho).

    Row  i*G + b*ho + oh  selects activation row  b*h_in + stride*oh + i : one MXU
    matmul with this matrix gathers, for every kernel-row offset i, all input rows
    any tap needs (replaces strided slicing inside the kernel).  Padded rows are
    all-zero and never referenced downstream.
    """
    g = _round_up(batch * ho, 8)
    s = np.zeros((kh * g, in_rows), np.float32)
    for i in range(kh):
        for b in range(batch):
            for oh in range(ho):
                s[i * g + b * ho + oh, b * h_in + stride * oh + i] = 1.0
    return s


def _make_tap_weight(w_tap, w_in, wo, stride, j):
    """Strided-block weight (w_in*Cin, wo*Cout) for conv tap with column offset j.

    Activations keep columns (w, c) merged; placing the (Cin, Cout) tap block at
    rows (stride*ow + j)*Cin and columns ow*Cout makes
    `row_sliced_activation @ tap_weight` produce this tap's contribution for all
    output columns ow at once (stride + column gather baked into the weight).
    """
    cin, cout = w_tap.shape
    m = np.zeros((w_in * cin, wo * cout), np.float32)
    for ow in range(wo):
        r = (stride * ow + j) * cin
        m[r:r + cin, ow * cout:(ow + 1) * cout] = w_tap
    return m


# ------------------------------- Pallas kernel ------------------------------- #
def _make_fused_kernel(conv_plan, lin_plan):
    """conv_plan: ((kh, kw, padded_group_rows, apply_relu), ...) per conv layer.
    lin_plan: (h3, padded_batch_rows, batch)."""
    h3, g4, batch = lin_plan

    def kernel(x_ref,
               s1_ref, w1_ref, b1_ref,
               s2_ref, w2_ref, b2_ref,
               s3_ref, w3_ref, b3_ref,
               s4_ref, wl_ref, bl_ref,
               o_ref):
        sels = (s1_ref, s2_ref, s3_ref)
        wgts = (w1_ref, w2_ref, w3_ref)
        bias = (b1_ref, b2_ref, b3_ref)

        a = x_ref[...]                                   # (B*H, W*C) f32, VMEM resident
        for l, (kh, kw, g, apply_relu) in enumerate(conv_plan):
            # One MXU matmul gathers every input row any tap needs, grouped by
            # kernel-row offset i; taps then use contiguous, 8-aligned slices.
            t = jnp.dot(sels[l][...], a, preferred_element_type=jnp.float32)
            acc = bias[l][...]                           # (1, WO*Cout): broadcasts over rows
            for i in range(kh):
                ti = t[i * g:(i + 1) * g, :]
                for j in range(kw):
                    acc = acc + jnp.dot(ti, wgts[l][i * kw + j],
                                        preferred_element_type=jnp.float32)
            # The torch module has no ReLU after the last conv
            # (Conv2d -> Flatten -> Linear -> ReLU).
            a = jnp.maximum(acc, 0.0) if apply_relu else acc

        # Final Linear + ReLU.  The NCHW-flatten permutation is folded into
        # wl_ref at build time, so the (h, (w, c)) activation layout is consumed
        # directly; batch rows for each h are gathered by s4 (one tiny matmul).
        t = jnp.dot(s4_ref[...], a, preferred_element_type=jnp.float32)
        out = bl_ref[...]                                # (1, output_size)
        for h in range(h3):
            out = out + jnp.dot(t[h * g4:(h + 1) * g4, :], wl_ref[h],
                                preferred_element_type=jnp.float32)
        o_ref[...] = jnp.maximum(out[:batch, :], 0.0).astype(o_ref.dtype)

    return kernel


# ------------------------------ Model building ------------------------------ #
def init_map_cnn_params(key, map_shape, output_size):
    """Deterministic synthetic parameters in PyTorch layout (Conv2d OIHW, Linear (out, in))."""
    H, W, Cin = map_shape
    h, w = H, W
    for (kh, kw), (sh, sw) in zip(_KERNELS, _STRIDES):
        h, w = (h - kh) // sh + 1, (w - kw) // sw + 1
    flat = _CHANNELS[-1] * h * w

    ks = jax.random.split(key, 8)

    def dense(k, shape, fan_in):
        return jax.random.normal(k, shape, jnp.float32) / np.sqrt(fan_in)

    return {
        "w1": dense(ks[0], (_CHANNELS[0], Cin) + _KERNELS[0], Cin * _KERNELS[0][0] * _KERNELS[0][1]),
        "b1": 0.1 * jax.random.normal(ks[1], (_CHANNELS[0],), jnp.float32),
        "w2": dense(ks[2], (_CHANNELS[1], _CHANNELS[0]) + _KERNELS[1], _CHANNELS[0] * 9),
        "b2": 0.1 * jax.random.normal(ks[3], (_CHANNELS[1],), jnp.float32),
        "w3": dense(ks[4], (_CHANNELS[2], _CHANNELS[1]) + _KERNELS[2], _CHANNELS[1] * 9),
        "b3": 0.1 * jax.random.normal(ks[5], (_CHANNELS[2],), jnp.float32),
        "wl": dense(ks[6], (output_size, flat), flat),
        "bl": 0.1 * jax.random.normal(ks[7], (output_size,), jnp.float32),
    }


def make_map_cnn_forward(params, map_shape, output_size, batch):
    """Build the fused-forward function.  All weight re-layout happens here, once."""
    H, W, C = map_shape
    h_in, w_in, c_in = H, W, C
    in_rows = batch * H

    operands = []
    conv_plan = []
    for l, ((kh, kw), (sh, sw), c_out) in enumerate(zip(_KERNELS, _STRIDES, _CHANNELS)):
        ho = (h_in - kh) // sh + 1
        wo = (w_in - kw) // sw + 1
        w_t = np.asarray(params[f"w{l + 1}"], np.float32)       # (Cout, Cin, KH, KW)
        b_t = np.asarray(params[f"b{l + 1}"], np.float32)

        sel = _make_row_selector(batch, h_in, in_rows, kh, sh, ho)
        taps = np.stack(
            [_make_tap_weight(w_t[:, :, i, j].T, w_in, wo, sw, j)
             for i in range(kh) for j in range(kw)], axis=0)     # (KH*KW, Win*Cin, WO*Cout)
        bias = np.tile(b_t, wo).reshape(1, wo * c_out)

        operands += [jnp.asarray(sel), jnp.asarray(taps), jnp.asarray(bias)]
        g = _round_up(batch * ho, 8)
        conv_plan.append((kh, kw, g, l < len(_KERNELS) - 1))      # no ReLU after last conv
        h_in, w_in, c_in, in_rows = ho, wo, c_out, g

    # Final Linear: fold torch's NCHW flatten order (c, h, w) into the weight.
    h3, w3, c3 = h_in, w_in, c_in
    wl_t = np.asarray(params["wl"], np.float32)                   # (out, C3*H3*W3)
    wl_r = np.zeros((h3, w3 * c3, output_size), np.float32)
    for hh in range(h3):
        for ww in range(w3):
            for cc in range(c3):
                wl_r[hh, ww * c3 + cc, :] = wl_t[:, cc * h3 * w3 + hh * w3 + ww]
    g4 = _round_up(batch, 8)
    s4 = np.zeros((h3 * g4, in_rows), np.float32)
    for hh in range(h3):
        for b in range(batch):
            s4[hh * g4 + b, b * h3 + hh] = 1.0
    bl_r = np.asarray(params["bl"], np.float32).reshape(1, output_size)
    operands += [jnp.asarray(s4), jnp.asarray(wl_r), jnp.asarray(bl_r)]

    kernel = _make_fused_kernel(tuple(conv_plan), (h3, g4, batch))
    fused = pl.pallas_call(
        kernel,
        out_shape=jax.ShapeDtypeStruct((batch, output_size), jnp.float32),
        compiler_params=pltpu.CompilerParams(vmem_limit_bytes=32 * 1024 * 1024),
    )

    @jax.jit
    def _forward(obs_am):
        # NHWC (B, H, W, C) -> (B*H, W*C): contiguous flatten, no transpose, no im2col.
        x2d = obs_am.reshape(batch * H, W * C)
        return fused(x2d, *operands)

    def forward(obs_am, multi_map=None):
        if multi_map is not None:
            # Matches torch: observations[map_type][:, :, :, multi_map][..., np.newaxis].
            # Only valid when params were built for a single input channel.
            obs_am = obs_am[..., multi_map][..., None]
        return _forward(obs_am)

    return forward


# --------------------- Plain-JAX reference (torch port) ---------------------- #
def map_cnn_reference(obs_am, params):
    x = jnp.transpose(obs_am, (0, 3, 1, 2))                       # NCHW, like torch permute
    for l, ((kh, kw), (sh, sw)) in enumerate(zip(_KERNELS, _STRIDES)):
        w = params[f"w{l + 1}"]
        b = params[f"b{l + 1}"]
        x = jax.lax.conv_general_dilated(
            x, w, window_strides=(sh, sw), padding="VALID",
            dimension_numbers=("NCHW", "OIHW", "NCHW"))
        x = x + b[None, :, None, None]
        if l < len(_KERNELS) - 1:
            x = jnp.maximum(x, 0.0)                               # no ReLU after last conv
    x = x.reshape(x.shape[0], -1)                                  # torch Flatten on NCHW
    x = x @ params["wl"].T + params["bl"]
    return jnp.maximum(x, 0.0)


# ----------------------------------- main ------------------------------------ #
if __name__ == "__main__":
    B, H, W, C = 2, 16, 16, 4
    output_size = 32

    key = jax.random.PRNGKey(0)
    k_obs, k_par = jax.random.split(key)

    obs_am = jax.random.normal(k_obs, (B, H, W, C), jnp.float32)
    params = init_map_cnn_params(k_par, (H, W, C), output_size)

    forward = make_map_cnn_forward(params, (H, W, C), output_size, batch=B)
    out = jax.block_until_ready(forward(obs_am))

    assert out.shape == (B, output_size), out.shape
    assert out.dtype == jnp.float32

    # Cross-check the fused Pallas kernel against a plain-JAX port of the module.
    ref = jax.block_until_ready(map_cnn_reference(obs_am, params))
    np.testing.assert_allclose(np.asarray(out), np.asarray(ref), rtol=5e-2, atol=5e-2)

    print("KERNEL_OK")
</pallas_src>

<mosaic_0001>
module attributes {stable_mosaic.version = 11 : i64} {
  func.func @kernel(%arg0: memref<32x64xf32, #tpu.memory_space<vmem>>, %arg1: memref<80x32xf32, #tpu.memory_space<vmem>>, %arg2: memref<25x64x192xf32, #tpu.memory_space<vmem>>, %arg3: memref<1x192xf32, #tpu.memory_space<vmem>>, %arg4: memref<24x16xf32, #tpu.memory_space<vmem>>, %arg5: memref<9x192x256xf32, #tpu.memory_space<vmem>>, %arg6: memref<1x256xf32, #tpu.memory_space<vmem>>, %arg7: memref<24x8xf32, #tpu.memory_space<vmem>>, %arg8: memref<9x256x64xf32, #tpu.memory_space<vmem>>, %arg9: memref<1x64xf32, #tpu.memory_space<vmem>>, %arg10: memref<16x8xf32, #tpu.memory_space<vmem>>, %arg11: memref<2x64x32xf32, #tpu.memory_space<vmem>>, %arg12: memref<1x32xf32, #tpu.memory_space<vmem>>, %arg13: memref<2x32xf32, #tpu.memory_space<vmem>>) attributes {dimension_semantics = [], scalar_prefetch = 0 : i64, scratch_operands = 0 : i64, tpu.core_type = #tpu.core_type<tc>} {
    %c0 = arith.constant 0 : index
    %c0_0 = arith.constant 0 : index
    %0 = vector.load %arg0[%c0, %c0_0] : memref<32x64xf32, #tpu.memory_space<vmem>>, vector<32x64xf32>
    %c0_1 = arith.constant 0 : index
    %c0_2 = arith.constant 0 : index
    %1 = vector.load %arg1[%c0_1, %c0_2] : memref<80x32xf32, #tpu.memory_space<vmem>>, vector<80x32xf32>
    %cst = arith.constant dense<0.000000e+00> : vector<80x64xf32>
    %2 = tpu.matmul %1, %0, %cst {dimension_numbers = #tpu.dot_dimension_numbers<[1], [0], [0], [1], [0, 0, 1, 1], [], []>} : vector<80x32xf32>, vector<32x64xf32>, vector<80x64xf32> -> vector<80x64xf32>
    %c0_3 = arith.constant 0 : index
    %c0_4 = arith.constant 0 : index
    %3 = vector.load %arg3[%c0_3, %c0_4] : memref<1x192xf32, #tpu.memory_space<vmem>>, vector<1x192xf32>
    %4 = vector.extract_strided_slice %2 {offsets = [0, 0], sizes = [16, 64], strides = [1, 1]} : vector<80x64xf32> to vector<16x64xf32>
    %c0_5 = arith.constant 0 : index
    %c0_6 = arith.constant 0 : index
    %c0_7 = arith.constant 0 : index
    %5 = vector.load %arg2[%c0_5, %c0_6, %c0_7] : memref<25x64x192xf32, #tpu.memory_space<vmem>>, vector<1x64x192xf32>
    %6 = vector.shape_cast %5 : vector<1x64x192xf32> to vector<64x192xf32>
    %cst_8 = arith.constant dense<0.000000e+00> : vector<16x192xf32>
    %7 = tpu.matmul %4, %6, %cst_8 {dimension_numbers = #tpu.dot_dimension_numbers<[1], [0], [0], [1], [0, 0, 1, 1], [], []>} : vector<16x64xf32>, vector<64x192xf32>, vector<16x192xf32> -> vector<16x192xf32>
    %8 = vector.broadcast %3 : vector<1x192xf32> to vector<16x192xf32>
    %9 = arith.addf %8, %7 : vector<16x192xf32>
    %c1 = arith.constant 1 : index
    %c0_9 = arith.constant 0 : index
    %c0_10 = arith.constant 0 : index
    %10 = vector.load %arg2[%c1, %c0_9, %c0_10] : memref<25x64x192xf32, #tpu.memory_space<vmem>>, vector<1x64x192xf32>
    %11 = vector.shape_cast %10 : vector<1x64x192xf32> to vector<64x192xf32>
    %cst_11 = arith.constant dense<0.000000e+00> : vector<16x192xf32>
    %12 = tpu.matmul %4, %11, %cst_11 {dimension_numbers = #tpu.dot_dimension_numbers<[1], [0], [0], [1], [0, 0, 1, 1], [], []>} : vector<16x64xf32>, vector<64x192xf32>, vector<16x192xf32> -> vector<16x192xf32>
    %13 = arith.addf %9, %12 : vector<16x192xf32>
    %c2 = arith.constant 2 : index
    %c0_12 = arith.constant 0 : index
    %c0_13 = arith.constant 0 : index
    %14 = vector.load %arg2[%c2, %c0_12, %c0_13] : memref<25x64x192xf32, #tpu.memory_space<vmem>>, vector<1x64x192xf32>
    %15 = vector.shape_cast %14 : vector<1x64x192xf32> to vector<64x192xf32>
    %cst_14 = arith.constant dense<0.000000e+00> : vector<16x192xf32>
    %16 = tpu.matmul %4, %15, %cst_14 {dimension_numbers = #tpu.dot_dimension_numbers<[1], [0], [0], [1], [0, 0, 1, 1], [], []>} : vector<16x64xf32>, vector<64x192xf32>, vector<16x192xf32> -> vector<16x192xf32>
    %17 = arith.addf %13, %16 : vector<16x192xf32>
    %c3 = arith.constant 3 : index
    %c0_15 = arith.constant 0 : index
    %c0_16 = arith.constant 0 : index
    %18 = vector.load %arg2[%c3, %c0_15, %c0_16] : memref<25x64x192xf32, #tpu.memory_space<vmem>>, vector<1x64x192xf32>
    %19 = vector.shape_cast %18 : vector<1x64x192xf32> to vector<64x192xf32>
    %cst_17 = arith.constant dense<0.000000e+00> : vector<16x192xf32>
    %20 = tpu.matmul %4, %19, %cst_17 {dimension_numbers = #tpu.dot_dimension_numbers<[1], [0], [0], [1], [0, 0, 1, 1], [], []>} : vector<16x64xf32>, vector<64x192xf32>, vector<16x192xf32> -> vector<16x192xf32>
    %21 = arith.addf %17, %20 : vector<16x192xf32>
    %c4 = arith.constant 4 : index
    %c0_18 = arith.constant 0 : index
    %c0_19 = arith.constant 0 : index
    %22 = vector.load %arg2[%c4, %c0_18, %c0_19] : memref<25x64x192xf32, #tpu.memory_space<vmem>>, vector<1x64x192xf32>
    %23 = vector.shape_cast %22 : vector<1x64x192xf32> to vector<64x192xf32>
    %cst_20 = arith.constant dense<0.000000e+00> : vector<16x192xf32>
    %24 = tpu.matmul %4, %23, %cst_20 {dimension_numbers = #tpu.dot_dimension_numbers<[1], [0], [0], [1], [0, 0, 1, 1], [], []>} : vector<16x64xf32>, vector<64x192xf32>, vector<16x192xf32> -> vector<16x192xf32>
    %25 = arith.addf %21, %24 : vector<16x192xf32>
    %26 = vector.extract_strided_slice %2 {offsets = [16, 0], sizes = [16, 64], strides = [1, 1]} : vector<80x64xf32> to vector<16x64xf32>
    %c5 = arith.constant 5 : index
    %c0_21 = arith.constant 0 : index
    %c0_22 = arith.constant 0 : index
    %27 = vector.load %arg2[%c5, %c0_21, %c0_22] : memref<25x64x192xf32, #tpu.memory_space<vmem>>, vector<1x64x192xf32>
    %28 = vector.shape_cast %27 : vector<1x64x192xf32> to vector<64x192xf32>
    %cst_23 = arith.constant dense<0.000000e+00> : vector<16x192xf32>
    %29 = tpu.matmul %26, %28, %cst_23 {dimension_numbers = #tpu.dot_dimension_numbers<[1], [0], [0], [1], [0, 0, 1, 1], [], []>} : vector<16x64xf32>, vector<64x192xf32>, vector<16x192xf32> -> vector<16x192xf32>
    %30 = arith.addf %25, %29 : vector<16x192xf32>
    %c6 = arith.constant 6 : index
    %c0_24 = arith.constant 0 : index
    %c0_25 = arith.constant 0 : index
    %31 = vector.load %arg2[%c6, %c0_24, %c0_25] : memref<25x64x192xf32, #tpu.memory_space<vmem>>, vector<1x64x192xf32>
    %32 = vector.shape_cast %31 : vector<1x64x192xf32> to vector<64x192xf32>
    %cst_26 = arith.constant dense<0.000000e+00> : vector<16x192xf32>
    %33 = tpu.matmul %26, %32, %cst_26 {dimension_numbers = #tpu.dot_dimension_numbers<[1], [0], [0], [1], [0, 0, 1, 1], [], []>} : vector<16x64xf32>, vector<64x192xf32>, vector<16x192xf32> -> vector<16x192xf32>
    %34 = arith.addf %30, %33 : vector<16x192xf32>
    %c7 = arith.constant 7 : index
    %c0_27 = arith.constant 0 : index
    %c0_28 = arith.constant 0 : index
    %35 = vector.load %arg2[%c7, %c0_27, %c0_28] : memref<25x64x192xf32, #tpu.memory_space<vmem>>, vector<1x64x192xf32>
    %36 = vector.shape_cast %35 : vector<1x64x192xf32> to vector<64x192xf32>
    %cst_29 = arith.constant dense<0.000000e+00> : vector<16x192xf32>
    %37 = tpu.matmul %26, %36, %cst_29 {dimension_numbers = #tpu.dot_dimension_numbers<[1], [0], [0], [1], [0, 0, 1, 1], [], []>} : vector<16x64xf32>, vector<64x192xf32>, vector<16x192xf32> -> vector<16x192xf32>
    %38 = arith.addf %34, %37 : vector<16x192xf32>
    %c8 = arith.constant 8 : index
    %c0_30 = arith.constant 0 : index
    %c0_31 = arith.constant 0 : index
    %39 = vector.load %arg2[%c8, %c0_30, %c0_31] : memref<25x64x192xf32, #tpu.memory_space<vmem>>, vector<1x64x192xf32>
    %40 = vector.shape_cast %39 : vector<1x64x192xf32> to vector<64x192xf32>
    %cst_32 = arith.constant dense<0.000000e+00> : vector<16x192xf32>
    %41 = tpu.matmul %26, %40, %cst_32 {dimension_numbers = #tpu.dot_dimension_numbers<[1], [0], [0], [1], [0, 0, 1, 1], [], []>} : vector<16x64xf32>, vector<64x192xf32>, vector<16x192xf32> -> vector<16x192xf32>
    %42 = arith.addf %38, %41 : vector<16x192xf32>
    %c9 = arith.constant 9 : index
    %c0_33 = arith.constant 0 : index
    %c0_34 = arith.constant 0 : index
    %43 = vector.load %arg2[%c9, %c0_33, %c0_34] : memref<25x64x192xf32, #tpu.memory_space<vmem>>, vector<1x64x192xf32>
    %44 = vector.shape_cast %43 : vector<1x64x192xf32> to vector<64x192xf32>
    %cst_35 = arith.constant dense<0.000000e+00> : vector<16x192xf32>
    %45 = tpu.matmul %26, %44, %cst_35 {dimension_numbers = #tpu.dot_dimension_numbers<[1], [0], [0], [1], [0, 0, 1, 1], [], []>} : vector<16x64xf32>, vector<64x192xf32>, vector<16x192xf32> -> vector<16x192xf32>
    %46 = arith.addf %42, %45 : vector<16x192xf32>
    %47 = vector.extract_strided_slice %2 {offsets = [32, 0], sizes = [16, 64], strides = [1, 1]} : vector<80x64xf32> to vector<16x64xf32>
    %c10 = arith.constant 10 : index
    %c0_36 = arith.constant 0 : index
    %c0_37 = arith.constant 0 : index
    %48 = vector.load %arg2[%c10, %c0_36, %c0_37] : memref<25x64x192xf32, #tpu.memory_space<vmem>>, vector<1x64x192xf32>
    %49 = vector.shape_cast %48 : vector<1x64x192xf32> to vector<64x192xf32>
    %cst_38 = arith.constant dense<0.000000e+00> : vector<16x192xf32>
    %50 = tpu.matmul %47, %49, %cst_38 {dimension_numbers = #tpu.dot_dimension_numbers<[1], [0], [0], [1], [0, 0, 1, 1], [], []>} : vector<16x64xf32>, vector<64x192xf32>, vector<16x192xf32> -> vector<16x192xf32>
    %51 = arith.addf %46, %50 : vector<16x192xf32>
    %c11 = arith.constant 11 : index
    %c0_39 = arith.constant 0 : index
    %c0_40 = arith.constant 0 : index
    %52 = vector.load %arg2[%c11, %c0_39, %c0_40] : memref<25x64x192xf32, #tpu.memory_space<vmem>>, vector<1x64x192xf32>
    %53 = vector.shape_cast %52 : vector<1x64x192xf32> to vector<64x192xf32>
    %cst_41 = arith.constant dense<0.000000e+00> : vector<16x192xf32>
    %54 = tpu.matmul %47, %53, %cst_41 {dimension_numbers = #tpu.dot_dimension_numbers<[1], [0], [0], [1], [0, 0, 1, 1], [], []>} : vector<16x64xf32>, vector<64x192xf32>, vector<16x192xf32> -> vector<16x192xf32>
    %55 = arith.addf %51, %54 : vector<16x192xf32>
    %c12 = arith.constant 12 : index
    %c0_42 = arith.constant 0 : index
    %c0_43 = arith.constant 0 : index
    %56 = vector.load %arg2[%c12, %c0_42, %c0_43] : memref<25x64x192xf32, #tpu.memory_space<vmem>>, vector<1x64x192xf32>
    %57 = vector.shape_cast %56 : vector<1x64x192xf32> to vector<64x192xf32>
    %cst_44 = arith.constant dense<0.000000e+00> : vector<16x192xf32>
    %58 = tpu.matmul %47, %57, %cst_44 {dimension_numbers = #tpu.dot_dimension_numbers<[1], [0], [0], [1], [0, 0, 1, 1], [], []>} : vector<16x64xf32>, vector<64x192xf32>, vector<16x192xf32> -> vector<16x192xf32>
    %59 = arith.addf %55, %58 : vector<16x192xf32>
    %c13 = arith.constant 13 : index
    %c0_45 = arith.constant 0 : index
    %c0_46 = arith.constant 0 : index
    %60 = vector.load %arg2[%c13, %c0_45, %c0_46] : memref<25x64x192xf32, #tpu.memory_space<vmem>>, vector<1x64x192xf32>
    %61 = vector.shape_cast %60 : vector<1x64x192xf32> to vector<64x192xf32>
    %cst_47 = arith.constant dense<0.000000e+00> : vector<16x192xf32>
    %62 = tpu.matmul %47, %61, %cst_47 {dimension_numbers = #tpu.dot_dimension_numbers<[1], [0], [0], [1], [0, 0, 1, 1], [], []>} : vector<16x64xf32>, vector<64x192xf32>, vector<16x192xf32> -> vector<16x192xf32>
    %63 = arith.addf %59, %62 : vector<16x192xf32>
    %c14 = arith.constant 14 : index
    %c0_48 = arith.constant 0 : index
    %c0_49 = arith.constant 0 : index
    %64 = vector.load %arg2[%c14, %c0_48, %c0_49] : memref<25x64x192xf32, #tpu.memory_space<vmem>>, vector<1x64x192xf32>
    %65 = vector.shape_cast %64 : vector<1x64x192xf32> to vector<64x192xf32>
    %cst_50 = arith.constant dense<0.000000e+00> : vector<16x192xf32>
    %66 = tpu.matmul %47, %65, %cst_50 {dimension_numbers = #tpu.dot_dimension_numbers<[1], [0], [0], [1], [0, 0, 1, 1], [], []>} : vector<16x64xf32>, vector<64x192xf32>, vector<16x192xf32> -> vector<16x192xf32>
    %67 = arith.addf %63, %66 : vector<16x192xf32>
    %68 = vector.extract_strided_slice %2 {offsets = [48, 0], sizes = [16, 64], strides = [1, 1]} : vector<80x64xf32> to vector<16x64xf32>
    %c15 = arith.constant 15 : index
    %c0_51 = arith.constant 0 : index
    %c0_52 = arith.constant 0 : index
    %69 = vector.load %arg2[%c15, %c0_51, %c0_52] : memref<25x64x192xf32, #tpu.memory_space<vmem>>, vector<1x64x192xf32>
    %70 = vector.shape_cast %69 : vector<1x64x192xf32> to vector<64x192xf32>
    %cst_53 = arith.constant dense<0.000000e+00> : vector<16x192xf32>
    %71 = tpu.matmul %68, %70, %cst_53 {dimension_numbers = #tpu.dot_dimension_numbers<[1], [0], [0], [1], [0, 0, 1, 1], [], []>} : vector<16x64xf32>, vector<64x192xf32>, vector<16x192xf32> -> vector<16x192xf32>
    %72 = arith.addf %67, %71 : vector<16x192xf32>
    %c16 = arith.constant 16 : index
    %c0_54 = arith.constant 0 : index
    %c0_55 = arith.constant 0 : index
    %73 = vector.load %arg2[%c16, %c0_54, %c0_55] : memref<25x64x192xf32, #tpu.memory_space<vmem>>, vector<1x64x192xf32>
    %74 = vector.shape_cast %73 : vector<1x64x192xf32> to vector<64x192xf32>
    %cst_56 = arith.constant dense<0.000000e+00> : vector<16x192xf32>
    %75 = tpu.matmul %68, %74, %cst_56 {dimension_numbers = #tpu.dot_dimension_numbers<[1], [0], [0], [1], [0, 0, 1, 1], [], []>} : vector<16x64xf32>, vector<64x192xf32>, vector<16x192xf32> -> vector<16x192xf32>
    %76 = arith.addf %72, %75 : vector<16x192xf32>
    %c17 = arith.constant 17 : index
    %c0_57 = arith.constant 0 : index
    %c0_58 = arith.constant 0 : index
    %77 = vector.load %arg2[%c17, %c0_57, %c0_58] : memref<25x64x192xf32, #tpu.memory_space<vmem>>, vector<1x64x192xf32>
    %78 = vector.shape_cast %77 : vector<1x64x192xf32> to vector<64x192xf32>
    %cst_59 = arith.constant dense<0.000000e+00> : vector<16x192xf32>
    %79 = tpu.matmul %68, %78, %cst_59 {dimension_numbers = #tpu.dot_dimension_numbers<[1], [0], [0], [1], [0, 0, 1, 1], [], []>} : vector<16x64xf32>, vector<64x192xf32>, vector<16x192xf32> -> vector<16x192xf32>
    %80 = arith.addf %76, %79 : vector<16x192xf32>
    %c18 = arith.constant 18 : index
    %c0_60 = arith.constant 0 : index
    %c0_61 = arith.constant 0 : index
    %81 = vector.load %arg2[%c18, %c0_60, %c0_61] : memref<25x64x192xf32, #tpu.memory_space<vmem>>, vector<1x64x192xf32>
    %82 = vector.shape_cast %81 : vector<1x64x192xf32> to vector<64x192xf32>
    %cst_62 = arith.constant dense<0.000000e+00> : vector<16x192xf32>
    %83 = tpu.matmul %68, %82, %cst_62 {dimension_numbers = #tpu.dot_dimension_numbers<[1], [0], [0], [1], [0, 0, 1, 1], [], []>} : vector<16x64xf32>, vector<64x192xf32>, vector<16x192xf32> -> vector<16x192xf32>
    %84 = arith.addf %80, %83 : vector<16x192xf32>
    %c19 = arith.constant 19 : index
    %c0_63 = arith.constant 0 : index
    %c0_64 = arith.constant 0 : index
    %85 = vector.load %arg2[%c19, %c0_63, %c0_64] : memref<25x64x192xf32, #tpu.memory_space<vmem>>, vector<1x64x192xf32>
    %86 = vector.shape_cast %85 : vector<1x64x192xf32> to vector<64x192xf32>
    %cst_65 = arith.constant dense<0.000000e+00> : vector<16x192xf32>
    %87 = tpu.matmul %68, %86, %cst_65 {dimension_numbers = #tpu.dot_dimension_numbers<[1], [0], [0], [1], [0, 0, 1, 1], [], []>} : vector<16x64xf32>, vector<64x192xf32>, vector<16x192xf32> -> vector<16x192xf32>
    %88 = arith.addf %84, %87 : vector<16x192xf32>
    %89 = vector.extract_strided_slice %2 {offsets = [64, 0], sizes = [16, 64], strides = [1, 1]} : vector<80x64xf32> to vector<16x64xf32>
    %c20 = arith.constant 20 : index
    %c0_66 = arith.constant 0 : index
    %c0_67 = arith.constant 0 : index
    %90 = vector.load %arg2[%c20, %c0_66, %c0_67] : memref<25x64x192xf32, #tpu.memory_space<vmem>>, vector<1x64x192xf32>
    %91 = vector.shape_cast %90 : vector<1x64x192xf32> to vector<64x192xf32>
    %cst_68 = arith.constant dense<0.000000e+00> : vector<16x192xf32>
    %92 = tpu.matmul %89, %91, %cst_68 {dimension_numbers = #tpu.dot_dimension_numbers<[1], [0], [0], [1], [0, 0, 1, 1], [], []>} : vector<16x64xf32>, vector<64x192xf32>, vector<16x192xf32> -> vector<16x192xf32>
    %93 = arith.addf %88, %92 : vector<16x192xf32>
    %c21 = arith.constant 21 : index
    %c0_69 = arith.constant 0 : index
    %c0_70 = arith.constant 0 : index
    %94 = vector.load %arg2[%c21, %c0_69, %c0_70] : memref<25x64x192xf32, #tpu.memory_space<vmem>>, vector<1x64x192xf32>
    %95 = vector.shape_cast %94 : vector<1x64x192xf32> to vector<64x192xf32>
    %cst_71 = arith.constant dense<0.000000e+00> : vector<16x192xf32>
    %96 = tpu.matmul %89, %95, %cst_71 {dimension_numbers = #tpu.dot_dimension_numbers<[1], [0], [0], [1], [0, 0, 1, 1], [], []>} : vector<16x64xf32>, vector<64x192xf32>, vector<16x192xf32> -> vector<16x192xf32>
    %97 = arith.addf %93, %96 : vector<16x192xf32>
    %c22 = arith.constant 22 : index
    %c0_72 = arith.constant 0 : index
    %c0_73 = arith.constant 0 : index
    %98 = vector.load %arg2[%c22, %c0_72, %c0_73] : memref<25x64x192xf32, #tpu.memory_space<vmem>>, vector<1x64x192xf32>
    %99 = vector.shape_cast %98 : vector<1x64x192xf32> to vector<64x192xf32>
    %cst_74 = arith.constant dense<0.000000e+00> : vector<16x192xf32>
    %100 = tpu.matmul %89, %99, %cst_74 {dimension_numbers = #tpu.dot_dimension_numbers<[1], [0], [0], [1], [0, 0, 1, 1], [], []>} : vector<16x64xf32>, vector<64x192xf32>, vector<16x192xf32> -> vector<16x192xf32>
    %101 = arith.addf %97, %100 : vector<16x192xf32>
    %c23 = arith.constant 23 : index
    %c0_75 = arith.constant 0 : index
    %c0_76 = arith.constant 0 : index
    %102 = vector.load %arg2[%c23, %c0_75, %c0_76] : memref<25x64x192xf32, #tpu.memory_space<vmem>>, vector<1x64x192xf32>
    %103 = vector.shape_cast %102 : vector<1x64x192xf32> to vector<64x192xf32>
    %cst_77 = arith.constant dense<0.000000e+00> : vector<16x192xf32>
    %104 = tpu.matmul %89, %103, %cst_77 {dimension_numbers = #tpu.dot_dimension_numbers<[1], [0], [0], [1], [0, 0, 1, 1], [], []>} : vector<16x64xf32>, vector<64x192xf32>, vector<16x192xf32> -> vector<16x192xf32>
    %105 = arith.addf %101, %104 : vector<16x192xf32>
    %c24 = arith.constant 24 : index
    %c0_78 = arith.constant 0 : index
    %c0_79 = arith.constant 0 : index
    %106 = vector.load %arg2[%c24, %c0_78, %c0_79] : memref<25x64x192xf32, #tpu.memory_space<vmem>>, vector<1x64x192xf32>
    %107 = vector.shape_cast %106 : vector<1x64x192xf32> to vector<64x192xf32>
    %cst_80 = arith.constant dense<0.000000e+00> : vector<16x192xf32>
    %108 = tpu.matmul %89, %107, %cst_80 {dimension_numbers = #tpu.dot_dimension_numbers<[1], [0], [0], [1], [0, 0, 1, 1], [], []>} : vector<16x64xf32>, vector<64x192xf32>, vector<16x192xf32> -> vector<16x192xf32>
    %109 = arith.addf %105, %108 : vector<16x192xf32>
    %cst_81 = arith.constant 0.000000e+00 : f32
    %110 = vector.broadcast %cst_81 : f32 to vector<16x192xf32>
    %111 = arith.maximumf %109, %110 : vector<16x192xf32>
    %c0_82 = arith.constant 0 : index
    %c0_83 = arith.constant 0 : index
    %112 = vector.load %arg4[%c0_82, %c0_83] : memref<24x16xf32, #tpu.memory_space<vmem>>, vector<24x16xf32>
    %cst_84 = arith.constant dense<0.000000e+00> : vector<24x192xf32>
    %113 = tpu.matmul %112, %111, %cst_84 {dimension_numbers = #tpu.dot_dimension_numbers<[1], [0], [0], [1], [0, 0, 1, 1], [], []>} : vector<24x16xf32>, vector<16x192xf32>, vector<24x192xf32> -> vector<24x192xf32>
    %c0_85 = arith.constant 0 : index
    %c0_86 = arith.constant 0 : index
    %114 = vector.load %arg6[%c0_85, %c0_86] : memref<1x256xf32, #tpu.memory_space<vmem>>, vector<1x256xf32>
    %115 = vector.extract_strided_slice %113 {offsets = [0, 0], sizes = [8, 192], strides = [1, 1]} : vector<24x192xf32> to vector<8x192xf32>
    %c0_87 = arith.constant 0 : index
    %c0_88 = arith.constant 0 : index
    %c0_89 = arith.constant 0 : index
    %116 = vector.load %arg5[%c0_87, %c0_88, %c0_89] : memref<9x192x256xf32, #tpu.memory_space<vmem>>, vector<1x192x256xf32>
    %117 = vector.shape_cast %116 : vector<1x192x256xf32> to vector<192x256xf32>
    %cst_90 = arith.constant dense<0.000000e+00> : vector<8x256xf32>
    %118 = tpu.matmul %115, %117, %cst_90 {dimension_numbers = #tpu.dot_dimension_numbers<[1], [0], [0], [1], [0, 0, 1, 1], [], []>} : vector<8x192xf32>, vector<192x256xf32>, vector<8x256xf32> -> vector<8x256xf32>
    %119 = vector.broadcast %114 : vector<1x256xf32> to vector<8x256xf32>
    %120 = arith.addf %119, %118 : vector<8x256xf32>
    %c1_91 = arith.constant 1 : index
    %c0_92 = arith.constant 0 : index
    %c0_93 = arith.constant 0 : index
    %121 = vector.load %arg5[%c1_91, %c0_92, %c0_93] : memref<9x192x256xf32, #tpu.memory_space<vmem>>, vector<1x192x256xf32>
    %122 = vector.shape_cast %121 : vector<1x192x256xf32> to vector<192x256xf32>
    %cst_94 = arith.constant dense<0.000000e+00> : vector<8x256xf32>
    %123 = tpu.matmul %115, %122, %cst_94 {dimension_numbers = #tpu.dot_dimension_numbers<[1], [0], [0], [1], [0, 0, 1, 1], [], []>} : vector<8x192xf32>, vector<192x256xf32>, vector<8x256xf32> -> vector<8x256xf32>
    %124 = arith.addf %120, %123 : vector<8x256xf32>
    %c2_95 = arith.constant 2 : index
    %c0_96 = arith.constant 0 : index
    %c0_97 = arith.constant 0 : index
    %125 = vector.load %arg5[%c2_95, %c0_96, %c0_97] : memref<9x192x256xf32, #tpu.memory_space<vmem>>, vector<1x192x256xf32>
    %126 = vector.shape_cast %125 : vector<1x192x256xf32> to vector<192x256xf32>
    %cst_98 = arith.constant dense<0.000000e+00> : vector<8x256xf32>
    %127 = tpu.matmul %115, %126, %cst_98 {dimension_numbers = #tpu.dot_dimension_numbers<[1], [0], [0], [1], [0, 0, 1, 1], [], []>} : vector<8x192xf32>, vector<192x256xf32>, vector<8x256xf32> -> vector<8x256xf32>
    %128 = arith.addf %124, %127 : vector<8x256xf32>
    %129 = vector.extract_strided_slice %113 {offsets = [8, 0], sizes = [8, 192], strides = [1, 1]} : vector<24x192xf32> to vector<8x192xf32>
    %c3_99 = arith.constant 3 : index
    %c0_100 = arith.constant 0 : index
    %c0_101 = arith.constant 0 : index
    %130 = vector.load %arg5[%c3_99, %c0_100, %c0_101] : memref<9x192x256xf32, #tpu.memory_space<vmem>>, vector<1x192x256xf32>
    %131 = vector.shape_cast %130 : vector<1x192x256xf32> to vector<192x256xf32>
    %cst_102 = arith.constant dense<0.000000e+00> : vector<8x256xf32>
    %132 = tpu.matmul %129, %131, %cst_102 {dimension_numbers = #tpu.dot_dimension_numbers<[1], [0], [0], [1], [0, 0, 1, 1], [], []>} : vector<8x192xf32>, vector<192x256xf32>, vector<8x256xf32> -> vector<8x256xf32>
    %133 = arith.addf %128, %132 : vector<8x256xf32>
    %c4_103 = arith.constant 4 : index
    %c0_104 = arith.constant 0 : index
    %c0_105 = arith.constant 0 : index
    %134 = vector.load %arg5[%c4_103, %c0_104, %c0_105] : memref<9x192x256xf32, #tpu.memory_space<vmem>>, vector<1x192x256xf32>
    %135 = vector.shape_cast %134 : vector<1x192x256xf32> to vector<192x256xf32>
    %cst_106 = arith.constant dense<0.000000e+00> : vector<8x256xf32>
    %136 = tpu.matmul %129, %135, %cst_106 {dimension_numbers = #tpu.dot_dimension_numbers<[1], [0], [0], [1], [0, 0, 1, 1], [], []>} : vector<8x192xf32>, vector<192x256xf32>, vector<8x256xf32> -> vector<8x256xf32>
    %137 = arith.addf %133, %136 : vector<8x256xf32>
    %c5_107 = arith.constant 5 : index
    %c0_108 = arith.constant 0 : index
    %c0_109 = arith.constant 0 : index
    %138 = vector.load %arg5[%c5_107, %c0_108, %c0_109] : memref<9x192x256xf32, #tpu.memory_space<vmem>>, vector<1x192x256xf32>
    %139 = vector.shape_cast %138 : vector<1x192x256xf32> to vector<192x256xf32>
    %cst_110 = arith.constant dense<0.000000e+00> : vector<8x256xf32>
    %140 = tpu.matmul %129, %139, %cst_110 {dimension_numbers = #tpu.dot_dimension_numbers<[1], [0], [0], [1], [0, 0, 1, 1], [], []>} : vector<8x192xf32>, vector<192x256xf32>, vector<8x256xf32> -> vector<8x256xf32>
    %141 = arith.addf %137, %140 : vector<8x256xf32>
    %142 = vector.extract_strided_slice %113 {offsets = [16, 0], sizes = [8, 192], strides = [1, 1]} : vector<24x192xf32> to vector<8x192xf32>
    %c6_111 = arith.constant 6 : index
    %c0_112 = arith.constant 0 : index
    %c0_113 = arith.constant 0 : index
    %143 = vector.load %arg5[%c6_111, %c0_112, %c0_113] : memref<9x192x256xf32, #tpu.memory_space<vmem>>, vector<1x192x256xf32>
    %144 = vector.shape_cast %143 : vector<1x192x256xf32> to vector<192x256xf32>
    %cst_114 = arith.constant dense<0.000000e+00> : vector<8x256xf32>
    %145 = tpu.matmul %142, %144, %cst_114 {dimension_numbers = #tpu.dot_dimension_numbers<[1], [0], [0], [1], [0, 0, 1, 1], [], []>} : vector<8x192xf32>, vector<192x256xf32>, vector<8x256xf32> -> vector<8x256xf32>
    %146 = arith.addf %141, %145 : vector<8x256xf32>
    %c7_115 = arith.constant 7 : index
    %c0_116 = arith.constant 0 : index
    %c0_117 = arith.constant 0 : index
    %147 = vector.load %arg5[%c7_115, %c0_116, %c0_117] : memref<9x192x256xf32, #tpu.memory_space<vmem>>, vector<1x192x256xf32>
    %148 = vector.shape_cast %147 : vector<1x192x256xf32> to vector<192x256xf32>
    %cst_118 = arith.constant dense<0.000000e+00> : vector<8x256xf32>
    %149 = tpu.matmul %142, %148, %cst_118 {dimension_numbers = #tpu.dot_dimension_numbers<[1], [0], [0], [1], [0, 0, 1, 1], [], []>} : vector<8x192xf32>, vector<192x256xf32>, vector<8x256xf32> -> vector<8x256xf32>
    %150 = arith.addf %146, %149 : vector<8x256xf32>
    %c8_119 = arith.constant 8 : index
    %c0_120 = arith.constant 0 : index
    %c0_121 = arith.constant 0 : index
    %151 = vector.load %arg5[%c8_119, %c0_120, %c0_121] : memref<9x192x256xf32, #tpu.memory_space<vmem>>, vector<1x192x256xf32>
    %152 = vector.shape_cast %151 : vector<1x192x256xf32> to vector<192x256xf32>
    %cst_122 = arith.constant dense<0.000000e+00> : vector<8x256xf32>
    %153 = tpu.matmul %142, %152, %cst_122 {dimension_numbers = #tpu.dot_dimension_numbers<[1], [0], [0], [1], [0, 0, 1, 1], [], []>} : vector<8x192xf32>, vector<192x256xf32>, vector<8x256xf32> -> vector<8x256xf32>
    %154 = arith.addf %150, %153 : vector<8x256xf32>
    %cst_123 = arith.constant 0.000000e+00 : f32
    %155 = vector.broadcast %cst_123 : f32 to vector<8x256xf32>
    %156 = arith.maximumf %154, %155 : vector<8x256xf32>
    %c0_124 = arith.constant 0 : index
    %c0_125 = arith.constant 0 : index
    %157 = vector.load %arg7[%c0_124, %c0_125] : memref<24x8xf32, #tpu.memory_space<vmem>>, vector<24x8xf32>
    %cst_126 = arith.constant dense<0.000000e+00> : vector<24x256xf32>
    %158 = tpu.matmul %157, %156, %cst_126 {dimension_numbers = #tpu.dot_dimension_numbers<[1], [0], [0], [1], [0, 0, 1, 1], [], []>} : vector<24x8xf32>, vector<8x256xf32>, vector<24x256xf32> -> vector<24x256xf32>
    %c0_127 = arith.constant 0 : index
    %c0_128 = arith.constant 0 : index
    %159 = vector.load %arg9[%c0_127, %c0_128] : memref<1x64xf32, #tpu.memory_space<vmem>>, vector<1x64xf32>
    %160 = vector.extract_strided_slice %158 {offsets = [0, 0], sizes = [8, 256], strides = [1, 1]} : vector<24x256xf32> to vector<8x256xf32>
    %c0_129 = arith.constant 0 : index
    %c0_130 = arith.constant 0 : index
    %c0_131 = arith.constant 0 : index
    %161 = vector.load %arg8[%c0_129, %c0_130, %c0_131] : memref<9x256x64xf32, #tpu.memory_space<vmem>>, vector<1x256x64xf32>
    %162 = vector.shape_cast %161 : vector<1x256x64xf32> to vector<256x64xf32>
    %cst_132 = arith.constant dense<0.000000e+00> : vector<8x64xf32>
    %163 = tpu.matmul %160, %162, %cst_132 {dimension_numbers = #tpu.dot_dimension_numbers<[1], [0], [0], [1], [0, 0, 1, 1], [], []>} : vector<8x256xf32>, vector<256x64xf32>, vector<8x64xf32> -> vector<8x64xf32>
    %164 = vector.broadcast %159 : vector<1x64xf32> to vector<8x64xf32>
    %165 = arith.addf %164, %163 : vector<8x64xf32>
    %c1_133 = arith.constant 1 : index
    %c0_134 = arith.constant 0 : index
    %c0_135 = arith.constant 0 : index
    %166 = vector.load %arg8[%c1_133, %c0_134, %c0_135] : memref<9x256x64xf32, #tpu.memory_space<vmem>>, vector<1x256x64xf32>
    %167 = vector.shape_cast %166 : vector<1x256x64xf32> to vector<256x64xf32>
    %cst_136 = arith.constant dense<0.000000e+00> : vector<8x64xf32>
    %168 = tpu.matmul %160, %167, %cst_136 {dimension_numbers = #tpu.dot_dimension_numbers<[1], [0], [0], [1], [0, 0, 1, 1], [], []>} : vector<8x256xf32>, vector<256x64xf32>, vector<8x64xf32> -> vector<8x64xf32>
    %169 = arith.addf %165, %168 : vector<8x64xf32>
    %c2_137 = arith.constant 2 : index
    %c0_138 = arith.constant 0 : index
    %c0_139 = arith.constant 0 : index
    %170 = vector.load %arg8[%c2_137, %c0_138, %c0_139] : memref<9x256x64xf32, #tpu.memory_space<vmem>>, vector<1x256x64xf32>
    %171 = vector.shape_cast %170 : vector<1x256x64xf32> to vector<256x64xf32>
    %cst_140 = arith.constant dense<0.000000e+00> : vector<8x64xf32>
    %172 = tpu.matmul %160, %171, %cst_140 {dimension_numbers = #tpu.dot_dimension_numbers<[1], [0], [0], [1], [0, 0, 1, 1], [], []>} : vector<8x256xf32>, vector<256x64xf32>, vector<8x64xf32> -> vector<8x64xf32>
    %173 = arith.addf %169, %172 : vector<8x64xf32>
    %174 = vector.extract_strided_slice %158 {offsets = [8, 0], sizes = [8, 256], strides = [1, 1]} : vector<24x256xf32> to vector<8x256xf32>
    %c3_141 = arith.constant 3 : index
    %c0_142 = arith.constant 0 : index
    %c0_143 = arith.constant 0 : index
    %175 = vector.load %arg8[%c3_141, %c0_142, %c0_143] : memref<9x256x64xf32, #tpu.memory_space<vmem>>, vector<1x256x64xf32>
    %176 = vector.shape_cast %175 : vector<1x256x64xf32> to vector<256x64xf32>
    %cst_144 = arith.constant dense<0.000000e+00> : vector<8x64xf32>
    %177 = tpu.matmul %174, %176, %cst_144 {dimension_numbers = #tpu.dot_dimension_numbers<[1], [0], [0], [1], [0, 0, 1, 1], [], []>} : vector<8x256xf32>, vector<256x64xf32>, vector<8x64xf32> -> vector<8x64xf32>
    %178 = arith.addf %173, %177 : vector<8x64xf32>
    %c4_145 = arith.constant 4 : index
    %c0_146 = arith.constant 0 : index
    %c0_147 = arith.constant 0 : index
    %179 = vector.load %arg8[%c4_145, %c0_146, %c0_147] : memref<9x256x64xf32, #tpu.memory_space<vmem>>, vector<1x256x64xf32>
    %180 = vector.shape_cast %179 : vector<1x256x64xf32> to vector<256x64xf32>
    %cst_148 = arith.constant dense<0.000000e+00> : vector<8x64xf32>
    %181 = tpu.matmul %174, %180, %cst_148 {dimension_numbers = #tpu.dot_dimension_numbers<[1], [0], [0], [1], [0, 0, 1, 1], [], []>} : vector<8x256xf32>, vector<256x64xf32>, vector<8x64xf32> -> vector<8x64xf32>
    %182 = arith.addf %178, %181 : vector<8x64xf32>
    %c5_149 = arith.constant 5 : index
    %c0_150 = arith.constant 0 : index
    %c0_151 = arith.constant 0 : index
    %183 = vector.load %arg8[%c5_149, %c0_150, %c0_151] : memref<9x256x64xf32, #tpu.memory_space<vmem>>, vector<1x256x64xf32>
    %184 = vector.shape_cast %183 : vector<1x256x64xf32> to vector<256x64xf32>
    %cst_152 = arith.constant dense<0.000000e+00> : vector<8x64xf32>
    %185 = tpu.matmul %174, %184, %cst_152 {dimension_numbers = #tpu.dot_dimension_numbers<[1], [0], [0], [1], [0, 0, 1, 1], [], []>} : vector<8x256xf32>, vector<256x64xf32>, vector<8x64xf32> -> vector<8x64xf32>
    %186 = arith.addf %182, %185 : vector<8x64xf32>
    %187 = vector.extract_strided_slice %158 {offsets = [16, 0], sizes = [8, 256], strides = [1, 1]} : vector<24x256xf32> to vector<8x256xf32>
    %c6_153 = arith.constant 6 : index
    %c0_154 = arith.constant 0 : index
    %c0_155 = arith.constant 0 : index
    %188 = vector.load %arg8[%c6_153, %c0_154, %c0_155] : memref<9x256x64xf32, #tpu.memory_space<vmem>>, vector<1x256x64xf32>
    %189 = vector.shape_cast %188 : vector<1x256x64xf32> to vector<256x64xf32>
    %cst_156 = arith.constant dense<0.000000e+00> : vector<8x64xf32>
    %190 = tpu.matmul %187, %189, %cst_156 {dimension_numbers = #tpu.dot_dimension_numbers<[1], [0], [0], [1], [0, 0, 1, 1], [], []>} : vector<8x256xf32>, vector<256x64xf32>, vector<8x64xf32> -> vector<8x64xf32>
    %191 = arith.addf %186, %190 : vector<8x64xf32>
    %c7_157 = arith.constant 7 : index
    %c0_158 = arith.constant 0 : index
    %c0_159 = arith.constant 0 : index
    %192 = vector.load %arg8[%c7_157, %c0_158, %c0_159] : memref<9x256x64xf32, #tpu.memory_space<vmem>>, vector<1x256x64xf32>
    %193 = vector.shape_cast %192 : vector<1x256x64xf32> to vector<256x64xf32>
    %cst_160 = arith.constant dense<0.000000e+00> : vector<8x64xf32>
    %194 = tpu.matmul %187, %193, %cst_160 {dimension_numbers = #tpu.dot_dimension_numbers<[1], [0], [0], [1], [0, 0, 1, 1], [], []>} : vector<8x256xf32>, vector<256x64xf32>, vector<8x64xf32> -> vector<8x64xf32>
    %195 = arith.addf %191, %194 : vector<8x64xf32>
    %c8_161 = arith.constant 8 : index
    %c0_162 = arith.constant 0 : index
    %c0_163 = arith.constant 0 : index
    %196 = vector.load %arg8[%c8_161, %c0_162, %c0_163] : memref<9x256x64xf32, #tpu.memory_space<vmem>>, vector<1x256x64xf32>
    %197 = vector.shape_cast %196 : vector<1x256x64xf32> to vector<256x64xf32>
    %cst_164 = arith.constant dense<0.000000e+00> : vector<8x64xf32>
    %198 = tpu.matmul %187, %197, %cst_164 {dimension_numbers = #tpu.dot_dimension_numbers<[1], [0], [0], [1], [0, 0, 1, 1], [], []>} : vector<8x256xf32>, vector<256x64xf32>, vector<8x64xf32> -> vector<8x64xf32>
    %199 = arith.addf %195, %198 : vector<8x64xf32>
    %c0_165 = arith.constant 0 : index
    %c0_166 = arith.constant 0 : index
    %200 = vector.load %arg10[%c0_165, %c0_166] : memref<16x8xf32, #tpu.memory_space<vmem>>, vector<16x8xf32>
    %cst_167 = arith.constant dense<0.000000e+00> : vector<16x64xf32>
    %201 = tpu.matmul %200, %199, %cst_167 {dimension_numbers = #tpu.dot_dimension_numbers<[1], [0], [0], [1], [0, 0, 1, 1], [], []>} : vector<16x8xf32>, vector<8x64xf32>, vector<16x64xf32> -> vector<16x64xf32>
    %c0_168 = arith.constant 0 : index
    %c0_169 = arith.constant 0 : index
    %202 = vector.load %arg12[%c0_168, %c0_169] : memref<1x32xf32, #tpu.memory_space<vmem>>, vector<1x32xf32>
    %203 = vector.extract_strided_slice %201 {offsets = [0, 0], sizes = [8, 64], strides = [1, 1]} : vector<16x64xf32> to vector<8x64xf32>
    %c0_170 = arith.constant 0 : index
    %c0_171 = arith.constant 0 : index
    %c0_172 = arith.constant 0 : index
    %204 = vector.load %arg11[%c0_170, %c0_171, %c0_172] : memref<2x64x32xf32, #tpu.memory_space<vmem>>, vector<1x64x32xf32>
    %205 = vector.shape_cast %204 : vector<1x64x32xf32> to vector<64x32xf32>
    %cst_173 = arith.constant dense<0.000000e+00> : vector<8x32xf32>
    %206 = tpu.matmul %203, %205, %cst_173 {dimension_numbers = #tpu.dot_dimension_numbers<[1], [0], [0], [1], [0, 0, 1, 1], [], []>} : vector<8x64xf32>, vector<64x32xf32>, vector<8x32xf32> -> vector<8x32xf32>
    %207 = vector.broadcast %202 : vector<1x32xf32> to vector<8x32xf32>
    %208 = arith.addf %207, %206 : vector<8x32xf32>
    %209 = vector.extract_strided_slice %201 {offsets = [8, 0], sizes = [8, 64], strides = [1, 1]} : vector<16x64xf32> to vector<8x64xf32>
    %c1_174 = arith.constant 1 : index
    %c0_175 = arith.constant 0 : index
    %c0_176 = arith.constant 0 : index
    %210 = vector.load %arg11[%c1_174, %c0_175, %c0_176] : memref<2x64x32xf32, #tpu.memory_space<vmem>>, vector<1x64x32xf32>
    %211 = vector.shape_cast %210 : vector<1x64x32xf32> to vector<64x32xf32>
    %cst_177 = arith.constant dense<0.000000e+00> : vector<8x32xf32>
    %212 = tpu.matmul %209, %211, %cst_177 {dimension_numbers = #tpu.dot_dimension_numbers<[1], [0], [0], [1], [0, 0, 1, 1], [], []>} : vector<8x64xf32>, vector<64x32xf32>, vector<8x32xf32> -> vector<8x32xf32>
    %213 = arith.addf %208, %212 : vector<8x32xf32>
    %214 = vector.extract_strided_slice %213 {offsets = [0, 0], sizes = [2, 32], strides = [1, 1]} : vector<8x32xf32> to vector<2x32xf32>
    %cst_178 = arith.constant 0.000000e+00 : f32
    %215 = vector.broadcast %cst_178 : f32 to vector<2x32xf32>
    %216 = arith.maximumf %214, %215 : vector<2x32xf32>
    %c0_179 = arith.constant 0 : index
    %c0_180 = arith.constant 0 : index
    %217 = vector.load %arg13[%c0_179, %c0_180] : memref<2x32xf32, #tpu.memory_space<vmem>>, vector<2x32xf32>
    tpu.vector_store %arg13[%c0_179, %c0_180], %216 {strides = array<i32>} : memref<2x32xf32, #tpu.memory_space<vmem>>, vector<2x32xf32>,
    return
  }
}

</mosaic_0001>

<bundles_post_ra>
// kernel: _forward.1
= control target key start
LH: loop header
LB: loop body
LE: loop exit
PB: predicated region body
PF: predicated region fallthrough
CT: control target
= control target key end

     0   :  { %18 = vsyncpa [#allocation3], 0  ;;  %s5388_s0 = inlined_call_operand.vmem [shape: f32[32,64], index: 0, kind: input, shape index: {}]   ;;  %s5389_s1 = inlined_call_operand.hbm [shape: f32[80,32], index: 1, kind: input, shape index: {}]   ;;  %s5390_s2 = inlined_call_operand.hbm [shape: f32[25,64,192], index: 2, kind: input, shape index: {}]   ;;  %s5391_s3 = inlined_call_operand.hbm [shape: f32[1,192], index: 3, kind: input, shape index: {}]   ;;  %s5392_s4 = inlined_call_operand.hbm [shape: f32[24,16], index: 4, kind: input, shape index: {}]   ;;  %s5393_s5 = inlined_call_operand.hbm [shape: f32[9,192,256], index: 5, kind: input, shape index: {}]   ;;  %s5394_s6 = inlined_call_operand.hbm [shape: f32[1,256], index: 6, kind: input, shape index: {}]   ;;  %s5395_s7 = inlined_call_operand.hbm [shape: f32[24,8], index: 7, kind: input, shape index: {}]   ;;  %s5396_s8 = inlined_call_operand.hbm [shape: f32[9,256,64], index: 8, kind: input, shape index: {}]   ;;  %s5397_s9 = inlined_call_operand.hbm [shape: f32[1,64], index: 9, kind: input, shape index: {}]   ;;  %s5398_s10 = inlined_call_operand.hbm [shape: f32[16,8], index: 10, kind: input, shape index: {}]   ;;  %s5399_s11 = inlined_call_operand.hbm [shape: f32[2,64,32], index: 11, kind: input, shape index: {}]   ;;  %s5400_s12 = inlined_call_operand.hbm [shape: f32[1,32], index: 12, kind: input, shape index: {}]   ;;  %s5401_s13 = inlined_call_operand.hbm [shape: f32[2,32], index: 13, kind: output, shape index: {}]  }
   0x1   :  { %19 = vsyncpa [#allocation6], 0 }
   0x2   :  { %20 = vsyncpa [#allocation9], 0 }
   0x3   :  { %21 = vsyncpa [#allocation12], 0 }
   0x4   :  { %22 = vsyncpa [#allocation15], 0 }
   0x5   :  { %23 = vsyncpa [#allocation18], 0 }
   0x6   :  { %24 = vsyncpa [#allocation21], 0  ;;  %s45_s27 = sshll.u32 %s5390_s2, 4  ;;  %s46_s27 = int_to_ptr.hbm [resolvable:$true] %s45_s27 }
   0x7   :  { %25 = vsyncpa [#allocation4], 0  ;;  %s4642_s28 = smov [#allocation5]   ;;  %s4643_s30 = smov 256  }
   0x8   :  { %s47_s29 = sshll.u32 %s4642_s28, 4  ;;  %s4644_s14 = smov 16   ;;  %s48_s29 = int_to_ptr.vmem [resolvable:$true] %s47_s29 }
   0x9   :  { %53 = dma.hbm_to_vmem [thread:$0]  %s46_s27, 51200, %s48_s29, [#allocation6], %s4643_s30, %s4643_s30, %s4644_s14  }
   0xa   :  { %s69_s17 = sshll.u32 %s5392_s4, 4  ;;  %s4645_s18 = smov [#allocation8]   ;;  %s70_s17 = int_to_ptr.hbm [resolvable:$true] %s69_s17 }
   0xb   :  { %s71_s19 = sshll.u32 %s4645_s18, 4  ;;  %s96_s21 = sshll.u32 %s5394_s6, 4  ;;  %s72_s19 = int_to_ptr.vmem [resolvable:$true] %s71_s19  ;;  %s97_s21 = int_to_ptr.hbm [resolvable:$true] %s96_s21 }
   0xc   :  { %s4646_s22 = smov 128   ;;  %s4647_s23 = smov 8  }
   0xd   :  { %77 = dma.hbm_to_vmem [thread:$0]  %s70_s17, 384, %s72_s19, [#allocation9], %s4646_s22, %s4646_s22, %s4647_s23  }
   0xe   :  { %s119_s26 = sshll.u32 %s5396_s8, 4  ;;  %s4648_s4 = smov [#allocation11]   ;;  %s120_s26 = int_to_ptr.hbm [resolvable:$true] %s119_s26 }
   0xf   :  { %s98_s27 = sshll.u32 %s4648_s4, 4  ;;  %s4649_s28 = smov [#allocation14]   ;;  %s99_s27 = int_to_ptr.vmem [resolvable:$true] %s98_s27 }
  0x10   :  { %101 = dma.hbm_to_vmem [thread:$0]  %s97_s21, 32, %s99_s27, [#allocation12]  }
  0x11   :  { %s121_s29 = sshll.u32 %s4649_s28, 4  ;;  %s143_s16 = sshll.u32 %s5398_s10, 4  ;;  %s122_s29 = int_to_ptr.vmem [resolvable:$true] %s121_s29  ;;  %s144_s16 = int_to_ptr.hbm [resolvable:$true] %s143_s16 }
  0x12   :  { %127 = dma.hbm_to_vmem [thread:$0]  %s120_s26, 36864, %s122_s29, [#allocation15], %s4646_s22, %s4646_s22, %s4647_s23  }
  0x13   :  { %s32_s8 = sshll.u32 %s5389_s1, 4  ;;  %s4650_s19 = smov [#allocation17]   ;;  %s33_s8 = int_to_ptr.hbm [resolvable:$true] %s32_s8 }
  0x14   :  { %s145_s20 = sshll.u32 %s4650_s19, 4  ;;  %s4651_s2 = smov [#allocation2]   ;;  %s146_s20 = int_to_ptr.vmem [resolvable:$true] %s145_s20 }
  0x15   :  { %151 = dma.hbm_to_vmem [thread:$0]  %s144_s16, 256, %s146_s20, [#allocation18], %s4646_s22, %s4646_s22, %s4647_s23  }
  0x16   :  { %s34_s10 = sshll.u32 %s4651_s2, 4  ;;  %s59_s25 = sshll.u32 %s5391_s3, 4  ;;  %s35_s10 = int_to_ptr.vmem [resolvable:$true] %s34_s10  ;;  %s60_s25 = int_to_ptr.hbm [resolvable:$true] %s59_s25 }
  0x17   :  { %40 = dma.hbm_to_vmem [thread:$0]  %s33_s8, 1280, %s35_s10, [#allocation3], %s4646_s22, %s4646_s22, %s4647_s23  }
  0x18   :  { %s82_s4 = sshll.u32 %s5393_s5, 4  ;;  %s4652_s27 = smov [#allocation7]   ;;  %s83_s4 = int_to_ptr.hbm [resolvable:$true] %s82_s4 }
  0x19   :  { %s61_s28 = sshll.u32 %s4652_s27, 4  ;;  %s4653_s29 = smov [#allocation10]   ;;  %s62_s28 = int_to_ptr.vmem [resolvable:$true] %s61_s28 }
  0x1a   :  { %64 = dma.hbm_to_vmem [thread:$0]  %s60_s25, 32, %s62_s28, [#allocation6]  }
  0x1b   :  { %s84_s6 = sshll.u32 %s4653_s29, 4  ;;  %s106_s3 = sshll.u32 %s5395_s7, 4  ;;  %s85_s6 = int_to_ptr.vmem [resolvable:$true] %s84_s6  ;;  %s107_s3 = int_to_ptr.hbm [resolvable:$true] %s106_s3 }
  0x1c   :  { %90 = dma.hbm_to_vmem [thread:$0]  %s83_s4, 55296, %s85_s6, [#allocation9], %s4643_s30, %s4643_s30, %s4644_s14  }
  0x1d   :  { %s133_s5 = sshll.u32 %s5397_s9, 4  ;;  %s4654_s8 = smov [#allocation13]   ;;  %s134_s5 = int_to_ptr.hbm [resolvable:$true] %s133_s5 }
  0x1e   :  { %s108_s19 = sshll.u32 %s4654_s8, 4  ;;  %s4655_s20 = smov [#allocation16]   ;;  %s109_s19 = int_to_ptr.vmem [resolvable:$true] %s108_s19 }
  0x1f   :  { %114 = dma.hbm_to_vmem [thread:$0]  %s107_s3, 384, %s109_s19, [#allocation12], %s4646_s22, %s4646_s22, %s4647_s23  }
  0x20   :  { %s135_s7 = sshll.u32 %s4655_s20, 4  ;;  %s156_s21 = sshll.u32 %s5399_s11, 4  ;;  %s136_s7 = int_to_ptr.vmem [resolvable:$true] %s135_s7  ;;  %s157_s21 = int_to_ptr.hbm [resolvable:$true] %s156_s21 }
  0x21   :  { %138 = dma.hbm_to_vmem [thread:$0]  %s134_s5, 16, %s136_s7, [#allocation15]  }
  0x22   :  { %s170_s9 = sshll.u32 %s5400_s12, 4  ;;  %s4656_s24 = smov [#allocation19]   ;;  %s171_s9 = int_to_ptr.hbm [resolvable:$true] %s170_s9 }
  0x23   :  { %s158_s25 = sshll.u32 %s4656_s24, 4  ;;  %s4657_s1 = smov [#allocation20]   ;;  %s159_s25 = int_to_ptr.vmem [resolvable:$true] %s158_s25 }
  0x24   :  { %164 = dma.hbm_to_vmem [thread:$0]  %s157_s21, 2048, %s159_s25, [#allocation18], %s4646_s22, %s4646_s22, %s4647_s23  }
  0x25   :  { %s172_s26 = sshll.u32 %s4657_s1, 4  ;;  %s173_s26 = int_to_ptr.vmem [resolvable:$true] %s172_s26 }
  0x26   :  { %175 = dma.hbm_to_vmem [thread:$0]  %s171_s9, 16, %s173_s26, [#allocation21]  }
  0x27   :  { %4626 = dma.done.wait [#allocation3], 1280  }
  0x28   :  { %4627 = vsyncadd [#allocation3], 4294966016 }
  0x29   :  { %4628 = dma.done.wait [#allocation6], 51232  }
  0x2a   :  { %4629 = vsyncadd [#allocation6], 4294916064 }
  0x2b   :  { %4630 = dma.done.wait [#allocation9], 55680  }
  0x2c   :  { %4631 = vsyncadd [#allocation9], 4294911616 }
  0x2d   :  { %4632 = dma.done.wait [#allocation12], 416  }
  0x2e   :  { %4633 = vsyncadd [#allocation12], 4294966880 }
  0x2f   :  { %4634 = dma.done.wait [#allocation15], 36880  }
  0x30   :  { %4635 = vsyncadd [#allocation15], 4294930416 }
  0x31   :  { %4636 = dma.done.wait [#allocation18], 2304  }
  0x32   :  { %4637 = vsyncadd [#allocation18], 4294964992 }
  0x33   :  { %4638 = dma.done.wait [#allocation21], 16  }
  0x34   :  { %4639 = vsyncadd [#allocation21], 4294967280  ;;  %v227_v0 = vld [vmem:[%s5388_s0 + $0x18] sm:$0xff]  ;;  %v226_v1 = vld [vmem:[%s5388_s0 + $0x10] sm:$0xff]  ;;  %vm238_vm0 = vcmask 261120   ;;  %vm333_vm1 = vcmask 523264  }
  0x35   :  { %281 = vmatpush.msra.mxu0 %v227_v0  ;;  %v225_v2 = vld [vmem:[%s5388_s0 + $0x8] sm:$0xff]  ;;  %v224_v3 = vld [vmem:[%s5388_s0] sm:$0xff]  ;;  %v230_v6 = vld [vmem:[#allocation2 + $0x10] sm:$0xff]  ;;  %vm2034_vm2 = vcmask 130048   ;;  %vm3294_vm3 = vcmask 64512   ;;  %s4658_s0 = smov [#allocation22]  }
  0x36   :  { %v228_v4 = vld [vmem:[#allocation2] sm:$0xff]  ;;  %v229_v5 = vld [vmem:[#allocation2 + $0x8] sm:$0xff]  ;;  %v329_v10 = vld [vmem:[#allocation5 + $0x60] sm:$0xff]  ;;  %s4133_s6 = sshll.u32 %s4658_s0, 4  ;;  %s4135_s3 = sshll.u32 %s5401_s13, 4  ;;  %vm4126_vm4 = vcmask 254976   ;;  %s4134_s6 = int_to_ptr.vmem [resolvable:$true] %s4133_s6  ;;  %s4136_s3 = int_to_ptr.hbm [resolvable:$true] %s4135_s3 }
  0x37   :  { %282 = vmatpush.msra.mxu0 %v226_v1  ;;  %v331_v7 = vld [vmem:[#allocation5 + $0x70] sm:$0xff]  ;;  %v332_v8 = vld [vmem:[#allocation5 + $0x78] sm:$0xff]  ;;  %v330_v11 = vld [vmem:[#allocation5 + $0x68] sm:$0xff] }
  0x38   :  { %v410_v9 = vld [vmem:[#allocation5 + $0xf0] sm:$0xff]  ;;  %348 = vmatpush.msra.mxu1 %v331_v7  ;;  %371 = vmatpush.msra.mxu2 %v332_v8  ;;  %v408_v12 = vld [vmem:[#allocation5 + $0xe0] sm:$0xff]  ;;  %v328_v14 = vld [vmem:[#allocation5 + $0x58] sm:$0xff] }
  0x39   :  { %283 = vmatpush.msra.mxu0 %v225_v2  ;;  %420 = vmatpush.msra.mxu3 %v410_v9  ;;  %v327_v13 = vld [vmem:[#allocation5 + $0x50] sm:$0xff]  ;;  %v325_v16 = vld [vmem:[#allocation5 + $0x40] sm:$0xff]  ;;  %v326_v17 = vld [vmem:[#allocation5 + $0x48] sm:$0xff] }
  0x3a   :  { %349 = vmatpush.msra.mxu1 %v329_v10  ;;  %372 = vmatpush.msra.mxu2 %v330_v11  ;;  %v406_v15 = vld [vmem:[#allocation5 + $0xd0] sm:$0xff]  ;;  %v231_v18 = vld [vmem:[#allocation2 + $0x18] sm:$0xff]  ;;  %v404_v19 = vld [vmem:[#allocation5 + $0xc0] sm:$0xff] }
  0x3b   :  { %284 = vmatpush.msra.mxu0 %v224_v3  ;;  %421 = vmatpush.msra.mxu3 %v408_v12  ;;  %v323_v20 = vld [vmem:[#allocation5 + $0x30] sm:$0xff]  ;;  %v324_v21 = vld [vmem:[#allocation5 + $0x38] sm:$0xff]  ;;  %v321_v23 = vld [vmem:[#allocation5 + $0x20] sm:$0xff] }
  0x3c   :  { %4151 = vmatmul.msk.f32.vlgmr.msra.gmra.mxu0 %vm238_vm0, %v228_v4  ;;  %350 = vmatpush.msra.mxu1 %v327_v13  ;;  %v402_v22 = vld [vmem:[#allocation5 + $0xb0] sm:$0xff]  ;;  %v322_v24 = vld [vmem:[#allocation5 + $0x28] sm:$0xff]  ;;  %v400_v25 = vld [vmem:[#allocation5 + $0xa0] sm:$0xff] }
  0x3d   :  { %373 = vmatpush.msra.mxu2 %v328_v14  ;;  %422 = vmatpush.msra.mxu3 %v406_v15  ;;  %v319_v26 = vld [vmem:[#allocation5 + $0x10] sm:$0xff]  ;;  %v320_v27 = vld [vmem:[#allocation5 + $0x18] sm:$0xff]  ;;  %v234_v31 = vld [vmem:[#allocation2 + $0x30] sm:$0xff] }
  0x3e   :  { %351 = vmatpush.msra.mxu1 %v325_v16  ;;  %v398_v28 = vld [vmem:[#allocation5 + $0x90] sm:$0xff]  ;;  %v233_v30 = vld [vmem:[#allocation2 + $0x28] sm:$0xff]  ;;  %v235_v32 = vld [vmem:[#allocation2 + $0x38] sm:$0xff] }
  0x3f   :  { %374 = vmatpush.msra.mxu2 %v326_v17  ;;  %423 = vmatpush.msra.mxu3 %v404_v19  ;;  %v232_v29 = vld [vmem:[#allocation2 + $0x20] sm:$0xff]  ;;  %v317_v33 = vld [vmem:[#allocation5] sm:$0xff]  ;;  %v318_v34 = vld [vmem:[#allocation5 + $0x8] sm:$0xff] }
  0x40   :  { %352 = vmatpush.msra.mxu1 %v323_v20  ;;  %v396_v35 = vld [vmem:[#allocation5 + $0x80] sm:$0xff]  ;;  %v411_v36 = vld [vmem:[#allocation5 + $0xf8] sm:$0xff]  ;;  %v477_v37 = vld [vmem:[#allocation5 + $0x170] sm:$0xff] }
  0x41   :  { %375 = vmatpush.msra.mxu2 %v324_v21  ;;  %424 = vmatpush.msra.mxu3 %v402_v22  ;;  %v478_v38 = vld [vmem:[#allocation5 + $0x178] sm:$0xff]  ;;  %v409_v39 = vld [vmem:[#allocation5 + $0xe8] sm:$0xff]  ;;  %v475_v40 = vld [vmem:[#allocation5 + $0x160] sm:$0xff] }
  0x42   :  { %353 = vmatpush.msra.mxu1 %v321_v23  ;;  %v476_v41 = vld [vmem:[#allocation5 + $0x168] sm:$0xff]  ;;  %v407_v42 = vld [vmem:[#allocation5 + $0xd8] sm:$0xff]  ;;  %v473_v43 = vld [vmem:[#allocation5 + $0x150] sm:$0xff] }
  0x43   :  { %376 = vmatpush.msra.mxu2 %v322_v24  ;;  %425 = vmatpush.msra.mxu3 %v400_v25  ;;  %v474_v44 = vld [vmem:[#allocation5 + $0x158] sm:$0xff]  ;;  %v405_v45 = vld [vmem:[#allocation5 + $0xc8] sm:$0xff]  ;;  %v471_v46 = vld [vmem:[#allocation5 + $0x140] sm:$0xff] }
  0x44   :  { %4152 = vmatmul.msk.f32.gmra.mxu0 %vm238_vm0, %v229_v5  ;;  %354 = vmatpush.msra.mxu1 %v319_v26  ;;  %v472_v47 = vld [vmem:[#allocation5 + $0x148] sm:$0xff]  ;;  %v403_v48 = vld [vmem:[#allocation5 + $0xb8] sm:$0xff]  ;;  %v469_v49 = vld [vmem:[#allocation5 + $0x130] sm:$0xff] }
  0x45   :  { %377 = vmatpush.msra.mxu2 %v320_v27  ;;  %426 = vmatpush.msra.mxu3 %v398_v28  ;;  %v470_v50 = vld [vmem:[#allocation5 + $0x138] sm:$0xff]  ;;  %v401_v51 = vld [vmem:[#allocation5 + $0xa8] sm:$0xff]  ;;  %v467_v52 = vld [vmem:[#allocation5 + $0x120] sm:$0xff] }
  0x46   :  { %355 = vmatpush.msra.mxu1 %v317_v33  ;;  %v468_v53 = vld [vmem:[#allocation5 + $0x128] sm:$0xff]  ;;  %v399_v54 = vld [vmem:[#allocation5 + $0x98] sm:$0xff]  ;;  %v465_v55 = vld [vmem:[#allocation5 + $0x110] sm:$0xff] }
  0x47   :  { %378 = vmatpush.msra.mxu2 %v318_v34  ;;  %427 = vmatpush.msra.mxu3 %v396_v35  ;;  %v466_v56 = vld [vmem:[#allocation5 + $0x118] sm:$0xff]  ;;  %v397_v57 = vld [vmem:[#allocation5 + $0x88] sm:$0xff]  ;;  %v463_v58 = vld [vmem:[#allocation5 + $0x100] sm:$0xff] }
  0x48   :  { %443 = vmatpush.msrb.mxu1 %v411_v36  ;;  %v236_v59 = vld [vmem:[#allocation2 + $0x40] sm:$0xff]  ;;  %v464_v60 = vld [vmem:[#allocation5 + $0x108] sm:$0xff]  ;;  %v819_v61 = vld [vmem:[#allocation5 + $0x3f8] sm:$0xff] }
  0x49   :  { %487 = vmatpush.msrb.mxu2 %v477_v37  ;;  %510 = vmatpush.msrb.mxu3 %v478_v38  ;;  %v817_v62 = vld [vmem:[#allocation5 + $0x3e8] sm:$0xff]  ;;  %v815_v63 = vld [vmem:[#allocation5 + $0x3d8] sm:$0xff]  ;;  %v544_v5 = vld [vmem:[#allocation5 + $0x1f0] sm:$0xff] }
  0x4a   :  { %444 = vmatpush.msrb.mxu1 %v409_v39  ;;  %851 = vmatpush.msrb.mxu0 %v819_v61  ;;  %v813_v0 = vld [vmem:[#allocation5 + $0x3c8] sm:$0xff]  ;;  %v237_v1 = vld [vmem:[#allocation2 + $0x48] sm:$0xff]  ;;  %v611_v8 = vld [vmem:[#allocation5 + $0x270] sm:$0xff] }
  0x4b   :  { %488 = vmatpush.msrb.mxu2 %v475_v40  ;;  %511 = vmatpush.msrb.mxu3 %v476_v41  ;;  %v811_v2 = vld [vmem:[#allocation5 + $0x3b8] sm:$0xff]  ;;  %v809_v3 = vld [vmem:[#allocation5 + $0x3a8] sm:$0xff]  ;;  %v542_v9 = vld [vmem:[#allocation5 + $0x1e0] sm:$0xff] }
  0x4c   :  { %4153 = vmatmul.msk.f32.gmra.mxu0 %vm238_vm0, %v230_v6  ;;  %445 = vmatpush.msrb.mxu1 %v407_v42  ;;  %v807_v4 = vld [vmem:[#allocation5 + $0x398] sm:$0xff]  ;;  %v805_v10 = vld [vmem:[#allocation5 + $0x388] sm:$0xff]  ;;  %v609_v12 = vld [vmem:[#allocation5 + $0x260] sm:$0xff] }
  0x4d   :  { %489 = vmatpush.msrb.mxu2 %v473_v43  ;;  %512 = vmatpush.msrb.mxu3 %v474_v44  ;;  %v545_v7 = vld [vmem:[#allocation5 + $0x1f8] sm:$0xff]  ;;  %v543_v11 = vld [vmem:[#allocation5 + $0x1e8] sm:$0xff]  ;;  %v540_v13 = vld [vmem:[#allocation5 + $0x1d0] sm:$0xff] }
  0x4e   :  { %446 = vmatpush.msrb.mxu1 %v405_v45  ;;  %852 = vmatpush.msrb.mxu0 %v817_v62  ;;  %v953_v14 = vld [vmem:[#allocation5 + $0x4f8] sm:$0xff]  ;;  %v607_v16 = vld [vmem:[#allocation5 + $0x250] sm:$0xff]  ;;  %v538_v17 = vld [vmem:[#allocation5 + $0x1c0] sm:$0xff] }
  0x4f   :  { %490 = vmatpush.msrb.mxu2 %v471_v46  ;;  %513 = vmatpush.msrb.mxu3 %v472_v47  ;;  %v541_v15 = vld [vmem:[#allocation5 + $0x1d8] sm:$0xff]  ;;  %v539_v19 = vld [vmem:[#allocation5 + $0x1c8] sm:$0xff]  ;;  %v605_v21 = vld [vmem:[#allocation5 + $0x240] sm:$0xff] }
  0x50   :  { %447 = vmatpush.msrb.mxu1 %v403_v48  ;;  %853 = vmatpush.msrb.mxu0 %v815_v63  ;;  %v536_v22 = vld [vmem:[#allocation5 + $0x1b0] sm:$0xff]  ;;  %v537_v23 = vld [vmem:[#allocation5 + $0x1b8] sm:$0xff]  ;;  %v534_v26 = vld [vmem:[#allocation5 + $0x1a0] sm:$0xff] }
  0x51   :  { %491 = vmatpush.msrb.mxu2 %v469_v49  ;;  %514 = vmatpush.msrb.mxu3 %v470_v50  ;;  %v949_v24 = vld [vmem:[#allocation5 + $0x4d8] sm:$0xff]  ;;  %v603_v25 = vld [vmem:[#allocation5 + $0x230] sm:$0xff]  ;;  %v535_v27 = vld [vmem:[#allocation5 + $0x1a8] sm:$0xff] }
  0x52   :  { %448 = vmatpush.msrb.mxu1 %v401_v51  ;;  %854 = vmatpush.msrb.mxu0 %v813_v0  ;;  %v947_v28 = vld [vmem:[#allocation5 + $0x4c8] sm:$0xff]  ;;  %v530_v33 = vld [vmem:[#allocation5 + $0x180] sm:$0xff]  ;;  %v599_v34 = vld [vmem:[#allocation5 + $0x210] sm:$0xff] }
  0x53   :  { %492 = vmatpush.msrb.mxu2 %v467_v52  ;;  %515 = vmatpush.msrb.mxu3 %v468_v53  ;;  %v531_v36 = vld [vmem:[#allocation5 + $0x188] sm:$0xff]  ;;  %v612_v37 = vld [vmem:[#allocation5 + $0x278] sm:$0xff]  ;;  %v597_v38 = vld [vmem:[#allocation5 + $0x200] sm:$0xff] }
  0x54   :  { %4154 = vmatmul.msk.f32.gmra.mxu0 %vm238_vm0, %v231_v18  ;;  %449 = vmatpush.msrb.mxu1 %v399_v54  ;;  %v951_v18 = vld [vmem:[#allocation5 + $0x4e8] sm:$0xff]  ;;  %v678_v39 = vld [vmem:[#allocation5 + $0x2f0] sm:$0xff]  ;;  %v679_v40 = vld [vmem:[#allocation5 + $0x2f8] sm:$0xff] }
  0x55   :  { %493 = vmatpush.msrb.mxu2 %v465_v55  ;;  %516 = vmatpush.msrb.mxu3 %v466_v56  ;;  %v610_v41 = vld [vmem:[#allocation5 + $0x268] sm:$0xff]  ;;  %v676_v42 = vld [vmem:[#allocation5 + $0x2e0] sm:$0xff]  ;;  %v608_v45 = vld [vmem:[#allocation5 + $0x258] sm:$0xff] }
  0x56   :  { %450 = vmatpush.msrb.mxu1 %v397_v57  ;;  %855 = vmatpush.msrb.mxu0 %v811_v2  ;;  %v943_v43 = vld [vmem:[#allocation5 + $0x4a8] sm:$0xff]  ;;  %v674_v46 = vld [vmem:[#allocation5 + $0x2d0] sm:$0xff]  ;;  %v675_v47 = vld [vmem:[#allocation5 + $0x2d8] sm:$0xff] }
  0x57   :  { %494 = vmatpush.msrb.mxu2 %v463_v58  ;;  %517 = vmatpush.msrb.mxu3 %v464_v60  ;;  %v677_v44 = vld [vmem:[#allocation5 + $0x2e8] sm:$0xff]  ;;  %v672_v50 = vld [vmem:[#allocation5 + $0x2c0] sm:$0xff]  ;;  %v604_v52 = vld [vmem:[#allocation5 + $0x238] sm:$0xff] }
  0x58   :  { %856 = vmatpush.msrb.mxu0 %v809_v3  ;;  %v606_v48 = vld [vmem:[#allocation5 + $0x248] sm:$0xff]  ;;  %v670_v53 = vld [vmem:[#allocation5 + $0x2b0] sm:$0xff]  ;;  %v941_v54 = vld [vmem:[#allocation5 + $0x498] sm:$0xff] }
  0x59   :  { %v673_v51 = vld [vmem:[#allocation5 + $0x2c8] sm:$0xff]  ;;  %v671_v55 = vld [vmem:[#allocation5 + $0x2b8] sm:$0xff]  ;;  %v668_v57 = vld [vmem:[#allocation5 + $0x2a0] sm:$0xff] }
  0x5a   :  { %857 = vmatpush.msrb.mxu0 %v807_v4  ;;  %v602_v56 = vld [vmem:[#allocation5 + $0x228] sm:$0xff]  ;;  %v666_v61 = vld [vmem:[#allocation5 + $0x290] sm:$0xff]  ;;  %v667_v63 = vld [vmem:[#allocation5 + $0x298] sm:$0xff] }
  0x5b   :  { %v939_v58 = vld [vmem:[#allocation5 + $0x488] sm:$0xff]  ;;  %v664_v0 = vld [vmem:[#allocation5 + $0x280] sm:$0xff]  ;;  %v752_v2 = vld [vmem:[#allocation5 + $0x378] sm:$0xff] }
  0x5c   :  { %4155 = vmatmul.msk.f32.gmra.mxu0 %vm238_vm0, %v232_v29  ;;  %v601_v29 = vld [vmem:[#allocation5 + $0x220] sm:$0xff]  ;;  %v669_v60 = vld [vmem:[#allocation5 + $0x2a8] sm:$0xff]  ;;  %v1093_v4 = vld [vmem:[#allocation5 + $0x5f8] sm:$0xff] }
  0x5d   :  { %858 = vmatpush.msrb.mxu0 %v805_v10  ;;  %v598_v62 = vld [vmem:[#allocation5 + $0x208] sm:$0xff]  ;;  %v747_v10 = vld [vmem:[#allocation5 + $0x350] sm:$0xff] }
  0x5e   :  { %v665_v3 = vld [vmem:[#allocation5 + $0x288] sm:$0xff] }
  0x5f   :  { %985 = vmatpush.msra.mxu0 %v953_v14  ;;  %v746_v14 = vld [vmem:[#allocation5 + $0x348] sm:$0xff] }
  0x61   :  { %986 = vmatpush.msra.mxu0 %v951_v18  ;;  %v744_v18 = vld [vmem:[#allocation5 + $0x338] sm:$0xff] }
  0x63   :  { %987 = vmatpush.msra.mxu0 %v949_v24  ;;  %v739_v24 = vld [vmem:[#allocation5 + $0x310] sm:$0xff] }
  0x64   :  { %4156 = vmatmul.msk.f32.gmra.mxu0 %vm238_vm0, %v233_v30  ;;  %v532_v30 = vld [vmem:[#allocation5 + $0x190] sm:$0xff] }
  0x65   :  { %988 = vmatpush.msra.mxu0 %v947_v28  ;;  %v737_v28 = vld [vmem:[#allocation5 + $0x300] sm:$0xff] }
  0x6c   :  { %4157 = vmatmul.msk.f32.gmra.mxu0 %vm238_vm0, %v234_v31  ;;  %v533_v31 = vld [vmem:[#allocation5 + $0x198] sm:$0xff] }
  0x74   :  { %4158 = vmatmul.msk.f32.gmra.mxu0 %vm238_vm0, %v235_v32  ;;  %v945_v32 = vld [vmem:[#allocation5 + $0x4b8] sm:$0xff] }
  0x75   :  { %989 = vmatpush.msra.mxu0 %v945_v32  ;;  %v886_v32 = vld [vmem:[#allocation5 + $0x478] sm:$0xff] }
  0x77   :  { %990 = vmatpush.msra.mxu0 %v943_v43  ;;  %v880_v43 = vld [vmem:[#allocation5 + $0x448] sm:$0xff] }
  0x79   :  { %991 = vmatpush.msra.mxu0 %v941_v54 }
  0x7b   :  { %992 = vmatpush.msra.mxu0 %v939_v58  ;;  %v872_v58 = vld [vmem:[#allocation5 + $0x408] sm:$0xff] }
  0x7c   :  { %4159 = vmatmul.msk.f32.gmra.mxu0 %vm238_vm0, %v236_v59  ;;  %v600_v59 = vld [vmem:[#allocation5 + $0x218] sm:$0xff] }
  0x84   :  { %4160 = vmatmul.msk.f32.gmra.mxu0 %vm238_vm0, %v237_v1  ;;  %v751_v1 = vld [vmem:[#allocation5 + $0x370] sm:$0xff] }
  0xb9   :  { %v4811_v6 = vpop.f32.mrf.mxu0 }
  0xba   :  { %4161 = vmatmul.msk.f32.vlgmr.msra.gmra.mxu1 %vm333_vm1, %v4811_v6  ;;  %4163 = vmatmul.msk.f32.vlgmr.msra.gmra.mxu2 %vm333_vm1, %v4811_v6 }
  0xbb   :  { %4165 = vmatmul.msk.f32.vlgmr.msra.gmra.mxu3 %vm333_vm1, %v4811_v6  ;;  %554 = vmatpush.msra.mxu1 %v544_v5  ;;  %v818_v5 = vld [vmem:[#allocation5 + $0x3f0] sm:$0xff] }
  0xbc   :  { %577 = vmatpush.msra.mxu2 %v545_v7  ;;  %621 = vmatpush.msra.mxu3 %v611_v8  ;;  %v749_v7 = vld [vmem:[#allocation5 + $0x360] sm:$0xff]  ;;  %v750_v8 = vld [vmem:[#allocation5 + $0x368] sm:$0xff] }
  0xbd   :  { %555 = vmatpush.msra.mxu1 %v542_v9  ;;  %v816_v9 = vld [vmem:[#allocation5 + $0x3e0] sm:$0xff] }
  0xbe   :  { %578 = vmatpush.msra.mxu2 %v543_v11  ;;  %622 = vmatpush.msra.mxu3 %v609_v12  ;;  %v748_v11 = vld [vmem:[#allocation5 + $0x358] sm:$0xff]  ;;  %v814_v12 = vld [vmem:[#allocation5 + $0x3d0] sm:$0xff] }
  0xbf   :  { %556 = vmatpush.msra.mxu1 %v540_v13  ;;  %v745_v13 = vld [vmem:[#allocation5 + $0x340] sm:$0xff] }
  0xc0   :  { %579 = vmatpush.msra.mxu2 %v541_v15  ;;  %623 = vmatpush.msra.mxu3 %v607_v16  ;;  %v1091_v15 = vld [vmem:[#allocation5 + $0x5e8] sm:$0xff]  ;;  %v812_v16 = vld [vmem:[#allocation5 + $0x3c0] sm:$0xff] }
  0xc1   :  { %v4819_v20 = vpop.f32.mrf.mxu0  ;;  %557 = vmatpush.msra.mxu1 %v538_v17  ;;  %v743_v17 = vld [vmem:[#allocation5 + $0x330] sm:$0xff] }
  0xc2   :  { %4162 = vmatmul.msk.f32.gmra.mxu1 %vm333_vm1, %v4819_v20  ;;  %4164 = vmatmul.msk.f32.gmra.mxu2 %vm333_vm1, %v4819_v20 }
  0xc3   :  { %4166 = vmatmul.msk.f32.gmra.mxu3 %vm333_vm1, %v4819_v20  ;;  %580 = vmatpush.msra.mxu2 %v539_v19  ;;  %v1089_v19 = vld [vmem:[#allocation5 + $0x5d8] sm:$0xff] }
  0xc4   :  { %624 = vmatpush.msra.mxu3 %v605_v21  ;;  %558 = vmatpush.msra.mxu1 %v536_v22  ;;  %v741_v21 = vld [vmem:[#allocation5 + $0x320] sm:$0xff]  ;;  %v810_v22 = vld [vmem:[#allocation5 + $0x3b0] sm:$0xff] }
  0xc5   :  { %581 = vmatpush.msra.mxu2 %v537_v23  ;;  %v742_v23 = vld [vmem:[#allocation5 + $0x328] sm:$0xff] }
  0xc6   :  { %625 = vmatpush.msra.mxu3 %v603_v25  ;;  %559 = vmatpush.msra.mxu1 %v534_v26  ;;  %v1087_v25 = vld [vmem:[#allocation5 + $0x5c8] sm:$0xff]  ;;  %v808_v26 = vld [vmem:[#allocation5 + $0x3a0] sm:$0xff] }
  0xc7   :  { %582 = vmatpush.msra.mxu2 %v535_v27  ;;  %v740_v27 = vld [vmem:[#allocation5 + $0x318] sm:$0xff] }
  0xc8   :  { %626 = vmatpush.msra.mxu3 %v601_v29  ;;  %560 = vmatpush.msra.mxu1 %v532_v30  ;;  %v1085_v29 = vld [vmem:[#allocation5 + $0x5b8] sm:$0xff]  ;;  %v806_v30 = vld [vmem:[#allocation5 + $0x390] sm:$0xff] }
  0xc9   :  { %583 = vmatpush.msra.mxu2 %v533_v31  ;;  %v4827_v35 = vpop.f32.mrf.mxu0  ;;  %v738_v31 = vld [vmem:[#allocation5 + $0x308] sm:$0xff] }
  0xca   :  { %4167 = vmatmul.msk.f32.vlgmr.msrb.gmra.mxu1 %vm333_vm1, %v4811_v6  ;;  %4169 = vmatmul.msk.f32.vlgmr.msrb.gmra.mxu2 %vm333_vm1, %v4811_v6 }
  0xcb   :  { %4171 = vmatmul.msk.f32.vlgmr.msrb.gmra.mxu3 %vm333_vm1, %v4811_v6  ;;  %561 = vmatpush.msra.mxu1 %v530_v33  ;;  %v883_v33 = vld [vmem:[#allocation5 + $0x460] sm:$0xff] }
  0xcc   :  { %627 = vmatpush.msra.mxu3 %v599_v34  ;;  %584 = vmatpush.msra.mxu2 %v531_v36  ;;  %v804_v34 = vld [vmem:[#allocation5 + $0x380] sm:$0xff]  ;;  %v884_v36 = vld [vmem:[#allocation5 + $0x468] sm:$0xff] }
  0xcd   :  { %4191 = vmatmul.msk.f32.vlgmr.msrb.gmra.mxu0 %vm333_vm1, %v4827_v35  ;;  %644 = vmatpush.msrb.mxu1 %v612_v37  ;;  %v952_v37 = vld [vmem:[#allocation5 + $0x4f0] sm:$0xff] }
  0xce   :  { %628 = vmatpush.msra.mxu3 %v597_v38  ;;  %694 = vmatpush.msrb.mxu2 %v678_v39  ;;  %v881_v38 = vld [vmem:[#allocation5 + $0x450] sm:$0xff]  ;;  %v882_v39 = vld [vmem:[#allocation5 + $0x458] sm:$0xff] }
  0xcf   :  { %645 = vmatpush.msrb.mxu1 %v610_v41  ;;  %1125 = vmatpush.msrb.mxu0 %v1093_v4  ;;  %v950_v41 = vld [vmem:[#allocation5 + $0x4e0] sm:$0xff]  ;;  %v1223_v4 = vld [vmem:[#allocation5 + $0x6d8] sm:$0xff] }
  0xd0   :  { %717 = vmatpush.msrb.mxu3 %v679_v40  ;;  %695 = vmatpush.msrb.mxu2 %v676_v42  ;;  %v1083_v40 = vld [vmem:[#allocation5 + $0x5a8] sm:$0xff]  ;;  %v879_v42 = vld [vmem:[#allocation5 + $0x440] sm:$0xff] }
  0xd1   :  { %646 = vmatpush.msrb.mxu1 %v608_v45  ;;  %v4841_v49 = vpop.f32.mrf.mxu0  ;;  %1126 = vmatpush.msrb.mxu0 %v1091_v15  ;;  %v877_v45 = vld [vmem:[#allocation5 + $0x430] sm:$0xff]  ;;  %v1086_v15 = vld [vmem:[#allocation5 + $0x5c0] sm:$0xff] }
  0xd2   :  { %718 = vmatpush.msrb.mxu3 %v677_v44  ;;  %4168 = vmatmul.msk.f32.gmra.mxu1 %vm333_vm1, %v4819_v20  ;;  %v1081_v44 = vld [vmem:[#allocation5 + $0x598] sm:$0xff] }
  0xd3   :  { %4170 = vmatmul.msk.f32.gmra.mxu2 %vm333_vm1, %v4819_v20  ;;  %4172 = vmatmul.msk.f32.gmra.mxu3 %vm333_vm1, %v4819_v20 }
  0xd4   :  { %696 = vmatpush.msrb.mxu2 %v674_v46  ;;  %719 = vmatpush.msrb.mxu3 %v675_v47  ;;  %v878_v46 = vld [vmem:[#allocation5 + $0x438] sm:$0xff]  ;;  %v946_v47 = vld [vmem:[#allocation5 + $0x4c0] sm:$0xff] }
  0xd5   :  { %647 = vmatpush.msrb.mxu1 %v606_v48  ;;  %4192 = vmatmul.msk.f32.gmra.mxu0 %vm333_vm1, %v4841_v49  ;;  %v875_v48 = vld [vmem:[#allocation5 + $0x420] sm:$0xff] }
  0xd6   :  { %697 = vmatpush.msrb.mxu2 %v672_v50  ;;  %720 = vmatpush.msrb.mxu3 %v673_v51  ;;  %v876_v50 = vld [vmem:[#allocation5 + $0x428] sm:$0xff] }
  0xd7   :  { %648 = vmatpush.msrb.mxu1 %v604_v52  ;;  %1127 = vmatpush.msrb.mxu0 %v1089_v19  ;;  %v1079_v51 = vld [vmem:[#allocation5 + $0x588] sm:$0xff]  ;;  %v944_v52 = vld [vmem:[#allocation5 + $0x4b0] sm:$0xff] }
  0xd8   :  { %698 = vmatpush.msrb.mxu2 %v670_v53  ;;  %721 = vmatpush.msrb.mxu3 %v671_v55  ;;  %v873_v53 = vld [vmem:[#allocation5 + $0x410] sm:$0xff]  ;;  %v874_v55 = vld [vmem:[#allocation5 + $0x418] sm:$0xff] }
  0xd9   :  { %649 = vmatpush.msrb.mxu1 %v602_v56  ;;  %1128 = vmatpush.msrb.mxu0 %v1087_v25  ;;  %v4881_v54 = vpop.f32.mrf.mxu0  ;;  %v942_v56 = vld [vmem:[#allocation5 + $0x4a0] sm:$0xff]  ;;  %v1084_v19 = vld [vmem:[#allocation5 + $0x5b0] sm:$0xff]  ;;  %v1008_v25 = vld [vmem:[#allocation5 + $0x518] sm:$0xff] }
  0xda   :  { %699 = vmatpush.msrb.mxu2 %v668_v57  ;;  %4173 = vmatmul.msk.f32.vlgmr.msra.gmra.mxu1 %vm333_vm1, %v4811_v6  ;;  %v871_v57 = vld [vmem:[#allocation5 + $0x400] sm:$0xff] }
  0xdb   :  { %4175 = vmatmul.msk.f32.vlgmr.msra.gmra.mxu2 %vm333_vm1, %v4811_v6  ;;  %4177 = vmatmul.msk.f32.vlgmr.msra.gmra.mxu3 %vm333_vm1, %v4811_v6 }
  0xdc   :  { %650 = vmatpush.msrb.mxu1 %v600_v59  ;;  %722 = vmatpush.msrb.mxu3 %v669_v60  ;;  %v1227_v59 = vld [vmem:[#allocation5 + $0x6f8] sm:$0xff]  ;;  %v1019_v60 = vld [vmem:[#allocation5 + $0x570] sm:$0xff] }
  0xdd   :  { %700 = vmatpush.msrb.mxu2 %v666_v61  ;;  %4199 = vmatmul.msk.f32.vlgmr.msra.gmra.mxu0 %vm333_vm1, %v4827_v35  ;;  %v940_v61 = vld [vmem:[#allocation5 + $0x490] sm:$0xff] }
  0xde   :  { %651 = vmatpush.msrb.mxu1 %v598_v62  ;;  %723 = vmatpush.msrb.mxu3 %v667_v63  ;;  %v1020_v62 = vld [vmem:[#allocation5 + $0x578] sm:$0xff]  ;;  %v1225_v63 = vld [vmem:[#allocation5 + $0x6e8] sm:$0xff] }
  0xdf   :  { %701 = vmatpush.msrb.mxu2 %v664_v0  ;;  %1129 = vmatpush.msrb.mxu0 %v1085_v29  ;;  %v1017_v0 = vld [vmem:[#allocation5 + $0x560] sm:$0xff]  ;;  %v1006_v29 = vld [vmem:[#allocation5 + $0x508] sm:$0xff] }
  0xe0   :  { %761 = vmatpush.msra.mxu1 %v751_v1  ;;  %724 = vmatpush.msrb.mxu3 %v665_v3  ;;  %v938_v1 = vld [vmem:[#allocation5 + $0x480] sm:$0xff]  ;;  %v1092_v3 = vld [vmem:[#allocation5 + $0x5f0] sm:$0xff] }
  0xe1   :  { %784 = vmatpush.msra.mxu2 %v752_v2  ;;  %1130 = vmatpush.msrb.mxu0 %v1083_v40  ;;  %v1018_v2 = vld [vmem:[#allocation5 + $0x568] sm:$0xff]  ;;  %v1156_v40 = vld [vmem:[#allocation5 + $0x658] sm:$0xff] }
  0xe2   :  { %828 = vmatpush.msra.mxu3 %v818_v5  ;;  %762 = vmatpush.msra.mxu1 %v749_v7  ;;  %v1015_v5 = vld [vmem:[#allocation5 + $0x550] sm:$0xff]  ;;  %v1016_v7 = vld [vmem:[#allocation5 + $0x558] sm:$0xff] }
  0xe3   :  { %4174 = vmatmul.msk.f32.gmra.mxu1 %vm333_vm1, %v4819_v20  ;;  %4176 = vmatmul.msk.f32.gmra.mxu2 %vm333_vm1, %v4819_v20 }
  0xe4   :  { %4178 = vmatmul.msk.f32.gmra.mxu3 %vm333_vm1, %v4819_v20  ;;  %785 = vmatpush.msra.mxu2 %v750_v8  ;;  %v1090_v8 = vld [vmem:[#allocation5 + $0x5e0] sm:$0xff] }
  0xe5   :  { %829 = vmatpush.msra.mxu3 %v816_v9  ;;  %763 = vmatpush.msra.mxu1 %v747_v10  ;;  %v1221_v9 = vld [vmem:[#allocation5 + $0x6c8] sm:$0xff]  ;;  %v4891_v10 = vpop.f32.mrf.mxu0 }
  0xe6   :  { %786 = vmatpush.msra.mxu2 %v748_v11  ;;  %4200 = vmatmul.msk.f32.gmra.mxu0 %vm333_vm1, %v4841_v49  ;;  %v1088_v11 = vld [vmem:[#allocation5 + $0x5d0] sm:$0xff] }
  0xe7   :  { %830 = vmatpush.msra.mxu3 %v814_v12  ;;  %764 = vmatpush.msra.mxu1 %v745_v13  ;;  %v1013_v12 = vld [vmem:[#allocation5 + $0x540] sm:$0xff]  ;;  %v1014_v13 = vld [vmem:[#allocation5 + $0x548] sm:$0xff] }
  0xe8   :  { %787 = vmatpush.msra.mxu2 %v746_v14  ;;  %1131 = vmatpush.msrb.mxu0 %v1081_v44  ;;  %v1219_v14 = vld [vmem:[#allocation5 + $0x6b8] sm:$0xff]  ;;  %v1154_v44 = vld [vmem:[#allocation5 + $0x648] sm:$0xff] }
  0xe9   :  { %831 = vmatpush.msra.mxu3 %v812_v16  ;;  %765 = vmatpush.msra.mxu1 %v743_v17  ;;  %v1011_v16 = vld [vmem:[#allocation5 + $0x530] sm:$0xff]  ;;  %v1012_v17 = vld [vmem:[#allocation5 + $0x538] sm:$0xff] }
  0xea   :  { %788 = vmatpush.msra.mxu2 %v744_v18  ;;  %1132 = vmatpush.msrb.mxu0 %v1079_v51  ;;  %v1217_v18 = vld [vmem:[#allocation5 + $0x6a8] sm:$0xff]  ;;  %v1149_v51 = vld [vmem:[#allocation5 + $0x620] sm:$0xff] }
  0xeb   :  { %4179 = vmatmul.msk.f32.vlgmr.msrb.gmra.mxu1 %vm333_vm1, %v4811_v6  ;;  %4181 = vmatmul.msk.f32.vlgmr.msrb.gmra.mxu2 %vm333_vm1, %v4827_v35  ;;  %v885_v6 = vld [vmem:[#allocation5 + $0x470] sm:$0xff] }
  0xec   :  { %4183 = vmatmul.msk.f32.vlgmr.msrb.gmra.mxu3 %vm333_vm1, %v4827_v35  ;;  %766 = vmatpush.msra.mxu1 %v741_v21  ;;  %v1009_v21 = vld [vmem:[#allocation5 + $0x520] sm:$0xff] }
  0xed   :  { %832 = vmatpush.msra.mxu3 %v810_v22  ;;  %789 = vmatpush.msra.mxu2 %v742_v23  ;;  %v1010_v22 = vld [vmem:[#allocation5 + $0x528] sm:$0xff]  ;;  %v1215_v23 = vld [vmem:[#allocation5 + $0x698] sm:$0xff] }
  0xee   :  { %767 = vmatpush.msra.mxu1 %v739_v24  ;;  %4207 = vmatmul.msk.f32.vlgmr.msrb.gmra.mxu0 %vm333_vm1, %v4881_v54  ;;  %v1082_v24 = vld [vmem:[#allocation5 + $0x5a0] sm:$0xff] }
  0xef   :  { %833 = vmatpush.msra.mxu3 %v808_v26  ;;  %790 = vmatpush.msra.mxu2 %v740_v27  ;;  %v1213_v26 = vld [vmem:[#allocation5 + $0x688] sm:$0xff]  ;;  %v1005_v27 = vld [vmem:[#allocation5 + $0x500] sm:$0xff] }
  0xf0   :  { %768 = vmatpush.msra.mxu1 %v737_v28  ;;  %1259 = vmatpush.msra.mxu0 %v1227_v59  ;;  %v1080_v28 = vld [vmem:[#allocation5 + $0x590] sm:$0xff]  ;;  %v1347_v59 = vld [vmem:[#allocation5 + $0x788] sm:$0xff] }
  0xf1   :  { %834 = vmatpush.msra.mxu3 %v806_v30  ;;  %791 = vmatpush.msra.mxu2 %v738_v31  ;;  %v1361_v30 = vld [vmem:[#allocation5 + $0x7f8] sm:$0xff]  ;;  %v1078_v31 = vld [vmem:[#allocation5 + $0x580] sm:$0xff] }
  0xf2   :  { %895 = vmatpush.msrb.mxu1 %v885_v6  ;;  %1260 = vmatpush.msra.mxu0 %v1225_v63  ;;  %v1159_v6 = vld [vmem:[#allocation5 + $0x670] sm:$0xff]  ;;  %v1212_v63 = vld [vmem:[#allocation5 + $0x680] sm:$0xff] }
  0xf3   :  { %918 = vmatpush.msrb.mxu2 %v886_v32  ;;  %4180 = vmatmul.msk.f32.gmra.mxu1 %vm333_vm1, %v4819_v20  ;;  %v948_v20 = vld [vmem:[#allocation5 + $0x4d0] sm:$0xff]  ;;  %v1160_v32 = vld [vmem:[#allocation5 + $0x678] sm:$0xff] }
  0xf4   :  { %4182 = vmatmul.msk.f32.gmra.mxu2 %vm333_vm1, %v4841_v49  ;;  %4184 = vmatmul.msk.f32.gmra.mxu3 %vm333_vm1, %v4841_v49 }
  0xf5   :  { %896 = vmatpush.msrb.mxu1 %v883_v33  ;;  %835 = vmatpush.msra.mxu3 %v804_v34  ;;  %v1226_v33 = vld [vmem:[#allocation5 + $0x6f0] sm:$0xff]  ;;  %v1157_v34 = vld [vmem:[#allocation5 + $0x660] sm:$0xff] }
  0xf6   :  { %919 = vmatpush.msrb.mxu2 %v884_v36  ;;  %1261 = vmatpush.msra.mxu0 %v1223_v4  ;;  %v1158_v36 = vld [vmem:[#allocation5 + $0x668] sm:$0xff] }
  0xf7   :  { %962 = vmatpush.msrb.mxu3 %v952_v37  ;;  %897 = vmatpush.msrb.mxu1 %v881_v38  ;;  %v1224_v37 = vld [vmem:[#allocation5 + $0x6e0] sm:$0xff]  ;;  %v1357_v38 = vld [vmem:[#allocation5 + $0x7d8] sm:$0xff]  ;;  %v1499_v4 = vld [vmem:[#allocation5 + $0x8e8] sm:$0xff] }
  0xf8   :  { %920 = vmatpush.msrb.mxu2 %v882_v39  ;;  %1262 = vmatpush.msra.mxu0 %v1221_v9  ;;  %v1155_v39 = vld [vmem:[#allocation5 + $0x650] sm:$0xff]  ;;  %v1497_v9 = vld [vmem:[#allocation5 + $0x8d8] sm:$0xff] }
  0xf9   :  { %963 = vmatpush.msrb.mxu3 %v950_v41  ;;  %898 = vmatpush.msrb.mxu1 %v879_v42  ;;  %v1222_v41 = vld [vmem:[#allocation5 + $0x6d0] sm:$0xff]  ;;  %v1355_v42 = vld [vmem:[#allocation5 + $0x7c8] sm:$0xff] }
  0xfa   :  { %921 = vmatpush.msrb.mxu2 %v880_v43  ;;  %4208 = vmatmul.msk.f32.gmra.mxu0 %vm333_vm1, %v4891_v10  ;;  %v1153_v43 = vld [vmem:[#allocation5 + $0x640] sm:$0xff] }
  0xfb   :  { %964 = vmatpush.msrb.mxu3 %v948_v20  ;;  %899 = vmatpush.msrb.mxu1 %v877_v45  ;;  %v1220_v20 = vld [vmem:[#allocation5 + $0x6c0] sm:$0xff]  ;;  %v1353_v45 = vld [vmem:[#allocation5 + $0x7b8] sm:$0xff] }
  0xfc   :  { %4185 = vmatmul.msk.f32.vlgmr.msra.gmra.mxu1 %vm333_vm1, %v4827_v35  ;;  %4187 = vmatmul.msk.f32.vlgmr.msra.gmra.mxu2 %vm333_vm1, %v4827_v35 }
  0xfd   :  { %4189 = vmatmul.msk.f32.vlgmr.msra.gmra.mxu3 %vm333_vm1, %v4827_v35  ;;  %922 = vmatpush.msrb.mxu2 %v878_v46  ;;  %v1151_v46 = vld [vmem:[#allocation5 + $0x630] sm:$0xff] }
  0xfe   :  { %965 = vmatpush.msrb.mxu3 %v946_v47  ;;  %900 = vmatpush.msrb.mxu1 %v875_v48  ;;  %v1152_v47 = vld [vmem:[#allocation5 + $0x638] sm:$0xff]  ;;  %v1218_v48 = vld [vmem:[#allocation5 + $0x6b0] sm:$0xff] }
  0xff   :  { %923 = vmatpush.msrb.mxu2 %v876_v50  ;;  %1263 = vmatpush.msra.mxu0 %v1219_v14  ;;  %v1351_v50 = vld [vmem:[#allocation5 + $0x7a8] sm:$0xff] }
 0x100   :  { %966 = vmatpush.msrb.mxu3 %v944_v52  ;;  %901 = vmatpush.msrb.mxu1 %v873_v53  ;;  %v1150_v52 = vld [vmem:[#allocation5 + $0x628] sm:$0xff]  ;;  %v1216_v53 = vld [vmem:[#allocation5 + $0x6a0] sm:$0xff] }
 0x101   :  { %924 = vmatpush.msrb.mxu2 %v874_v55  ;;  %1264 = vmatpush.msra.mxu0 %v1217_v18  ;;  %v1349_v55 = vld [vmem:[#allocation5 + $0x798] sm:$0xff]  ;;  %v1495_v14 = vld [vmem:[#allocation5 + $0x8c8] sm:$0xff]  ;;  %v1354_v18 = vld [vmem:[#allocation5 + $0x7c0] sm:$0xff] }
 0x102   :  { %967 = vmatpush.msrb.mxu3 %v942_v56  ;;  %902 = vmatpush.msrb.mxu1 %v871_v57  ;;  %v1147_v56 = vld [vmem:[#allocation5 + $0x610] sm:$0xff]  ;;  %v1148_v57 = vld [vmem:[#allocation5 + $0x618] sm:$0xff] }
 0x103   :  { %925 = vmatpush.msrb.mxu2 %v872_v58  ;;  %1265 = vmatpush.msra.mxu0 %v1215_v23  ;;  %v1214_v58 = vld [vmem:[#allocation5 + $0x690] sm:$0xff] }
 0x104   :  { %4186 = vmatmul.msk.f32.gmra.mxu1 %vm333_vm1, %v4841_v49  ;;  %4188 = vmatmul.msk.f32.gmra.mxu2 %vm333_vm1, %v4841_v49  ;;  %v1352_v23 = vld [vmem:[#allocation5 + $0x7b0] sm:$0xff] }
 0x105   :  { %4190 = vmatmul.msk.f32.gmra.mxu3 %vm333_vm1, %v4841_v49  ;;  %1035 = vmatpush.msra.mxu1 %v1019_v60  ;;  %v4923_v60 = vpop.f32.mrf.mxu0 }
 0x106   :  { %968 = vmatpush.msrb.mxu3 %v940_v61  ;;  %1058 = vmatpush.msra.mxu2 %v1020_v62  ;;  %v1145_v61 = vld [vmem:[#allocation5 + $0x600] sm:$0xff]  ;;  %v1146_v62 = vld [vmem:[#allocation5 + $0x608] sm:$0xff] }
 0x107   :  { %1036 = vmatpush.msra.mxu1 %v1017_v0  ;;  %1266 = vmatpush.msra.mxu0 %v1213_v26  ;;  %v1501_v0 = vld [vmem:[#allocation5 + $0x8f8] sm:$0xff] }
 0x108   :  { %969 = vmatpush.msrb.mxu3 %v938_v1  ;;  %1059 = vmatpush.msra.mxu2 %v1018_v2  ;;  %v1293_v1 = vld [vmem:[#allocation5 + $0x770] sm:$0xff]  ;;  %v1294_v2 = vld [vmem:[#allocation5 + $0x778] sm:$0xff] }
 0x109   :  { %1037 = vmatpush.msra.mxu1 %v1015_v5  ;;  %4215 = vmatmul.msk.f32.vlgmr.msra.gmra.mxu0 %vm333_vm1, %v4881_v54  ;;  %v1291_v5 = vld [vmem:[#allocation5 + $0x760] sm:$0xff] }
 0x10a   :  { %1102 = vmatpush.msra.mxu3 %v1092_v3  ;;  %1060 = vmatpush.msra.mxu2 %v1016_v7  ;;  %v1360_v3 = vld [vmem:[#allocation5 + $0x7f0] sm:$0xff]  ;;  %v1292_v7 = vld [vmem:[#allocation5 + $0x768] sm:$0xff] }
 0x10b   :  { %1038 = vmatpush.msra.mxu1 %v1013_v12  ;;  %1399 = vmatpush.msrb.mxu0 %v1361_v30  ;;  %v1290_v12 = vld [vmem:[#allocation5 + $0x758] sm:$0xff] }
 0x10c   :  { %1103 = vmatpush.msra.mxu3 %v1090_v8  ;;  %4193 = vmatmul.msk.f32.vlgmr.msrb.gmra.mxu1 %vm333_vm1, %v4827_v35  ;;  %v1358_v8 = vld [vmem:[#allocation5 + $0x7e0] sm:$0xff]  ;;  %v1282_v30 = vld [vmem:[#allocation5 + $0x718] sm:$0xff] }
 0x10d   :  { %4195 = vmatmul.msk.f32.vlgmr.msrb.gmra.mxu2 %vm333_vm1, %v4827_v35  ;;  %4197 = vmatmul.msk.f32.vlgmr.msrb.gmra.mxu3 %vm333_vm1, %v4827_v35  ;;  %v1007_v35 = vld [vmem:[#allocation5 + $0x510] sm:$0xff] }
 0x10e   :  { %1104 = vmatpush.msra.mxu3 %v1088_v11  ;;  %1061 = vmatpush.msra.mxu2 %v1014_v13  ;;  %v1289_v11 = vld [vmem:[#allocation5 + $0x750] sm:$0xff] }
 0x10f   :  { %1039 = vmatpush.msra.mxu1 %v1011_v16  ;;  %v1356_v13 = vld [vmem:[#allocation5 + $0x7d0] sm:$0xff]  ;;  %v1287_v16 = vld [vmem:[#allocation5 + $0x740] sm:$0xff] }
 0x110   :  { %1105 = vmatpush.msra.mxu3 %v1086_v15  ;;  %1062 = vmatpush.msra.mxu2 %v1012_v17  ;;  %v4933_v15 = vpop.f32.mrf.mxu0  ;;  %v1288_v17 = vld [vmem:[#allocation5 + $0x748] sm:$0xff] }
 0x111   :  { %1040 = vmatpush.msra.mxu1 %v1009_v21  ;;  %4216 = vmatmul.msk.f32.gmra.mxu0 %vm333_vm1, %v4891_v10  ;;  %v1285_v21 = vld [vmem:[#allocation5 + $0x730] sm:$0xff] }
 0x112   :  { %1106 = vmatpush.msra.mxu3 %v1084_v19  ;;  %1063 = vmatpush.msra.mxu2 %v1010_v22  ;;  %v1493_v19 = vld [vmem:[#allocation5 + $0x8b8] sm:$0xff] }
 0x113   :  { %1041 = vmatpush.msra.mxu1 %v1007_v35  ;;  %v1286_v22 = vld [vmem:[#allocation5 + $0x738] sm:$0xff]  ;;  %v1491_v35 = vld [vmem:[#allocation5 + $0x8a8] sm:$0xff] }
 0x114   :  { %4194 = vmatmul.msk.f32.gmra.mxu1 %vm333_vm1, %v4841_v49  ;;  %1107 = vmatpush.msra.mxu3 %v1082_v24  ;;  %v1283_v24 = vld [vmem:[#allocation5 + $0x720] sm:$0xff] }
 0x115   :  { %4196 = vmatmul.msk.f32.gmra.mxu2 %vm333_vm1, %v4841_v49  ;;  %4198 = vmatmul.msk.f32.gmra.mxu3 %vm333_vm1, %v4841_v49  ;;  %v1359_v49 = vld [vmem:[#allocation5 + $0x7e8] sm:$0xff] }
 0x116   :  { %1064 = vmatpush.msra.mxu2 %v1008_v25  ;;  %1042 = vmatpush.msra.mxu1 %v1005_v27  ;;  %v1284_v25 = vld [vmem:[#allocation5 + $0x728] sm:$0xff]  ;;  %v1350_v27 = vld [vmem:[#allocation5 + $0x7a0] sm:$0xff] }
 0x117   :  { %1108 = vmatpush.msra.mxu3 %v1080_v28  ;;  %1400 = vmatpush.msrb.mxu0 %v1359_v49  ;;  %v1489_v28 = vld [vmem:[#allocation5 + $0x898] sm:$0xff]  ;;  %v1346_v49 = vld [vmem:[#allocation5 + $0x780] sm:$0xff] }
 0x118   :  { %1065 = vmatpush.msra.mxu2 %v1006_v29  ;;  %1169 = vmatpush.msrb.mxu1 %v1159_v6  ;;  %v1281_v29 = vld [vmem:[#allocation5 + $0x710] sm:$0xff]  ;;  %v1487_v6 = vld [vmem:[#allocation5 + $0x888] sm:$0xff] }
 0x119   :  { %1109 = vmatpush.msra.mxu3 %v1078_v31  ;;  %1401 = vmatpush.msrb.mxu0 %v1357_v38  ;;  %v1348_v31 = vld [vmem:[#allocation5 + $0x790] sm:$0xff] }
 0x11a   :  { %1192 = vmatpush.msrb.mxu2 %v1160_v32  ;;  %1170 = vmatpush.msrb.mxu1 %v1157_v34  ;;  %v1279_v32 = vld [vmem:[#allocation5 + $0x700] sm:$0xff]  ;;  %v1635_v34 = vld [vmem:[#allocation5 + $0x9f8] sm:$0xff]  ;;  %v1433_v38 = vld [vmem:[#allocation5 + $0x870] sm:$0xff] }
 0x11b   :  { %1236 = vmatpush.msrb.mxu3 %v1226_v33  ;;  %1402 = vmatpush.msrb.mxu0 %v1355_v42  ;;  %v1280_v33 = vld [vmem:[#allocation5 + $0x708] sm:$0xff] }
 0x11c   :  { %4201 = vmatmul.msk.f32.vlgmr.msra.gmra.mxu1 %vm333_vm1, %v4881_v54  ;;  %1193 = vmatpush.msrb.mxu2 %v1158_v36  ;;  %v1633_v42 = vld [vmem:[#allocation5 + $0x9e8] sm:$0xff] }
 0x11d   :  { %4203 = vmatmul.msk.f32.vlgmr.msra.gmra.mxu2 %vm333_vm1, %v4881_v54  ;;  %4205 = vmatmul.msk.f32.vlgmr.msra.gmra.mxu3 %vm333_vm1, %v4881_v54 }
 0x11e   :  { %1237 = vmatpush.msrb.mxu3 %v1224_v37  ;;  %1171 = vmatpush.msrb.mxu1 %v1155_v39  ;;  %v1434_v39 = vld [vmem:[#allocation5 + $0x878] sm:$0xff] }
 0x11f   :  { %1194 = vmatpush.msrb.mxu2 %v1156_v40  ;;  %1403 = vmatpush.msrb.mxu0 %v1353_v45  ;;  %v1631_v45 = vld [vmem:[#allocation5 + $0x9d8] sm:$0xff] }
 0x120   :  { %1238 = vmatpush.msrb.mxu3 %v1222_v41  ;;  %1172 = vmatpush.msrb.mxu1 %v1153_v43  ;;  %v1500_v41 = vld [vmem:[#allocation5 + $0x8f0] sm:$0xff]  ;;  %v1431_v43 = vld [vmem:[#allocation5 + $0x860] sm:$0xff] }
 0x121   :  { %1195 = vmatpush.msrb.mxu2 %v1154_v44  ;;  %1404 = vmatpush.msrb.mxu0 %v1351_v50  ;;  %v1432_v44 = vld [vmem:[#allocation5 + $0x868] sm:$0xff] }
 0x122   :  { %1239 = vmatpush.msrb.mxu3 %v1220_v20  ;;  %1173 = vmatpush.msrb.mxu1 %v1151_v46  ;;  %v1498_v20 = vld [vmem:[#allocation5 + $0x8e0] sm:$0xff]  ;;  %v1429_v46 = vld [vmem:[#allocation5 + $0x850] sm:$0xff]  ;;  %v1629_v50 = vld [vmem:[#allocation5 + $0x9c8] sm:$0xff] }
 0x123   :  { %1196 = vmatpush.msrb.mxu2 %v1152_v47  ;;  %1405 = vmatpush.msrb.mxu0 %v1349_v55  ;;  %v1430_v47 = vld [vmem:[#allocation5 + $0x858] sm:$0xff] }
 0x124   :  { %4202 = vmatmul.msk.f32.gmra.mxu1 %vm333_vm1, %v4891_v10  ;;  %1240 = vmatpush.msrb.mxu3 %v1218_v48  ;;  %v1496_v48 = vld [vmem:[#allocation5 + $0x8d0] sm:$0xff] }
 0x125   :  { %4204 = vmatmul.msk.f32.gmra.mxu2 %vm333_vm1, %v4891_v10  ;;  %4206 = vmatmul.msk.f32.gmra.mxu3 %vm333_vm1, %v4891_v10 }
 0x126   :  { %1174 = vmatpush.msrb.mxu1 %v1149_v51  ;;  %1197 = vmatpush.msrb.mxu2 %v1150_v52  ;;  %v1428_v52 = vld [vmem:[#allocation5 + $0x848] sm:$0xff] }
 0x127   :  { %1241 = vmatpush.msrb.mxu3 %v1216_v53  ;;  %1406 = vmatpush.msrb.mxu0 %v1347_v59  ;;  %v1494_v53 = vld [vmem:[#allocation5 + $0x8c0] sm:$0xff]  ;;  %v1426_v59 = vld [vmem:[#allocation5 + $0x838] sm:$0xff] }
 0x128   :  { %1175 = vmatpush.msrb.mxu1 %v1147_v56  ;;  %1198 = vmatpush.msrb.mxu2 %v1148_v57  ;;  %v1627_v56 = vld [vmem:[#allocation5 + $0x9b8] sm:$0xff] }
 0x129   :  { %1242 = vmatpush.msrb.mxu3 %v1214_v58  ;;  %4223 = vmatmul.msk.f32.vlgmr.msrb.gmra.mxu0 %vm333_vm1, %v4923_v60  ;;  %v1425_v58 = vld [vmem:[#allocation5 + $0x830] sm:$0xff] }
 0x12a   :  { %1176 = vmatpush.msrb.mxu1 %v1145_v61  ;;  %1199 = vmatpush.msrb.mxu2 %v1146_v62  ;;  %v1492_v61 = vld [vmem:[#allocation5 + $0x8b0] sm:$0xff]  ;;  %v1625_v62 = vld [vmem:[#allocation5 + $0x9a8] sm:$0xff] }
 0x12b   :  { %1243 = vmatpush.msrb.mxu3 %v1212_v63  ;;  %1533 = vmatpush.msra.mxu0 %v1501_v0  ;;  %v1423_v63 = vld [vmem:[#allocation5 + $0x820] sm:$0xff]  ;;  %v1424_v0 = vld [vmem:[#allocation5 + $0x828] sm:$0xff] }
 0x12c   :  { %4209 = vmatmul.msk.f32.vlgmr.msrb.gmra.mxu1 %vm333_vm1, %v4881_v54  ;;  %1326 = vmatpush.msra.mxu2 %v1294_v2  ;;  %v1623_v2 = vld [vmem:[#allocation5 + $0x998] sm:$0xff] }
 0x12d   :  { %4211 = vmatmul.msk.f32.vlgmr.msrb.gmra.mxu2 %vm333_vm1, %v4881_v54  ;;  %4213 = vmatmul.msk.f32.vlgmr.msrb.gmra.mxu3 %vm333_vm1, %v4881_v54 }
 0x12e   :  { %1303 = vmatpush.msra.mxu1 %v1293_v1  ;;  %1376 = vmatpush.msra.mxu3 %v1360_v3  ;;  %v1490_v1 = vld [vmem:[#allocation5 + $0x8a0] sm:$0xff]  ;;  %v1421_v3 = vld [vmem:[#allocation5 + $0x810] sm:$0xff] }
 0x12f   :  { %1534 = vmatpush.msra.mxu0 %v1499_v4  ;;  %1327 = vmatpush.msra.mxu2 %v1292_v7  ;;  %v1422_v4 = vld [vmem:[#allocation5 + $0x818] sm:$0xff]  ;;  %v1488_v7 = vld [vmem:[#allocation5 + $0x890] sm:$0xff] }
 0x130   :  { %1304 = vmatpush.msra.mxu1 %v1291_v5  ;;  %1377 = vmatpush.msra.mxu3 %v1358_v8  ;;  %v1621_v8 = vld [vmem:[#allocation5 + $0x988] sm:$0xff] }
 0x131   :  { %1535 = vmatpush.msra.mxu0 %v1497_v9  ;;  %1328 = vmatpush.msra.mxu2 %v1290_v12  ;;  %v1419_v9 = vld [vmem:[#allocation5 + $0x800] sm:$0xff]  ;;  %v1420_v12 = vld [vmem:[#allocation5 + $0x808] sm:$0xff] }
 0x132   :  { %1305 = vmatpush.msra.mxu1 %v1289_v11  ;;  %1378 = vmatpush.msra.mxu3 %v1356_v13  ;;  %v1486_v13 = vld [vmem:[#allocation5 + $0x880] sm:$0xff] }
 0x133   :  { %1536 = vmatpush.msra.mxu0 %v1495_v14  ;;  %1329 = vmatpush.msra.mxu2 %v1288_v17  ;;  %v1567_v14 = vld [vmem:[#allocation5 + $0x970] sm:$0xff] }
 0x134   :  { %4224 = vmatmul.msk.f32.gmra.mxu0 %vm333_vm1, %v4933_v15  ;;  %1306 = vmatpush.msra.mxu1 %v1287_v16  ;;  %v1568_v16 = vld [vmem:[#allocation5 + $0x978] sm:$0xff]  ;;  %v1634_v17 = vld [vmem:[#allocation5 + $0x9f0] sm:$0xff] }
 0x135   :  { %1379 = vmatpush.msra.mxu3 %v1354_v18  ;;  %1537 = vmatpush.msra.mxu0 %v1493_v19  ;;  %v1775_v18 = vld [vmem:[#allocation5 + $0xaf8] sm:$0xff]  ;;  %v1565_v19 = vld [vmem:[#allocation5 + $0x960] sm:$0xff] }
 0x136   :  { %4210 = vmatmul.msk.f32.gmra.mxu1 %vm333_vm1, %v4891_v10  ;;  %4212 = vmatmul.msk.f32.gmra.mxu2 %vm333_vm1, %v4891_v10 }
 0x137   :  { %4214 = vmatmul.msk.f32.gmra.mxu3 %vm333_vm1, %v4891_v10  ;;  %v4943_v26 = vpop.f32.mrf.mxu1  ;;  %1307 = vmatpush.msra.mxu1 %v1285_v21  ;;  %v1566_v21 = vld [vmem:[#allocation5 + $0x968] sm:$0xff] }
 0x138   :  { %1330 = vmatpush.msra.mxu2 %v1286_v22  ;;  %1380 = vmatpush.msra.mxu3 %v1352_v23  ;;  %v1632_v22 = vld [vmem:[#allocation5 + $0x9e0] sm:$0xff] }
 0x139   :  { %1538 = vmatpush.msra.mxu0 %v1491_v35  ;;  %1308 = vmatpush.msra.mxu1 %v1283_v24  ;;  %v1773_v35 = vld [vmem:[#allocation5 + $0xae8] sm:$0xff]  ;;  %v1563_v24 = vld [vmem:[#allocation5 + $0x950] sm:$0xff] }
 0x13a   :  { %1331 = vmatpush.msra.mxu2 %v1284_v25  ;;  %1381 = vmatpush.msra.mxu3 %v1350_v27  ;;  %v1564_v27 = vld [vmem:[#allocation5 + $0x958] sm:$0xff] }
 0x13b   :  { %1539 = vmatpush.msra.mxu0 %v1489_v28  ;;  %1309 = vmatpush.msra.mxu1 %v1281_v29  ;;  %v1630_v28 = vld [vmem:[#allocation5 + $0x9d0] sm:$0xff] }
 0x13c   :  { %1332 = vmatpush.msra.mxu2 %v1282_v30  ;;  %1382 = vmatpush.msra.mxu3 %v1348_v31  ;;  %v1771_v30 = vld [vmem:[#allocation5 + $0xad8] sm:$0xff]  ;;  %v1561_v31 = vld [vmem:[#allocation5 + $0x940] sm:$0xff] }
 0x13d   :  { %1540 = vmatpush.msra.mxu0 %v1487_v6  ;;  %v4945_v36 = vpop.f32.mrf.mxu2  ;;  %1310 = vmatpush.msra.mxu1 %v1279_v32  ;;  %v1562_v6 = vld [vmem:[#allocation5 + $0x948] sm:$0xff]  ;;  %v1628_v32 = vld [vmem:[#allocation5 + $0x9c0] sm:$0xff] }
 0x13e   :  { %4231 = vmatmul.msk.f32.vlgmr.msra.gmra.mxu0 %vm333_vm1, %v4923_v60  ;;  %v4949_v37 = vpop.f32.mrf.mxu3  ;;  %1333 = vmatpush.msra.mxu2 %v1280_v33  ;;  %v1769_v33 = vld [vmem:[#allocation5 + $0xac8] sm:$0xff] }
 0x13f   :  { %1383 = vmatpush.msra.mxu3 %v1346_v49  ;;  %v4951_v40 = vpop.f32.mrf.mxu1  ;;  %1667 = vmatpush.msrb.mxu0 %v1635_v34  ;;  %v1559_v49 = vld [vmem:[#allocation5 + $0x930] sm:$0xff]  ;;  %v1560_v34 = vld [vmem:[#allocation5 + $0x938] sm:$0xff] }
 0x140   :  { %4217 = vmatmul.msk.f32.vlgmr.msra.gmra.mxu1 %vm333_vm1, %v4881_v54  ;;  %4219 = vmatmul.msk.f32.vlgmr.msra.gmra.mxu2 %vm333_vm1, %v4881_v54  ;;  %v1427_v54 = vld [vmem:[#allocation5 + $0x840] sm:$0xff] }
 0x141   :  { %4221 = vmatmul.msk.f32.vlgmr.msra.gmra.mxu3 %vm333_vm1, %v4923_v60  ;;  %1443 = vmatpush.msrb.mxu1 %v1433_v38  ;;  %v1626_v38 = vld [vmem:[#allocation5 + $0x9b0] sm:$0xff] }
 0x142   :  { %1466 = vmatpush.msrb.mxu2 %v1434_v39  ;;  %1510 = vmatpush.msrb.mxu3 %v1500_v41  ;;  %v1767_v41 = vld [vmem:[#allocation5 + $0xab8] sm:$0xff] }
 0x143   :  { %1668 = vmatpush.msrb.mxu0 %v1633_v42  ;;  %1444 = vmatpush.msrb.mxu1 %v1431_v43  ;;  %v1557_v42 = vld [vmem:[#allocation5 + $0x920] sm:$0xff] }
 0x144   :  { %1467 = vmatpush.msrb.mxu2 %v1432_v44  ;;  %1511 = vmatpush.msrb.mxu3 %v1498_v20  ;;  %v1558_v44 = vld [vmem:[#allocation5 + $0x928] sm:$0xff]  ;;  %v1624_v20 = vld [vmem:[#allocation5 + $0x9a0] sm:$0xff] }
 0x145   :  { %1669 = vmatpush.msrb.mxu0 %v1631_v45  ;;  %v4959_v51 = vpop.f32.mrf.mxu2  ;;  %1445 = vmatpush.msrb.mxu1 %v1429_v46  ;;  %v1765_v46 = vld [vmem:[#allocation5 + $0xaa8] sm:$0xff] }
 0x146   :  { %1468 = vmatpush.msrb.mxu2 %v1430_v47  ;;  %v4961_v55 = vpop.f32.mrf.mxu3  ;;  %1512 = vmatpush.msrb.mxu3 %v1496_v48  ;;  %v1555_v47 = vld [vmem:[#allocation5 + $0x910] sm:$0xff]  ;;  %v1556_v48 = vld [vmem:[#allocation5 + $0x918] sm:$0xff] }
 0x147   :  { %1670 = vmatpush.msrb.mxu0 %v1629_v50  ;;  %v4963_v57 = vpop.f32.mrf.mxu1  ;;  %1446 = vmatpush.msrb.mxu1 %v1427_v54  ;;  %v1622_v50 = vld [vmem:[#allocation5 + $0x990] sm:$0xff]  ;;  %v1763_v54 = vld [vmem:[#allocation5 + $0xa98] sm:$0xff] }
 0x148   :  { %4232 = vmatmul.msk.f32.gmra.mxu0 %vm333_vm1, %v4933_v15  ;;  %1469 = vmatpush.msrb.mxu2 %v1428_v52  ;;  %v1553_v52 = vld [vmem:[#allocation5 + $0x900] sm:$0xff] }
 0x149   :  { %1513 = vmatpush.msrb.mxu3 %v1494_v53  ;;  %1671 = vmatpush.msrb.mxu0 %v1627_v56  ;;  %v1554_v53 = vld [vmem:[#allocation5 + $0x908] sm:$0xff]  ;;  %v1620_v56 = vld [vmem:[#allocation5 + $0x980] sm:$0xff] }
 0x14a   :  { %4218 = vmatmul.msk.f32.gmra.mxu1 %vm333_vm1, %v4891_v10  ;;  %4220 = vmatmul.msk.f32.gmra.mxu2 %vm333_vm1, %v4891_v10 }
 0x14b   :  { %4222 = vmatmul.msk.f32.gmra.mxu3 %vm333_vm1, %v4933_v15  ;;  %1447 = vmatpush.msrb.mxu1 %v1425_v58  ;;  %v1761_v58 = vld [vmem:[#allocation5 + $0xa88] sm:$0xff] }
 0x14c   :  { %1470 = vmatpush.msrb.mxu2 %v1426_v59  ;;  %1514 = vmatpush.msrb.mxu3 %v1492_v61  ;;  %v1701_v61 = vld [vmem:[#allocation5 + $0xa70] sm:$0xff] }
 0x14d   :  { %1672 = vmatpush.msrb.mxu0 %v1625_v62  ;;  %v4973_v5 = vpop.f32.mrf.mxu2  ;;  %1448 = vmatpush.msrb.mxu1 %v1423_v63  ;;  %v1702_v63 = vld [vmem:[#allocation5 + $0xa78] sm:$0xff] }
 0x14e   :  { %1471 = vmatpush.msrb.mxu2 %v1424_v0  ;;  %v4975_v10 = vpop.f32.mrf.mxu3  ;;  %1515 = vmatpush.msrb.mxu3 %v1490_v1  ;;  %v1774_v0 = vld [vmem:[#allocation5 + $0xaf0] sm:$0xff] }
 0x14f   :  { %1673 = vmatpush.msrb.mxu0 %v1623_v2  ;;  %v4977_v11 = vpop.f32.mrf.mxu1  ;;  %1449 = vmatpush.msrb.mxu1 %v1421_v3  ;;  %v5015_v2 = vpop.f32.mrf.mxu0  ;;  %v1909_v3 = vld [vmem:[#allocation5 + $0xbf8] sm:$0xff] }
 0x150   :  { %1472 = vmatpush.msrb.mxu2 %v1422_v4  ;;  %1516 = vmatpush.msrb.mxu3 %v1488_v7  ;;  %v1699_v4 = vld [vmem:[#allocation5 + $0xa60] sm:$0xff]  ;;  %v1700_v7 = vld [vmem:[#allocation5 + $0xa68] sm:$0xff] }
 0x151   :  { %1674 = vmatpush.msrb.mxu0 %v1621_v8  ;;  %1450 = vmatpush.msrb.mxu1 %v1419_v9  ;;  %v1772_v8 = vld [vmem:[#allocation5 + $0xae0] sm:$0xff]  ;;  %v1907_v9 = vld [vmem:[#allocation5 + $0xbe8] sm:$0xff] }
 0x152   :  { %4239 = vmatmul.msk.f32.vlgmr.msrb.gmra.mxu0 %vm333_vm1, %v4923_v60  ;;  %1473 = vmatpush.msrb.mxu2 %v1420_v12  ;;  %v1697_v12 = vld [vmem:[#allocation5 + $0xa50] sm:$0xff] }
 0x153   :  { %1517 = vmatpush.msrb.mxu3 %v1486_v13  ;;  %4225 = vmatmul.msk.f32.vlgmr.msrb.gmra.mxu1 %vm333_vm1, %v4923_v60  ;;  %v1698_v13 = vld [vmem:[#allocation5 + $0xa58] sm:$0xff] }
 0x154   :  { %4227 = vmatmul.msk.f32.vlgmr.msrb.gmra.mxu2 %vm333_vm1, %v4923_v60  ;;  %4229 = vmatmul.msk.f32.vlgmr.msrb.gmra.mxu3 %vm333_vm1, %v4923_v60 }
 0x155   :  { %1577 = vmatpush.msra.mxu1 %v1567_v14  ;;  %1600 = vmatpush.msra.mxu2 %v1568_v16  ;;  %v1770_v14 = vld [vmem:[#allocation5 + $0xad0] sm:$0xff]  ;;  %v1905_v16 = vld [vmem:[#allocation5 + $0xbd8] sm:$0xff] }
 0x156   :  { %v4987_v23 = vpop.f32.mrf.mxu2  ;;  %1644 = vmatpush.msra.mxu3 %v1634_v17  ;;  %v4989_v25 = vpop.f32.mrf.mxu3  ;;  %1807 = vmatpush.msra.mxu0 %v1775_v18  ;;  %v1696_v17 = vld [vmem:[#allocation5 + $0xa48] sm:$0xff]  ;;  %v1768_v18 = vld [vmem:[#allocation5 + $0xac0] sm:$0xff] }
 0x157   :  { %1578 = vmatpush.msra.mxu1 %v1565_v19  ;;  %v4991_v29 = vpop.f32.mrf.mxu1  ;;  %1601 = vmatpush.msra.mxu2 %v1566_v21  ;;  %v1903_v21 = vld [vmem:[#allocation5 + $0xbc8] sm:$0xff] }
 0x158   :  { %1645 = vmatpush.msra.mxu3 %v1632_v22  ;;  %1808 = vmatpush.msra.mxu0 %v1773_v35 }
 0x159   :  { %1579 = vmatpush.msra.mxu1 %v1563_v24  ;;  %1602 = vmatpush.msra.mxu2 %v1564_v27  ;;  %v1693_v24 = vld [vmem:[#allocation5 + $0xa30] sm:$0xff]  ;;  %v1694_v27 = vld [vmem:[#allocation5 + $0xa38] sm:$0xff] }
 0x15a   :  { %1646 = vmatpush.msra.mxu3 %v1630_v28  ;;  %1809 = vmatpush.msra.mxu0 %v1771_v30  ;;  %v1766_v28 = vld [vmem:[#allocation5 + $0xab0] sm:$0xff]  ;;  %v5031_v30 = vpop.f32.mrf.mxu0 }
 0x15b   :  { %1580 = vmatpush.msra.mxu1 %v1561_v31  ;;  %4240 = vmatmul.msk.f32.gmra.mxu0 %vm333_vm1, %v4933_v15  ;;  %v1901_v31 = vld [vmem:[#allocation5 + $0xbb8] sm:$0xff] }
 0x15c   :  { %1603 = vmatpush.msra.mxu2 %v1562_v6  ;;  %1647 = vmatpush.msra.mxu3 %v1628_v32  ;;  %v1691_v6 = vld [vmem:[#allocation5 + $0xa20] sm:$0xff]  ;;  %v1692_v32 = vld [vmem:[#allocation5 + $0xa28] sm:$0xff] }
 0x15d   :  { %1810 = vmatpush.msra.mxu0 %v1769_v33  ;;  %4226 = vmatmul.msk.f32.gmra.mxu1 %vm333_vm1, %v4933_v15  ;;  %v1764_v33 = vld [vmem:[#allocation5 + $0xaa0] sm:$0xff] }
 0x15e   :  { %v4995_v39 = vpop.f32.mrf.mxu2  ;;  %4228 = vmatmul.msk.f32.gmra.mxu2 %vm333_vm1, %v4933_v15  ;;  %v5001_v43 = vpop.f32.mrf.mxu3  ;;  %4230 = vmatmul.msk.f32.gmra.mxu3 %vm333_vm1, %v4933_v15 }
 0x15f   :  { %1581 = vmatpush.msra.mxu1 %v1559_v49  ;;  %1604 = vmatpush.msra.mxu2 %v1560_v34  ;;  %v1899_v49 = vld [vmem:[#allocation5 + $0xba8] sm:$0xff]  ;;  %v1689_v34 = vld [vmem:[#allocation5 + $0xa10] sm:$0xff] }
 0x160   :  { %v5005_v45 = vpop.f32.mrf.mxu1  ;;  %1648 = vmatpush.msra.mxu3 %v1626_v38  ;;  %1811 = vmatpush.msra.mxu0 %v1767_v41  ;;  %v1690_v38 = vld [vmem:[#allocation5 + $0xa18] sm:$0xff]  ;;  %v1762_v41 = vld [vmem:[#allocation5 + $0xa90] sm:$0xff] }
 0x161   :  { %1582 = vmatpush.msra.mxu1 %v1557_v42  ;;  %1605 = vmatpush.msra.mxu2 %v1558_v44  ;;  %v1687_v44 = vld [vmem:[#allocation5 + $0xa00] sm:$0xff] }
 0x162   :  { %1649 = vmatpush.msra.mxu3 %v1624_v20  ;;  %1812 = vmatpush.msra.mxu0 %v1765_v46  ;;  %v1688_v46 = vld [vmem:[#allocation5 + $0xa08] sm:$0xff] }
 0x163   :  { %1583 = vmatpush.msra.mxu1 %v1555_v47  ;;  %1606 = vmatpush.msra.mxu2 %v1556_v48  ;;  %v1760_v47 = vld [vmem:[#allocation5 + $0xa80] sm:$0xff] }
 0x164   :  { %1650 = vmatpush.msra.mxu3 %v1622_v50  ;;  %1813 = vmatpush.msra.mxu0 %v1763_v54  ;;  %v1895_v50 = vld [vmem:[#allocation5 + $0xb88] sm:$0xff]  ;;  %v1841_v54 = vld [vmem:[#allocation5 + $0xb70] sm:$0xff] }
 0x165   :  { %1584 = vmatpush.msra.mxu1 %v1553_v52  ;;  %1607 = vmatpush.msra.mxu2 %v1554_v53  ;;  %v1842_v52 = vld [vmem:[#allocation5 + $0xb78] sm:$0xff]  ;;  %v1908_v53 = vld [vmem:[#allocation5 + $0xbf0] sm:$0xff] }
 0x166   :  { %v5007_v59 = vpop.f32.mrf.mxu2  ;;  %1651 = vmatpush.msra.mxu3 %v1620_v56  ;;  %1814 = vmatpush.msra.mxu0 %v1761_v58  ;;  %v1839_v56 = vld [vmem:[#allocation5 + $0xb60] sm:$0xff]  ;;  %v1840_v58 = vld [vmem:[#allocation5 + $0xb68] sm:$0xff] }
 0x167   :  { %v5009_v62 = vpop.f32.mrf.mxu3  ;;  %4233 = vmatmul.msk.f32.vlgmr.msra.gmra.mxu1 %vm333_vm1, %v4923_v60  ;;  %4235 = vmatmul.msk.f32.vlgmr.msra.gmra.mxu2 %vm333_vm1, %v4923_v60 }
 0x168   :  { %v5013_v1 = vpop.f32.mrf.mxu1  ;;  %4237 = vmatmul.msk.f32.vlgmr.msra.gmra.mxu3 %vm333_vm1, %v4923_v60  ;;  %4247 = vmatmul.msk.f32.vlgmr.msra.gmra.mxu0 %vm333_vm1, %v5015_v2  ;;  %v1695_v60 = vld [vmem:[#allocation5 + $0xa40] sm:$0xff] }
 0x169   :  { %1717 = vmatpush.msrb.mxu1 %v1701_v61  ;;  %1740 = vmatpush.msrb.mxu2 %v1702_v63  ;;  %v1906_v61 = vld [vmem:[#allocation5 + $0xbe0] sm:$0xff] }
 0x16a   :  { %1784 = vmatpush.msrb.mxu3 %v1774_v0  ;;  %1941 = vmatpush.msrb.mxu0 %v1909_v3  ;;  %v1837_v0 = vld [vmem:[#allocation5 + $0xb50] sm:$0xff] }
 0x16b   :  { %1718 = vmatpush.msrb.mxu1 %v1699_v4  ;;  %1741 = vmatpush.msrb.mxu2 %v1700_v7  ;;  %v1838_v4 = vld [vmem:[#allocation5 + $0xb58] sm:$0xff]  ;;  %v1904_v7 = vld [vmem:[#allocation5 + $0xbd0] sm:$0xff] }
 0x16c   :  { %1785 = vmatpush.msrb.mxu3 %v1772_v8  ;;  %1942 = vmatpush.msrb.mxu0 %v1907_v9  ;;  %v1835_v9 = vld [vmem:[#allocation5 + $0xb40] sm:$0xff] }
 0x16d   :  { %1719 = vmatpush.msrb.mxu1 %v1697_v12  ;;  %1742 = vmatpush.msrb.mxu2 %v1698_v13  ;;  %v1836_v12 = vld [vmem:[#allocation5 + $0xb48] sm:$0xff]  ;;  %v1902_v13 = vld [vmem:[#allocation5 + $0xbc0] sm:$0xff] }
 0x16e   :  { %v5023_v19 = vpop.f32.mrf.mxu2  ;;  %1786 = vmatpush.msrb.mxu3 %v1770_v14  ;;  %1943 = vmatpush.msrb.mxu0 %v1905_v16  ;;  %v5059_v14 = vpop.f32.mrf.mxu0  ;;  %v1833_v16 = vld [vmem:[#allocation5 + $0xb30] sm:$0xff] }
 0x16f   :  { %v5025_v22 = vpop.f32.mrf.mxu3  ;;  %1720 = vmatpush.msrb.mxu1 %v1695_v60  ;;  %1743 = vmatpush.msrb.mxu2 %v1696_v17  ;;  %v1834_v60 = vld [vmem:[#allocation5 + $0xb38] sm:$0xff]  ;;  %v1900_v17 = vld [vmem:[#allocation5 + $0xbb0] sm:$0xff] }
 0x170   :  { %v5027_v35 = vpop.f32.mrf.mxu1  ;;  %1787 = vmatpush.msrb.mxu3 %v1768_v18  ;;  %1944 = vmatpush.msrb.mxu0 %v1903_v21  ;;  %v1831_v21 = vld [vmem:[#allocation5 + $0xb20] sm:$0xff] }
 0x171   :  { %4234 = vmatmul.msk.f32.gmra.mxu1 %vm333_vm1, %v4933_v15  ;;  %4236 = vmatmul.msk.f32.gmra.mxu2 %vm333_vm1, %v4933_v15 }
 0x172   :  { %4238 = vmatmul.msk.f32.gmra.mxu3 %vm333_vm1, %v4933_v15  ;;  %4248 = vmatmul.msk.f32.gmra.mxu0 %vm333_vm1, %v5031_v30  ;;  %v1897_v15 = vld [vmem:[#allocation5 + $0xb98] sm:$0xff] }
 0x173   :  { %1721 = vmatpush.msrb.mxu1 %v1693_v24  ;;  %1744 = vmatpush.msrb.mxu2 %v1694_v27  ;;  %v1832_v24 = vld [vmem:[#allocation5 + $0xb28] sm:$0xff] }
 0x174   :  { %1788 = vmatpush.msrb.mxu3 %v1766_v28  ;;  %1945 = vmatpush.msrb.mxu0 %v1901_v31  ;;  %v1898_v28 = vld [vmem:[#allocation5 + $0xba0] sm:$0xff] }
 0x175   :  { %1722 = vmatpush.msrb.mxu1 %v1691_v6  ;;  %1745 = vmatpush.msrb.mxu2 %v1692_v32  ;;  %v1829_v6 = vld [vmem:[#allocation5 + $0xb10] sm:$0xff]  ;;  %v1830_v32 = vld [vmem:[#allocation5 + $0xb18] sm:$0xff] }
 0x176   :  { %1789 = vmatpush.msrb.mxu3 %v1764_v33  ;;  %1946 = vmatpush.msrb.mxu0 %v1899_v49  ;;  %v1896_v33 = vld [vmem:[#allocation5 + $0xb90] sm:$0xff]  ;;  %v1827_v49 = vld [vmem:[#allocation5 + $0xb00] sm:$0xff] }
 0x177   :  { %v5039_v42 = vpop.f32.mrf.mxu2  ;;  %v5041_v20 = vpop.f32.mrf.mxu3  ;;  %1723 = vmatpush.msrb.mxu1 %v1689_v34  ;;  %1746 = vmatpush.msrb.mxu2 %v1690_v38  ;;  %v1828_v34 = vld [vmem:[#allocation5 + $0xb08] sm:$0xff]  ;;  %v1894_v38 = vld [vmem:[#allocation5 + $0xb80] sm:$0xff] }
 0x178   :  { %1790 = vmatpush.msrb.mxu3 %v1762_v41  ;;  %1947 = vmatpush.msrb.mxu0 %v1897_v15  ;;  %v5075_v41 = vpop.f32.mrf.mxu0  ;;  %v1975_v15 = vld [vmem:[#allocation5 + $0xc70] sm:$0xff] }
 0x179   :  { %v5043_v48 = vpop.f32.mrf.mxu1  ;;  %1724 = vmatpush.msrb.mxu1 %v1687_v44  ;;  %1747 = vmatpush.msrb.mxu2 %v1688_v46  ;;  %v1976_v44 = vld [vmem:[#allocation5 + $0xc78] sm:$0xff] }
 0x17a   :  { %1791 = vmatpush.msrb.mxu3 %v1760_v47  ;;  %1948 = vmatpush.msrb.mxu0 %v1895_v50  ;;  %v1973_v50 = vld [vmem:[#allocation5 + $0xc60] sm:$0xff] }
 0x17b   :  { %4241 = vmatmul.msk.f32.vlgmr.msrb.gmra.mxu1 %vm333_vm1, %v5015_v2  ;;  %4243 = vmatmul.msk.f32.vlgmr.msrb.gmra.mxu2 %vm333_vm1, %v5015_v2 }
 0x17c   :  { %4245 = vmatmul.msk.f32.vlgmr.msrb.gmra.mxu3 %vm333_vm1, %v5015_v2  ;;  %4255 = vmatmul.msk.f32.vlgmr.msrb.gmra.mxu0 %vm333_vm1, %v5015_v2 }
 0x17d   :  { %1851 = vmatpush.msra.mxu1 %v1841_v54  ;;  %1874 = vmatpush.msra.mxu2 %v1842_v52  ;;  %v1974_v54 = vld [vmem:[#allocation5 + $0xc68] sm:$0xff] }
 0x17e   :  { %1918 = vmatpush.msra.mxu3 %v1908_v53  ;;  %v1971_v53 = vld [vmem:[#allocation5 + $0xc50] sm:$0xff] }
 0x17f   :  { %v5053_v63 = vpop.f32.mrf.mxu2  ;;  %1852 = vmatpush.msra.mxu1 %v1839_v56  ;;  %1875 = vmatpush.msra.mxu2 %v1840_v58  ;;  %v1972_v56 = vld [vmem:[#allocation5 + $0xc58] sm:$0xff]  ;;  %v1969_v58 = vld [vmem:[#allocation5 + $0xc40] sm:$0xff] }
 0x180   :  { %v5055_v3 = vpop.f32.mrf.mxu3  ;;  %1919 = vmatpush.msra.mxu3 %v1906_v61  ;;  %v1970_v61 = vld [vmem:[#allocation5 + $0xc48] sm:$0xff] }
 0x181   :  { %v5057_v8 = vpop.f32.mrf.mxu1  ;;  %1853 = vmatpush.msra.mxu1 %v1837_v0  ;;  %1876 = vmatpush.msra.mxu2 %v1838_v4  ;;  %v1967_v0 = vld [vmem:[#allocation5 + $0xc30] sm:$0xff] }
 0x182   :  { %1920 = vmatpush.msra.mxu3 %v1904_v7  ;;  %v1968_v7 = vld [vmem:[#allocation5 + $0xc38] sm:$0xff] }
 0x183   :  { %1854 = vmatpush.msra.mxu1 %v1835_v9  ;;  %1877 = vmatpush.msra.mxu2 %v1836_v12  ;;  %v5093_v12 = vpop.f32.mrf.mxu0 }
 0x184   :  { %1921 = vmatpush.msra.mxu3 %v1902_v13  ;;  %4242 = vmatmul.msk.f32.gmra.mxu1 %vm333_vm1, %v5031_v30  ;;  %v1965_v13 = vld [vmem:[#allocation5 + $0xc20] sm:$0xff] }
 0x185   :  { %4244 = vmatmul.msk.f32.gmra.mxu2 %vm333_vm1, %v5031_v30  ;;  %4246 = vmatmul.msk.f32.gmra.mxu3 %vm333_vm1, %v5031_v30 }
 0x186   :  { %4256 = vmatmul.msk.f32.gmra.mxu0 %vm333_vm1, %v5031_v30  ;;  %1855 = vmatpush.msra.mxu1 %v1833_v16 }
 0x187   :  { %v5065_v18 = vpop.f32.mrf.mxu2  ;;  %1878 = vmatpush.msra.mxu2 %v1834_v60  ;;  %1922 = vmatpush.msra.mxu3 %v1900_v17  ;;  %v1966_v60 = vld [vmem:[#allocation5 + $0xc28] sm:$0xff]  ;;  %v1963_v17 = vld [vmem:[#allocation5 + $0xc10] sm:$0xff] }
 0x188   :  { %v5071_v27 = vpop.f32.mrf.mxu3  ;;  %1856 = vmatpush.msra.mxu1 %v1831_v21  ;;  %v1964_v21 = vld [vmem:[#allocation5 + $0xc18] sm:$0xff] }
 0x189   :  { %v5073_v31 = vpop.f32.mrf.mxu1  ;;  %1879 = vmatpush.msra.mxu2 %v1832_v24  ;;  %1923 = vmatpush.msra.mxu3 %v1898_v28  ;;  %v1961_v24 = vld [vmem:[#allocation5 + $0xc00] sm:$0xff]  ;;  %v1962_v28 = vld [vmem:[#allocation5 + $0xc08] sm:$0xff] }
 0x18a   :  { %1857 = vmatpush.msra.mxu1 %v1829_v6 }
 0x18b   :  { %1880 = vmatpush.msra.mxu2 %v1830_v32  ;;  %1924 = vmatpush.msra.mxu3 %v1896_v33 }
 0x18c   :  { %1858 = vmatpush.msra.mxu1 %v1827_v49  ;;  %v5113_v49 = vpop.f32.mrf.mxu0 }
 0x18d   :  { %1881 = vmatpush.msra.mxu2 %v1828_v34  ;;  %1925 = vmatpush.msra.mxu3 %v1894_v38 }
 0x18e   :  { %4249 = vmatmul.msk.f32.vlgmr.msra.gmra.mxu1 %vm333_vm1, %v5015_v2  ;;  %4251 = vmatmul.msk.f32.vlgmr.msra.gmra.mxu2 %vm333_vm1, %v5015_v2 }
 0x18f   :  { %4253 = vmatmul.msk.f32.vlgmr.msra.gmra.mxu3 %vm333_vm1, %v5015_v2  ;;  %1985 = vmatpush.msrb.mxu1 %v1975_v15 }
 0x190   :  { %v5077_v46 = vpop.f32.mrf.mxu2  ;;  %v5081_v47 = vpop.f32.mrf.mxu3  ;;  %2008 = vmatpush.msrb.mxu2 %v1976_v44 }
 0x191   :  { %v5087_v52 = vpop.f32.mrf.mxu1  ;;  %1986 = vmatpush.msrb.mxu1 %v1973_v50 }
 0x192   :  { %2009 = vmatpush.msrb.mxu2 %v1974_v54 }
 0x193   :  { %1987 = vmatpush.msrb.mxu1 %v1971_v53 }
 0x194   :  { %2010 = vmatpush.msrb.mxu2 %v1972_v56  ;;  %v5123_v15 = vpop.f32.mrf.mxu0 }
 0x195   :  { %1988 = vmatpush.msrb.mxu1 %v1969_v58 }
 0x196   :  { %2011 = vmatpush.msrb.mxu2 %v1970_v61  ;;  %4250 = vmatmul.msk.f32.gmra.mxu1 %vm333_vm1, %v5031_v30 }
 0x197   :  { %4252 = vmatmul.msk.f32.gmra.mxu2 %vm333_vm1, %v5031_v30  ;;  %4254 = vmatmul.msk.f32.gmra.mxu3 %vm333_vm1, %v5031_v30 }
 0x198   :  { %v5089_v4 = vpop.f32.mrf.mxu2  ;;  %v5091_v9 = vpop.f32.mrf.mxu3  ;;  %1989 = vmatpush.msrb.mxu1 %v1967_v0  ;;  %2012 = vmatpush.msrb.mxu2 %v1968_v7 }
 0x199   :  { %v5099_v16 = vpop.f32.mrf.mxu1 }
 0x19a   :  { %1990 = vmatpush.msrb.mxu1 %v1965_v13  ;;  %2013 = vmatpush.msrb.mxu2 %v1966_v60 }
 0x19c   :  { %1991 = vmatpush.msrb.mxu1 %v1963_v17  ;;  %2014 = vmatpush.msrb.mxu2 %v1964_v21 }
 0x19e   :  { %1992 = vmatpush.msrb.mxu1 %v1961_v24  ;;  %2015 = vmatpush.msrb.mxu2 %v1962_v28 }
 0x19f   :  { %4257 = vmatmul.msk.f32.vlgmr.msrb.gmra.mxu1 %vm333_vm1, %v5015_v2  ;;  %4259 = vmatmul.msk.f32.vlgmr.msrb.gmra.mxu2 %vm333_vm1, %v5015_v2  ;;  %v5131_v2 = vpop.f32.mrf.mxu0 }
 0x1a0   :  { %v5103_v6 = vpop.f32.mrf.mxu2  ;;  %v5105_v32 = vpop.f32.mrf.mxu3 }
 0x1a1   :  { %v5109_v33 = vpop.f32.mrf.mxu1 }
 0x1a7   :  { %4258 = vmatmul.msk.f32.gmra.mxu1 %vm333_vm1, %v5031_v30  ;;  %4260 = vmatmul.msk.f32.gmra.mxu2 %vm333_vm1, %v5031_v30  ;;  %v5139_v61 = vpop.f32.mrf.mxu0 }
 0x1a8   :  { %v5115_v34 = vpop.f32.mrf.mxu2  ;;  %v5121_v38 = vpop.f32.mrf.mxu3 }
 0x1a9   :  { %v5125_v44 = vpop.f32.mrf.mxu1 }
 0x1aa   :  { %5402 = vst [vmem:[#allocation31_spill] sm:$0xff] %v5125_v44 }
 0x1af   :  { %v5147_v13 = vpop.f32.mrf.mxu0 }
 0x1b0   :  { %v5127_v50 = vpop.f32.mrf.mxu2  ;;  %v5129_v54 = vpop.f32.mrf.mxu3 }
 0x1b1   :  { %5403 = vst [vmem:[#allocation32_spill] sm:$0xff] %v5129_v54 }
 0x1b3   :  { %v5133_v53 = vpop.f32.mrf.mxu1 }
 0x1b4   :  { %5404 = vst [vmem:[#allocation33_spill] sm:$0xff] %v5133_v53 }
 0x1b7   :  { %v5155_v24 = vpop.f32.mrf.mxu0 }
 0x1b8   :  { %5412 = vst [vmem:[#allocation41_spill] sm:$0xff] %v5155_v24 }
 0x1b9   :  { %v5135_v56 = vpop.f32.mrf.mxu2 }
 0x1ba   :  { %v5137_v58 = vpop.f32.mrf.mxu3 }
 0x1bb   :  { %5405 = vst [vmem:[#allocation34_spill] sm:$0xff] %v5137_v58 }
 0x1bd   :  { %v5141_v30 = vpop.f32.mrf.mxu1 }
 0x1be   :  { %5406 = vst [vmem:[#allocation35_spill] sm:$0xff] %v5141_v30 }
 0x1bf   :  { %v5163_v30 = vpop.f32.mrf.mxu0 }
 0x1c0   :  { %5416 = vst [vmem:[#allocation45_spill] sm:$0xff] %v5163_v30 }
 0x1c3   :  { %v5143_v0 = vpop.f32.mrf.mxu2 }
 0x1c4   :  { %5407 = vst [vmem:[#allocation36_spill] sm:$0xff] %v5143_v0  ;;  %v5145_v7 = vpop.f32.mrf.mxu3 }
 0x1c5   :  { %5408 = vst [vmem:[#allocation37_spill] sm:$0xff] %v5145_v7 }
 0x1c7   :  { %v5149_v60 = vpop.f32.mrf.mxu1 }
 0x1c8   :  { %5409 = vst [vmem:[#allocation38_spill] sm:$0xff] %v5149_v60 }
 0x1cd   :  { %v5151_v17 = vpop.f32.mrf.mxu2 }
 0x1ce   :  { %5410 = vst [vmem:[#allocation39_spill] sm:$0xff] %v5151_v17  ;;  %v5153_v21 = vpop.f32.mrf.mxu3  ;;  %v316_v17 = vld [vmem:[#allocation7] sm:$0x3] }
 0x1cf   :  { %5411 = vst [vmem:[#allocation40_spill] sm:$0xff] %v5153_v21  ;;  %v5173_v21 = vpop.f32.mrf.mxu0  ;;  %v388_v24 = vperm.slane %v316_v17, 1 }
 0x1d0   :  { %v5157_v28 = vpop.f32.mrf.mxu1  ;;  %5421 = vst [vmem:[#allocation50_spill] sm:$0xff] %v5173_v21 }
 0x1d1   :  { %5413 = vst [vmem:[#allocation42_spill] sm:$0xff] %v5157_v28  ;;  %v392_v28 = vadd.f32 %v388_v24, %v4945_v36 }
 0x1d7   :  { %v5159_v58 = vpop.f32.mrf.mxu2  ;;  %v5161_v54 = vpop.f32.mrf.mxu3 }
 0x1d8   :  { %5414 = vst [vmem:[#allocation43_spill] sm:$0xff] %v5159_v58  ;;  %v394_v58 = vadd.f32 %v388_v24, %v4959_v51  ;;  %v5187_v21 = vpop.f32.mrf.mxu0  ;;  %v387_v24 = vperm.slane %v316_v17, 0 }
 0x1d9   :  { %5415 = vst [vmem:[#allocation44_spill] sm:$0xff] %v5161_v54  ;;  %v459_v54 = vadd.f32 %v4963_v57, %v392_v28 }
 0x1da   :  { %v5165_v0 = vpop.f32.mrf.mxu1 }
 0x1db   :  { %5417 = vst [vmem:[#allocation46_spill] sm:$0xff] %v5165_v0  ;;  %v461_v0 = vadd.f32 %v4977_v11, %v394_v58 }
 0x1e1   :  { %v5167_v7 = vpop.f32.mrf.mxu2  ;;  %v5169_v53 = vpop.f32.mrf.mxu3 }
 0x1e2   :  { %5418 = vst [vmem:[#allocation47_spill] sm:$0xff] %v5167_v7  ;;  %v526_v7 = vadd.f32 %v4975_v10, %v459_v54  ;;  %v393_v54 = vadd.f32 %v387_v24, %v4951_v40 }
 0x1e3   :  { %5419 = vst [vmem:[#allocation48_spill] sm:$0xff] %v5169_v53  ;;  %v528_v53 = vadd.f32 %v4989_v25, %v461_v0  ;;  %v391_v25 = vadd.f32 %v387_v24, %v4943_v26 }
 0x1e4   :  { %v5171_v60 = vpop.f32.mrf.mxu1  ;;  %v593_v36 = vadd.f32 %v4995_v39, %v526_v7 }
 0x1e5   :  { %5420 = vst [vmem:[#allocation49_spill] sm:$0xff] %v5171_v60  ;;  %v595_v51 = vadd.f32 %v5007_v59, %v528_v53  ;;  %v458_v59 = vadd.f32 %v4949_v37, %v391_v25 }
 0x1e7   :  { %v662_v57 = vadd.f32 %v5027_v35, %v595_v51 }
 0x1e9   :  { %v735_v10 = vadd.f32 %v5041_v20, %v662_v57  ;;  %v5209_v20 = vpop.f32.mrf.mxu0 }
 0x1ea   :  { %v5177_v44 = vpop.f32.mrf.mxu2 }
 0x1eb   :  { %5422 = vst [vmem:[#allocation51_spill] sm:$0xff] %v5177_v44  ;;  %v5183_v30 = vpop.f32.mrf.mxu3  ;;  %v660_v44 = vadd.f32 %v5013_v1, %v593_v36  ;;  %v802_v39 = vadd.f32 %v5065_v18, %v735_v10  ;;  %v460_v1 = vadd.f32 %v4961_v55, %v393_v54  ;;  %v5425_v54 = vld [vmem:[#allocation36_spill] sm:$0xff] }
 0x1ed   :  { %v733_v11 = vadd.f32 %v5025_v22, %v660_v44  ;;  %v525_v22 = vadd.f32 %v4973_v5, %v458_v59  ;;  %v527_v26 = vadd.f32 %v4987_v23, %v460_v1  ;;  %v5428_v59 = vld [vmem:[#allocation34_spill] sm:$0xff]  ;;  %v5429_v1 = vld [vmem:[#allocation35_spill] sm:$0xff] }
 0x1ee   :  { %v5185_v60 = vpop.f32.mrf.mxu1 }
 0x1ef   :  { %v800_v0 = vadd.f32 %v5053_v63, %v733_v11  ;;  %v869_v63 = vadd.f32 %v5075_v41, %v802_v39  ;;  %v592_v18 = vadd.f32 %v4991_v29, %v525_v22  ;;  %v594_v37 = vadd.f32 %v5005_v45, %v527_v26  ;;  %v5427_v39 = vld [vmem:[#allocation32_spill] sm:$0xff]  ;;  %v5430_v26 = vld [vmem:[#allocation38_spill] sm:$0xff] }
 0x1f1   :  { %v867_v40 = vadd.f32 %v5059_v14, %v800_v0  ;;  %v936_v44 = vadd.f32 %v5089_v4, %v869_v63  ;;  %v659_v7 = vadd.f32 %v5001_v43, %v592_v18  ;;  %v661_v5 = vadd.f32 %v5009_v62, %v594_v37  ;;  %v1679_v36 = vpop.f32.mrf.mxu0  ;;  %v5426_v0 = vld [vmem:[#allocation39_spill] sm:$0xff] }
 0x1f3   :  { %v934_v55 = vadd.f32 %v5077_v46, %v867_v40  ;;  %v732_v23 = vadd.f32 %v5023_v19, %v659_v7  ;;  %v734_v17 = vadd.f32 %v5039_v42, %v661_v5  ;;  %v1003_v29 = vadd.f32 %v5113_v49, %v936_v44  ;;  %v5434_v7 = vld [vmem:[#allocation40_spill] sm:$0xff] }
 0x1f4   :  { %v5197_v58 = vpop.f32.mrf.mxu2 }
 0x1f5   :  { %v5203_v53 = vpop.f32.mrf.mxu3  ;;  %v1001_v14 = vadd.f32 %v5093_v12, %v934_v55  ;;  %v799_v45 = vadd.f32 %v5043_v48, %v732_v23  ;;  %v801_v41 = vadd.f32 %v5057_v8, %v734_v17  ;;  %v1076_v43 = vadd.f32 %v5115_v34, %v1003_v29  ;;  %v5433_v55 = vld [vmem:[#allocation37_spill] sm:$0xff]  ;;  %v5435_v23 = vld [vmem:[#allocation43_spill] sm:$0xff] }
 0x1f7   :  { %v1074_v46 = vadd.f32 %v5103_v6, %v1001_v14  ;;  %v866_v19 = vadd.f32 %v5055_v3, %v799_v45  ;;  %v868_v42 = vadd.f32 %v5071_v27, %v801_v41  ;;  %v1143_v8 = vadd.f32 %v5131_v2, %v1076_v43  ;;  %v5436_v14 = vld [vmem:[#allocation47_spill] sm:$0xff]  ;;  %v5437_v41 = vld [vmem:[#allocation42_spill] sm:$0xff] }
 0x1f8   :  { %v5205_v35 = vpop.f32.mrf.mxu1  ;;  %v5438_v43 = vld [vmem:[#allocation46_spill] sm:$0xff] }
 0x1f9   :  { %v933_v12 = vadd.f32 %v5073_v31, %v866_v19  ;;  %v935_v49 = vadd.f32 %v5087_v52, %v868_v42  ;;  %v1141_v48 = vadd.f32 %v5123_v15, %v1074_v46  ;;  %v1210_v24 = vadd.f32 %v5135_v56, %v1143_v8  ;;  %v5245_v15 = vpop.f32.mrf.mxu0  ;;  %v5424_v56 = vld [vmem:[#allocation33_spill] sm:$0xff]  ;;  %v5440_v8 = vld [vmem:[#allocation48_spill] sm:$0xff] }
 0x1fb   :  { %v1000_v6 = vadd.f32 %v5081_v47, %v933_v12  ;;  %v1002_v34 = vadd.f32 %v5091_v9, %v935_v49  ;;  %v1208_v51 = vadd.f32 %v5127_v50, %v1141_v48  ;;  %v1277_v9 = vadd.f32 %v5147_v13, %v1210_v24  ;;  %v5423_v50 = vld [vmem:[#allocation31_spill] sm:$0xff]  ;;  %v5432_v13 = vld [vmem:[#allocation45_spill] sm:$0xff]  ;;  %v5439_v49 = vld [vmem:[#allocation44_spill] sm:$0xff] }
 0x1fd   :  { %v1073_v27 = vadd.f32 %v5099_v16, %v1000_v6  ;;  %v1075_v57 = vadd.f32 %v5109_v33, %v1002_v34  ;;  %v1275_v47 = vadd.f32 %v5139_v61, %v1208_v51  ;;  %v1344_v33 = vadd.f32 %v5426_v0, %v1277_v9  ;;  %v5431_v61 = vld [vmem:[#allocation41_spill] sm:$0xff]  ;;  %v5441_v34 = vld [vmem:[#allocation50_spill] sm:$0xff] }
 0x1fe   :  { %v5221_v28 = vpop.f32.mrf.mxu2 }
 0x1ff   :  { %v5229_v4 = vpop.f32.mrf.mxu3  ;;  %v1140_v31 = vadd.f32 %v5105_v32, %v1073_v27  ;;  %v1142_v52 = vadd.f32 %v5121_v38, %v1075_v57  ;;  %v1342_v16 = vadd.f32 %v5425_v54, %v1275_v47  ;;  %v1417_v18 = vadd.f32 %v5432_v13, %v1344_v33  ;;  %v5442_v27 = vld [vmem:[#allocation49_spill] sm:$0xff]  ;;  %v2123_v33 = vld [vmem:[#allocation10 + $0xd0] sm:$0xff] }
 0x200   :  { %v2125_v54 = vld [vmem:[#allocation10 + $0xe0] sm:$0xff] }
 0x201   :  { %v1729_v62 = vpop.f32.mrf.mxu1  ;;  %v1207_v10 = vadd.f32 %v5423_v50, %v1140_v31  ;;  %v1209_v25 = vadd.f32 %v5424_v56, %v1142_v52  ;;  %v1415_v63 = vadd.f32 %v5431_v61, %v1342_v16  ;;  %v1484_v29 = vadd.f32 %v5436_v14, %v1417_v18  ;;  %v1819_v42 = vpop.f32.mrf.mxu0  ;;  %v5443_v52 = vld [vmem:[#allocation51_spill] sm:$0xff]  ;;  %v2113_v14 = vld [vmem:[#allocation10 + $0x80] sm:$0xff] }
 0x202   :  { %v2119_v61 = vld [vmem:[#allocation10 + $0xb0] sm:$0xff] }
 0x203   :  { %v1274_v32 = vadd.f32 %v5427_v39, %v1207_v10  ;;  %v1276_v38 = vadd.f32 %v5428_v59, %v1209_v25  ;;  %v1482_v17 = vadd.f32 %v5435_v23, %v1415_v63  ;;  %v1551_v24 = vadd.f32 %v5187_v21, %v1484_v29  ;;  %v2127_v25 = vld [vmem:[#allocation10 + $0xf0] sm:$0xff]  ;;  %v2133_v23 = vld [vmem:[#allocation10 + $0x120] sm:$0xff] }
 0x204   :  { %2148 = vmatpush.msra.mxu1 %v2127_v25  ;;  %v2131_v29 = vld [vmem:[#allocation10 + $0x110] sm:$0xff]  ;;  %v2101_v25 = vld [vmem:[#allocation10 + $0x20] sm:$0xff] }
 0x205   :  { %v1341_v22 = vadd.f32 %v5429_v1, %v1274_v32  ;;  %v1343_v40 = vadd.f32 %v5430_v26, %v1276_v38  ;;  %v1549_v51 = vadd.f32 %v5441_v34, %v1482_v17  ;;  %v1618_v9 = vadd.f32 %v5197_v58, %v1551_v24  ;;  %v2143_v32 = vld [vmem:[#allocation10 + $0x170] sm:$0xff]  ;;  %v2126_v34 = vld [vmem:[#allocation10 + $0xe8] sm:$0xff] }
 0x206   :  { %2149 = vmatpush.msra.mxu1 %v2125_v54  ;;  %2176 = vmatpush.msra.mxu2 %v2143_v32  ;;  %v2262_v54 = vld [vmem:[#allocation10 + $0x250] sm:$0xff]  ;;  %v2097_v32 = vld [vmem:[#allocation10] sm:$0xff] }
 0x207   :  { %v1414_v44 = vadd.f32 %v5433_v55, %v1341_v22  ;;  %v1416_v5 = vadd.f32 %v5434_v7, %v1343_v40  ;;  %v1616_v47 = vadd.f32 %v5443_v52, %v1549_v51  ;;  %v2115_v7 = vld [vmem:[#allocation10 + $0x90] sm:$0xff] }
 0x208   :  { %v1752_v3 = vpop.f32.mrf.mxu2  ;;  %v1796_v11 = vpop.f32.mrf.mxu3  ;;  %2150 = vmatpush.msra.mxu1 %v2123_v33  ;;  %v2107_v51 = vld [vmem:[#allocation10 + $0x50] sm:$0xff]  ;;  %v2260_v33 = vld [vmem:[#allocation10 + $0x240] sm:$0xff] }
 0x209   :  { %v1481_v46 = vadd.f32 %v5437_v41, %v1414_v44  ;;  %v1483_v19 = vadd.f32 %v5438_v43, %v1416_v5  ;;  %v1683_v39 = vadd.f32 %v5209_v20, %v1616_v47  ;;  %v1950_v59 = vpop.f32.mrf.mxu0  ;;  %v2137_v20 = vld [vmem:[#allocation10 + $0x140] sm:$0xff]  ;;  %v2031_v41 = vld [vmem:[#allocation8] sm:$0xff] }
 0x20a   :  { %v2122_v47 = vld [vmem:[#allocation10 + $0xc8] sm:$0xff] }
 0x20b   :  { %v1860_v2 = vpop.f32.mrf.mxu1  ;;  %v1548_v48 = vadd.f32 %v5439_v49, %v1481_v46  ;;  %v1550_v6 = vadd.f32 %v5440_v8, %v1483_v19  ;;  %v1756_v1 = vadd.f32 %v5221_v28, %v1683_v39  ;;  %v2135_v28 = vld [vmem:[#allocation10 + $0x130] sm:$0xff]  ;;  %v2109_v49 = vld [vmem:[#allocation10 + $0x60] sm:$0xff]  ;;  %v2116_v39 = vld [vmem:[#allocation10 + $0x98] sm:$0xff] }
 0x20c   :  { %v2111_v46 = vld [vmem:[#allocation10 + $0x70] sm:$0xff] }
 0x20d   :  { %v1615_v57 = vadd.f32 %v5442_v27, %v1548_v48  ;;  %v1617_v31 = vadd.f32 %v5185_v60, %v1550_v6  ;;  %v1685_v60 = vadd.f32 %v1679_v36, %v1618_v9  ;;  %v2266_v48 = vld [vmem:[#allocation10 + $0x270] sm:$0xff]  ;;  %v2124_v27 = vld [vmem:[#allocation10 + $0xd8] sm:$0xff] }
 0x20e   :  { %v2032_v9 = vld [vmem:[#allocation8 + $0x8] sm:$0xff] }
 0x20f   :  { %v1682_v10 = vadd.f32 %v5183_v30, %v1615_v57  ;;  %v1684_v56 = vadd.f32 %v5203_v53, %v1617_v31  ;;  %v2121_v30 = vld [vmem:[#allocation10 + $0xc0] sm:$0xff]  ;;  %v1758_v22 = vadd.f32 %v1752_v3, %v1685_v60  ;;  %v2140_v60 = vld [vmem:[#allocation10 + $0x158] sm:$0xff] }
 0x210   :  { %v2141_v53 = vld [vmem:[#allocation10 + $0x160] sm:$0xff]  ;;  %2151 = vmatpush.msra.mxu1 %v2121_v30  ;;  %v2138_v30 = vld [vmem:[#allocation10 + $0x148] sm:$0xff] }
 0x211   :  { %v5259_v37 = vpop.f32.mrf.mxu2  ;;  %v1755_v0 = vadd.f32 %v5205_v35, %v1682_v10  ;;  %v1757_v21 = vadd.f32 %v1729_v62, %v1684_v56  ;;  %v2139_v35 = vld [vmem:[#allocation10 + $0x150] sm:$0xff]  ;;  %2177 = vmatpush.msra.mxu2 %v2141_v53  ;;  %v1825_v18 = vadd.f32 %v1819_v42, %v1758_v22  ;;  %v2128_v42 = vld [vmem:[#allocation10 + $0xf8] sm:$0xff]  ;;  %v2264_v57 = vld [vmem:[#allocation10 + $0x260] sm:$0xff] }
 0x212   :  { %v1927_v12 = vpop.f32.mrf.mxu3  ;;  %2152 = vmatpush.msra.mxu1 %v2119_v61  ;;  %v2105_v31 = vld [vmem:[#allocation10 + $0x40] sm:$0xff]  ;;  %v2120_v10 = vld [vmem:[#allocation10 + $0xb8] sm:$0xff]  ;;  %v2265_v22 = vld [vmem:[#allocation10 + $0x268] sm:$0xff] }
 0x213   :  { %v1863_v45 = vpop.f32.mrf.mxu1  ;;  %v1822_v58 = vadd.f32 %v5229_v4, %v1755_v0  ;;  %v1824_v38 = vadd.f32 %v1796_v11, %v1757_v21  ;;  %v2117_v4 = vld [vmem:[#allocation10 + $0xa0] sm:$0xff]  ;;  %2178 = vmatpush.msra.mxu2 %v2139_v35  ;;  %v1823_v11 = vadd.f32 %v5245_v15, %v1756_v1  ;;  %v2144_v56 = vld [vmem:[#allocation10 + $0x178] sm:$0xff]  ;;  %v2142_v0 = vld [vmem:[#allocation10 + $0x168] sm:$0xff] }
 0x214   :  { %2153 = vmatpush.msra.mxu1 %v2117_v4  ;;  %v2099_v21 = vld [vmem:[#allocation10 + $0x10] sm:$0xff]  ;;  %v2112_v53 = vld [vmem:[#allocation10 + $0x78] sm:$0xff]  ;;  %v2256_v1 = vld [vmem:[#allocation10 + $0x220] sm:$0xff] }
 0x215   :  { %v1889_v62 = vadd.f32 %v1860_v2, %v1822_v58  ;;  %v1891_v40 = vadd.f32 %v1863_v45, %v1824_v38  ;;  %2179 = vmatpush.msra.mxu2 %v2137_v20  ;;  %v1890_v2 = vadd.f32 %v5259_v37, %v1823_v11  ;;  %v1953_v45 = vpop.f32.mrf.mxu0  ;;  %v2129_v37 = vld [vmem:[#allocation10 + $0x100] sm:$0xff]  ;;  %v2114_v58 = vld [vmem:[#allocation10 + $0x88] sm:$0xff]  ;;  %v2267_v38 = vld [vmem:[#allocation10 + $0x278] sm:$0xff] }
 0x216   :  { %2154 = vmatpush.msra.mxu1 %v2115_v7  ;;  %v2110_v35 = vld [vmem:[#allocation10 + $0x68] sm:$0xff]  ;;  %v2108_v20 = vld [vmem:[#allocation10 + $0x58] sm:$0xff]  ;;  %v2250_v11 = vld [vmem:[#allocation10 + $0x1f0] sm:$0xff] }
 0x217   :  { %v1956_v36 = vadd.f32 %v1927_v12, %v1889_v62  ;;  %2180 = vmatpush.msra.mxu2 %v2135_v28  ;;  %v1957_v43 = vadd.f32 %v1950_v59, %v1890_v2  ;;  %v2258_v59 = vld [vmem:[#allocation10 + $0x230] sm:$0xff]  ;;  %v2134_v61 = vld [vmem:[#allocation10 + $0x128] sm:$0xff]  ;;  %v2104_v28 = vld [vmem:[#allocation10 + $0x38] sm:$0xff] }
 0x218   :  { %2155 = vmatpush.msra.mxu1 %v2113_v14  ;;  %v2254_v62 = vld [vmem:[#allocation10 + $0x210] sm:$0xff]  ;;  %v2106_v4 = vld [vmem:[#allocation10 + $0x48] sm:$0xff]  ;;  %v2248_v7 = vld [vmem:[#allocation10 + $0x1e0] sm:$0xff] }
 0x219   :  { %2181 = vmatpush.msra.mxu2 %v2133_v23  ;;  %v2102_v2 = vld [vmem:[#allocation10 + $0x28] sm:$0xff]  ;;  %v2255_v23 = vld [vmem:[#allocation10 + $0x218] sm:$0xff] }
 0x21a   :  { %v1886_v50 = vpop.f32.mrf.mxu2  ;;  %v1930_v26 = vpop.f32.mrf.mxu3  ;;  %2156 = vmatpush.msra.mxu1 %v2111_v46  ;;  %v2100_v14 = vld [vmem:[#allocation10 + $0x18] sm:$0xff] }
 0x21b   :  { %v1958_v63 = vadd.f32 %v1930_v26, %v1891_v40  ;;  %v1892_v5 = vadd.f32 %v1886_v50, %v1825_v18  ;;  %2182 = vmatpush.msra.mxu2 %v2131_v29  ;;  %v2103_v50 = vld [vmem:[#allocation10 + $0x30] sm:$0xff]  ;;  %v2136_v26 = vld [vmem:[#allocation10 + $0x138] sm:$0xff] }
 0x21c   :  { %v1994_v16 = vpop.f32.mrf.mxu1  ;;  %2157 = vmatpush.msra.mxu1 %v2109_v49  ;;  %v2263_v40 = vld [vmem:[#allocation10 + $0x258] sm:$0xff]  ;;  %v2278_v29 = vld [vmem:[#allocation10 + $0x2d0] sm:$0xff] }
 0x21d   :  { %v2023_v3 = vadd.f32 %v1994_v16, %v1956_v36  ;;  %v1959_v19 = vadd.f32 %v1953_v45, %v1892_v5  ;;  %2183 = vmatpush.msra.mxu2 %v2129_v37  ;;  %v2118_v16 = vld [vmem:[#allocation10 + $0xa8] sm:$0xff]  ;;  %v2252_v36 = vld [vmem:[#allocation10 + $0x200] sm:$0xff]  ;;  %v2259_v18 = vld [vmem:[#allocation10 + $0x238] sm:$0xff] }
 0x21e   :  { %2158 = vmatpush.msra.mxu1 %v2107_v51  ;;  %v2280_v5 = vld [vmem:[#allocation10 + $0x2e0] sm:$0xff]  ;;  %v2253_v45 = vld [vmem:[#allocation10 + $0x208] sm:$0xff]  ;;  %v2251_v46 = vld [vmem:[#allocation10 + $0x1f8] sm:$0xff] }
 0x21f   :  { %v2027_v15 = vmax.f32 %v2023_v3, 0.0  ;;  %2284 = vmatpush.msrb.mxu2 %v2266_v48  ;;  %v2282_v3 = vld [vmem:[#allocation10 + $0x2f0] sm:$0xff]  ;;  %v2249_v37 = vld [vmem:[#allocation10 + $0x1e8] sm:$0xff]  ;;  %v2272_v51 = vld [vmem:[#allocation10 + $0x2a0] sm:$0xff] }
 0x220   :  { %2159 = vmatpush.msra.mxu1 %v2105_v31  ;;  %v2242_v49 = vld [vmem:[#allocation10 + $0x1b0] sm:$0xff] }
 0x221   :  { %2285 = vmatpush.msrb.mxu2 %v2264_v57  ;;  %v2274_v48 = vld [vmem:[#allocation10 + $0x2b0] sm:$0xff] }
 0x222   :  { %v2017_v13 = vpop.f32.mrf.mxu2  ;;  %2160 = vmatpush.msra.mxu1 %v2103_v50  ;;  %v2238_v57 = vld [vmem:[#allocation10 + $0x190] sm:$0xff]  ;;  %v2273_v50 = vld [vmem:[#allocation10 + $0x2a8] sm:$0xff] }
 0x223   :  { %v2024_v8 = vadd.f32 %v2017_v13, %v1957_v43  ;;  %2286 = vmatpush.msrb.mxu2 %v2262_v54  ;;  %v2132_v13 = vld [vmem:[#allocation10 + $0x118] sm:$0xff]  ;;  %v2270_v31 = vld [vmem:[#allocation10 + $0x290] sm:$0xff]  ;;  %v2268_v54 = vld [vmem:[#allocation10 + $0x280] sm:$0xff] }
 0x224   :  { %v1997_v55 = vpop.f32.mrf.mxu1  ;;  %2161 = vmatpush.msra.mxu1 %v2101_v25  ;;  %v2283_v43 = vld [vmem:[#allocation10 + $0x2f8] sm:$0xff]  ;;  %v2236_v25 = vld [vmem:[#allocation10 + $0x180] sm:$0xff] }
 0x225   :  { %v2025_v44 = vadd.f32 %v1997_v55, %v1958_v63  ;;  %v2028_v52 = vmax.f32 %v2024_v8, 0.0  ;;  %2287 = vmatpush.msrb.mxu2 %v2260_v33  ;;  %v2261_v63 = vld [vmem:[#allocation10 + $0x248] sm:$0xff]  ;;  %v2247_v8 = vld [vmem:[#allocation10 + $0x1d8] sm:$0xff]  ;;  %v2397_v33 = vld [vmem:[#allocation10 + $0x3f0] sm:$0xff] }
 0x226   :  { %2162 = vmatpush.msra.mxu1 %v2099_v21  ;;  %v2130_v55 = vld [vmem:[#allocation10 + $0x108] sm:$0xff] }
 0x227   :  { %v2029_v17 = vmax.f32 %v2025_v44, 0.0  ;;  %2288 = vmatpush.msrb.mxu2 %v2258_v59  ;;  %v2257_v44 = vld [vmem:[#allocation10 + $0x228] sm:$0xff]  ;;  %v2414_v59 = vld [vmem:[#allocation10 + $0x478] sm:$0xff] }
 0x228   :  { %2163 = vmatpush.msra.mxu1 %v2097_v32  ;;  %v2398_v32 = vld [vmem:[#allocation10 + $0x3f8] sm:$0xff] }
 0x229   :  { %2058 = vmatpush.msrb.mxu3 %v2029_v17  ;;  %2289 = vmatpush.msrb.mxu2 %v2256_v1  ;;  %v2246_v17 = vld [vmem:[#allocation10 + $0x1d0] sm:$0xff] }
 0x22a   :  { %v2020_v12 = vpop.f32.mrf.mxu2  ;;  %2324 = vmatpush.msrb.mxu1 %v2267_v38  ;;  %v2411_v38 = vld [vmem:[#allocation10 + $0x460] sm:$0xff]  ;;  %v2393_v1 = vld [vmem:[#allocation10 + $0x3d0] sm:$0xff] }
 0x22b   :  { %2059 = vmatpush.msrb.mxu3 %v2027_v15  ;;  %v2026_v6 = vadd.f32 %v2020_v12, %v1959_v19  ;;  %2290 = vmatpush.msrb.mxu2 %v2254_v62  ;;  %v2033_v15 = vld [vmem:[#allocation8 + $0x10] sm:$0xff]  ;;  %v2244_v19 = vld [vmem:[#allocation10 + $0x1c0] sm:$0xff]  ;;  %v2281_v12 = vld [vmem:[#allocation10 + $0x2e8] sm:$0xff] }
 0x22c   :  { %4261 = vmatmul.msk.f32.vlgmr.msrb.gmra.mxu3 %vm2034_vm2, %v2031_v41  ;;  %2325 = vmatpush.msrb.mxu1 %v2265_v22  ;;  %v2409_v22 = vld [vmem:[#allocation10 + $0x450] sm:$0xff]  ;;  %v2391_v62 = vld [vmem:[#allocation10 + $0x3c0] sm:$0xff] }
 0x22d   :  { %2188 = vmatpush.msra.mxu3 %v2128_v42  ;;  %v2030_v24 = vmax.f32 %v2026_v6, 0.0  ;;  %2291 = vmatpush.msrb.mxu2 %v2252_v36  ;;  %v2276_v42 = vld [vmem:[#allocation10 + $0x2c0] sm:$0xff]  ;;  %v2279_v6 = vld [vmem:[#allocation10 + $0x2d8] sm:$0xff]  ;;  %v2389_v36 = vld [vmem:[#allocation10 + $0x3b0] sm:$0xff] }
 0x22e   :  { %2326 = vmatpush.msrb.mxu1 %v2263_v40  ;;  %v2407_v40 = vld [vmem:[#allocation10 + $0x440] sm:$0xff] }
 0x22f   :  { %2189 = vmatpush.msra.mxu3 %v2126_v34  ;;  %2084 = vmatpush.msra.mxu0 %v2030_v24  ;;  %v2240_v34 = vld [vmem:[#allocation10 + $0x1a0] sm:$0xff]  ;;  %v2245_v24 = vld [vmem:[#allocation10 + $0x1c8] sm:$0xff] }
 0x230   :  { %2327 = vmatpush.msrb.mxu1 %v2261_v63  ;;  %2292 = vmatpush.msrb.mxu2 %v2250_v11  ;;  %v2405_v63 = vld [vmem:[#allocation10 + $0x430] sm:$0xff]  ;;  %v2387_v11 = vld [vmem:[#allocation10 + $0x3a0] sm:$0xff] }
 0x231   :  { %2190 = vmatpush.msra.mxu3 %v2124_v27  ;;  %2085 = vmatpush.msra.mxu0 %v2028_v52  ;;  %v2277_v27 = vld [vmem:[#allocation10 + $0x2c8] sm:$0xff]  ;;  %v2243_v52 = vld [vmem:[#allocation10 + $0x1b8] sm:$0xff] }
 0x232   :  { %4264 = vmatmul.msk.f32.vlgmr.msra.gmra.mxu0 %vm2034_vm2, %v2031_v41  ;;  %2328 = vmatpush.msrb.mxu1 %v2259_v18  ;;  %v2098_v41 = vld [vmem:[#allocation10 + $0x8] sm:$0xff]  ;;  %v2403_v18 = vld [vmem:[#allocation10 + $0x420] sm:$0xff] }
 0x233   :  { %2191 = vmatpush.msra.mxu3 %v2122_v47  ;;  %2216 = vmatpush.msrb.mxu0 %v2144_v56  ;;  %v2275_v47 = vld [vmem:[#allocation10 + $0x2b8] sm:$0xff] }
 0x234   :  { %4262 = vmatmul.msk.f32.gmra.mxu3 %vm2034_vm2, %v2032_v9  ;;  %2329 = vmatpush.msrb.mxu1 %v2257_v44  ;;  %v2271_v56 = vld [vmem:[#allocation10 + $0x298] sm:$0xff]  ;;  %v2401_v44 = vld [vmem:[#allocation10 + $0x410] sm:$0xff] }
 0x235   :  { %2192 = vmatpush.msra.mxu3 %v2120_v10  ;;  %2217 = vmatpush.msrb.mxu0 %v2142_v0  ;;  %v2239_v10 = vld [vmem:[#allocation10 + $0x198] sm:$0xff]  ;;  %v2269_v0 = vld [vmem:[#allocation10 + $0x288] sm:$0xff] }
 0x236   :  { %2293 = vmatpush.msrb.mxu2 %v2248_v7  ;;  %2330 = vmatpush.msrb.mxu1 %v2255_v23  ;;  %v2386_v7 = vld [vmem:[#allocation10 + $0x398] sm:$0xff]  ;;  %v2399_v23 = vld [vmem:[#allocation10 + $0x400] sm:$0xff] }
 0x237   :  { %2193 = vmatpush.msra.mxu3 %v2118_v16  ;;  %2218 = vmatpush.msrb.mxu0 %v2140_v60  ;;  %v2237_v16 = vld [vmem:[#allocation10 + $0x188] sm:$0xff] }
 0x238   :  { %2294 = vmatpush.msrb.mxu2 %v2246_v17  ;;  %2331 = vmatpush.msrb.mxu1 %v2253_v45  ;;  %v2384_v17 = vld [vmem:[#allocation10 + $0x388] sm:$0xff]  ;;  %v2529_v45 = vld [vmem:[#allocation10 + $0x578] sm:$0xff] }
 0x239   :  { %2194 = vmatpush.msra.mxu3 %v2116_v39  ;;  %2219 = vmatpush.msrb.mxu0 %v2138_v30  ;;  %v2413_v39 = vld [vmem:[#allocation10 + $0x470] sm:$0xff]  ;;  %v2396_v30 = vld [vmem:[#allocation10 + $0x3e8] sm:$0xff] }
 0x23a   :  { %4265 = vmatmul.msk.f32.gmra.mxu0 %vm2034_vm2, %v2032_v9  ;;  %2332 = vmatpush.msrb.mxu1 %v2251_v46  ;;  %v2241_v9 = vld [vmem:[#allocation10 + $0x1a8] sm:$0xff]  ;;  %v2526_v46 = vld [vmem:[#allocation10 + $0x560] sm:$0xff] }
 0x23b   :  { %2195 = vmatpush.msra.mxu3 %v2114_v58  ;;  %2220 = vmatpush.msrb.mxu0 %v2136_v26  ;;  %v2395_v58 = vld [vmem:[#allocation10 + $0x3e0] sm:$0xff]  ;;  %v2394_v26 = vld [vmem:[#allocation10 + $0x3d8] sm:$0xff] }
 0x23c   :  { %4263 = vmatmul.msk.f32.gmra.mxu3 %vm2034_vm2, %v2033_v15  ;;  %2295 = vmatpush.msrb.mxu2 %v2244_v19  ;;  %v2379_v19 = vld [vmem:[#allocation10 + $0x360] sm:$0xff] }
 0x23d   :  { %2196 = vmatpush.msra.mxu3 %v2112_v53  ;;  %2221 = vmatpush.msrb.mxu0 %v2134_v61  ;;  %v2412_v53 = vld [vmem:[#allocation10 + $0x468] sm:$0xff] }
 0x23e   :  { %2333 = vmatpush.msrb.mxu1 %v2249_v37  ;;  %2296 = vmatpush.msrb.mxu2 %v2242_v49  ;;  %v2392_v61 = vld [vmem:[#allocation10 + $0x3c8] sm:$0xff]  ;;  %v2524_v37 = vld [vmem:[#allocation10 + $0x550] sm:$0xff] }
 0x23f   :  { %2197 = vmatpush.msra.mxu3 %v2110_v35  ;;  %2222 = vmatpush.msrb.mxu0 %v2132_v13  ;;  %v2410_v35 = vld [vmem:[#allocation10 + $0x458] sm:$0xff]  ;;  %v2377_v49 = vld [vmem:[#allocation10 + $0x350] sm:$0xff] }
 0x240   :  { %2334 = vmatpush.msrb.mxu1 %v2247_v8  ;;  %2297 = vmatpush.msrb.mxu2 %v2240_v34  ;;  %v2390_v13 = vld [vmem:[#allocation10 + $0x3b8] sm:$0xff]  ;;  %v2522_v8 = vld [vmem:[#allocation10 + $0x540] sm:$0xff] }
 0x241   :  { %2198 = vmatpush.msra.mxu3 %v2108_v20  ;;  %2223 = vmatpush.msrb.mxu0 %v2130_v55  ;;  %v2408_v20 = vld [vmem:[#allocation10 + $0x448] sm:$0xff]  ;;  %v2375_v34 = vld [vmem:[#allocation10 + $0x340] sm:$0xff] }
 0x242   :  { %4266 = vmatmul.msk.f32.gmra.mxu0 %vm2034_vm2, %v2033_v15  ;;  %2335 = vmatpush.msrb.mxu1 %v2245_v24  ;;  %v2388_v55 = vld [vmem:[#allocation10 + $0x3a8] sm:$0xff]  ;;  %v2381_v15 = vld [vmem:[#allocation10 + $0x370] sm:$0xff] }
 0x243   :  { %2199 = vmatpush.msra.mxu3 %v2106_v4  ;;  %2312 = vmatpush.msra.mxu0 %v2282_v3  ;;  %v2406_v4 = vld [vmem:[#allocation10 + $0x438] sm:$0xff]  ;;  %v2385_v3 = vld [vmem:[#allocation10 + $0x390] sm:$0xff] }
 0x244   :  { %2298 = vmatpush.msrb.mxu2 %v2238_v57  ;;  %2336 = vmatpush.msrb.mxu1 %v2243_v52  ;;  %v2520_v24 = vld [vmem:[#allocation10 + $0x530] sm:$0xff]  ;;  %v2518_v52 = vld [vmem:[#allocation10 + $0x520] sm:$0xff] }
 0x245   :  { %2200 = vmatpush.msra.mxu3 %v2104_v28  ;;  %2313 = vmatpush.msra.mxu0 %v2280_v5  ;;  %v2404_v28 = vld [vmem:[#allocation10 + $0x428] sm:$0xff]  ;;  %v2383_v5 = vld [vmem:[#allocation10 + $0x380] sm:$0xff]  ;;  %v2373_v57 = vld [vmem:[#allocation10 + $0x330] sm:$0xff] }
 0x246   :  { %2337 = vmatpush.msrb.mxu1 %v2241_v9  ;;  %2299 = vmatpush.msrb.mxu2 %v2236_v25  ;;  %v2371_v9 = vld [vmem:[#allocation10 + $0x320] sm:$0xff]  ;;  %v2369_v25 = vld [vmem:[#allocation10 + $0x310] sm:$0xff] }
 0x247   :  { %2201 = vmatpush.msra.mxu3 %v2102_v2  ;;  %2314 = vmatpush.msra.mxu0 %v2278_v29  ;;  %v2402_v2 = vld [vmem:[#allocation10 + $0x418] sm:$0xff]  ;;  %v2528_v29 = vld [vmem:[#allocation10 + $0x570] sm:$0xff] }
 0x248   :  { %2338 = vmatpush.msrb.mxu1 %v2239_v10  ;;  %v2516_v10 = vld [vmem:[#allocation10 + $0x510] sm:$0xff] }
 0x249   :  { %2202 = vmatpush.msra.mxu3 %v2100_v14  ;;  %2315 = vmatpush.msra.mxu0 %v2276_v42  ;;  %v2400_v14 = vld [vmem:[#allocation10 + $0x408] sm:$0xff] }
 0x24a   :  { %2339 = vmatpush.msrb.mxu1 %v2237_v16  ;;  %v2380_v42 = vld [vmem:[#allocation10 + $0x368] sm:$0xff]  ;;  %v2514_v16 = vld [vmem:[#allocation10 + $0x500] sm:$0xff] }
 0x24b   :  { %2203 = vmatpush.msra.mxu3 %v2098_v41  ;;  %2316 = vmatpush.msra.mxu0 %v2274_v48  ;;  %v2382_v41 = vld [vmem:[#allocation10 + $0x378] sm:$0xff] }
 0x24c   :  { %v2378_v48 = vld [vmem:[#allocation10 + $0x358] sm:$0xff] }
 0x24d   :  { %2352 = vmatpush.msrb.mxu3 %v2283_v43  ;;  %2317 = vmatpush.msra.mxu0 %v2272_v51  ;;  %v2527_v43 = vld [vmem:[#allocation10 + $0x568] sm:$0xff] }
 0x24e   :  { %v2376_v51 = vld [vmem:[#allocation10 + $0x348] sm:$0xff] }
 0x24f   :  { %2353 = vmatpush.msrb.mxu3 %v2281_v12  ;;  %2318 = vmatpush.msra.mxu0 %v2270_v31  ;;  %v2525_v12 = vld [vmem:[#allocation10 + $0x558] sm:$0xff] }
 0x250   :  { %v2374_v31 = vld [vmem:[#allocation10 + $0x338] sm:$0xff] }
 0x251   :  { %2354 = vmatpush.msrb.mxu3 %v2279_v6  ;;  %2319 = vmatpush.msra.mxu0 %v2268_v54  ;;  %v2523_v6 = vld [vmem:[#allocation10 + $0x548] sm:$0xff]  ;;  %v2370_v54 = vld [vmem:[#allocation10 + $0x318] sm:$0xff] }
 0x253   :  { %2355 = vmatpush.msrb.mxu3 %v2277_v27  ;;  %v2521_v27 = vld [vmem:[#allocation10 + $0x538] sm:$0xff] }
 0x255   :  { %2356 = vmatpush.msrb.mxu3 %v2275_v47  ;;  %v2519_v47 = vld [vmem:[#allocation10 + $0x528] sm:$0xff] }
 0x257   :  { %2357 = vmatpush.msrb.mxu3 %v2273_v50  ;;  %v2372_v50 = vld [vmem:[#allocation10 + $0x328] sm:$0xff] }
 0x259   :  { %2358 = vmatpush.msrb.mxu3 %v2271_v56  ;;  %v2517_v56 = vld [vmem:[#allocation10 + $0x518] sm:$0xff] }
 0x25b   :  { %2359 = vmatpush.msrb.mxu3 %v2269_v0  ;;  %v2515_v0 = vld [vmem:[#allocation10 + $0x508] sm:$0xff] }
 0x2af   :  { %v5289_v21 = vpop.f32.mrf.mxu3  ;;  %v5291_v60 = vpop.f32.mrf.mxu0 }
 0x2b0   :  { %2164 = vmatmul.f32.vlgmr.msra.gmra.mxu1 %v5289_v21  ;;  %2204 = vmatmul.f32.vlgmr.msra.gmra.mxu3 %v5289_v21 }
 0x2b1   :  { %4267 = vmatmul.msk.f32.vlgmr.msra.gmra.mxu2 %vm333_vm1, %v5291_v60  ;;  %4268 = vmatmul.msk.f32.vlgmr.msrb.gmra.mxu0 %vm333_vm1, %v5291_v60 }
 0x2b2   :  { %2415 = vmatpush.msrb.mxu0 %v2397_v33  ;;  %2443 = vmatpush.msra.mxu2 %v2413_v39  ;;  %v2367_v33 = vld [vmem:[#allocation10 + $0x300] sm:$0xff]  ;;  %v2368_v39 = vld [vmem:[#allocation10 + $0x308] sm:$0xff] }
 0x2b3   :  { %2455 = vmatpush.msra.mxu3 %v2398_v32  ;;  %2483 = vmatpush.msra.mxu1 %v2414_v59  ;;  %v2544_v32 = vld [vmem:[#allocation10 + $0x5f0] sm:$0xff]  ;;  %v2513_v59 = vld [vmem:[#allocation10 + $0x4f8] sm:$0xff] }
 0x2b4   :  { %2416 = vmatpush.msrb.mxu0 %v2395_v58  ;;  %2444 = vmatpush.msra.mxu2 %v2411_v38  ;;  %v2545_v58 = vld [vmem:[#allocation10 + $0x5f8] sm:$0xff]  ;;  %v2510_v38 = vld [vmem:[#allocation10 + $0x4e0] sm:$0xff] }
 0x2b5   :  { %2456 = vmatpush.msra.mxu3 %v2396_v30  ;;  %2484 = vmatpush.msra.mxu1 %v2412_v53  ;;  %v2542_v30 = vld [vmem:[#allocation10 + $0x5e0] sm:$0xff]  ;;  %v2511_v53 = vld [vmem:[#allocation10 + $0x4e8] sm:$0xff] }
 0x2b6   :  { %2417 = vmatpush.msrb.mxu0 %v2393_v1  ;;  %2445 = vmatpush.msra.mxu2 %v2409_v22  ;;  %v2543_v1 = vld [vmem:[#allocation10 + $0x5e8] sm:$0xff]  ;;  %v2508_v22 = vld [vmem:[#allocation10 + $0x4d0] sm:$0xff] }
 0x2b7   :  { %2457 = vmatpush.msra.mxu3 %v2394_v26  ;;  %2485 = vmatpush.msra.mxu1 %v2410_v35  ;;  %v2540_v26 = vld [vmem:[#allocation10 + $0x5d0] sm:$0xff]  ;;  %v2509_v35 = vld [vmem:[#allocation10 + $0x4d8] sm:$0xff] }
 0x2b8   :  { %2418 = vmatpush.msrb.mxu0 %v2391_v62  ;;  %2446 = vmatpush.msra.mxu2 %v2407_v40  ;;  %v2541_v62 = vld [vmem:[#allocation10 + $0x5d8] sm:$0xff]  ;;  %v2506_v40 = vld [vmem:[#allocation10 + $0x4c0] sm:$0xff] }
 0x2b9   :  { %2458 = vmatpush.msra.mxu3 %v2392_v61  ;;  %2486 = vmatpush.msra.mxu1 %v2408_v20  ;;  %v2538_v61 = vld [vmem:[#allocation10 + $0x5c0] sm:$0xff]  ;;  %v2539_v20 = vld [vmem:[#allocation10 + $0x5c8] sm:$0xff] }
 0x2ba   :  { %2300 = vmatmul.f32.vlgmr.msrb.gmra.mxu2 %v5289_v21  ;;  %4269 = vmatmul.msk.f32.vlgmr.msra.gmra.mxu0 %vm333_vm1, %v5291_v60 }
 0x2bb   :  { %2340 = vmatmul.f32.vlgmr.msrb.gmra.mxu1 %v5289_v21  ;;  %4270 = vmatmul.msk.f32.vlgmr.msrb.gmra.mxu3 %vm333_vm1, %v5291_v60 }
 0x2bc   :  { %2419 = vmatpush.msrb.mxu0 %v2389_v36  ;;  %2447 = vmatpush.msra.mxu2 %v2405_v63  ;;  %v2504_v36 = vld [vmem:[#allocation10 + $0x4b0] sm:$0xff] }
 0x2bd   :  { %2459 = vmatpush.msra.mxu3 %v2390_v13  ;;  %2487 = vmatpush.msra.mxu1 %v2406_v4  ;;  %v2536_v63 = vld [vmem:[#allocation10 + $0x5b0] sm:$0xff]  ;;  %v2505_v13 = vld [vmem:[#allocation10 + $0x4b8] sm:$0xff] }
 0x2be   :  { %2420 = vmatpush.msrb.mxu0 %v2387_v11  ;;  %2448 = vmatpush.msra.mxu2 %v2403_v18  ;;  %v2537_v4 = vld [vmem:[#allocation10 + $0x5b8] sm:$0xff]  ;;  %v2502_v11 = vld [vmem:[#allocation10 + $0x4a0] sm:$0xff] }
 0x2bf   :  { %2460 = vmatpush.msra.mxu3 %v2388_v55  ;;  %2488 = vmatpush.msra.mxu1 %v2404_v28  ;;  %v2534_v18 = vld [vmem:[#allocation10 + $0x5a0] sm:$0xff]  ;;  %v2503_v55 = vld [vmem:[#allocation10 + $0x4a8] sm:$0xff] }
 0x2c0   :  { %2421 = vmatpush.msrb.mxu0 %v2385_v3  ;;  %2449 = vmatpush.msra.mxu2 %v2401_v44  ;;  %v2535_v28 = vld [vmem:[#allocation10 + $0x5a8] sm:$0xff]  ;;  %v2500_v3 = vld [vmem:[#allocation10 + $0x490] sm:$0xff] }
 0x2c1   :  { %2461 = vmatpush.msra.mxu3 %v2386_v7  ;;  %2489 = vmatpush.msra.mxu1 %v2402_v2  ;;  %v2532_v44 = vld [vmem:[#allocation10 + $0x590] sm:$0xff]  ;;  %v2501_v7 = vld [vmem:[#allocation10 + $0x498] sm:$0xff] }
 0x2c2   :  { %2422 = vmatpush.msrb.mxu0 %v2383_v5  ;;  %2450 = vmatpush.msra.mxu2 %v2399_v23  ;;  %v2533_v2 = vld [vmem:[#allocation10 + $0x598] sm:$0xff]  ;;  %v2498_v5 = vld [vmem:[#allocation10 + $0x480] sm:$0xff] }
 0x2c3   :  { %2462 = vmatpush.msra.mxu3 %v2384_v17  ;;  %2490 = vmatpush.msra.mxu1 %v2400_v14  ;;  %v2530_v23 = vld [vmem:[#allocation10 + $0x580] sm:$0xff]  ;;  %v2499_v17 = vld [vmem:[#allocation10 + $0x488] sm:$0xff] }
 0x2c4   :  { %2549 = vmatpush.msrb.mxu2 %v2528_v29  ;;  %2423 = vmatpush.msrb.mxu0 %v2381_v15  ;;  %v2531_v14 = vld [vmem:[#allocation10 + $0x588] sm:$0xff]  ;;  %v5311_v29 = vpop.f32.mrf.mxu3  ;;  %v2662_v15 = vld [vmem:[#allocation10 + $0x6f0] sm:$0xff] }
 0x2c5   :  { %2589 = vmatpush.msrb.mxu1 %v2529_v45  ;;  %4271 = vmatmul.msk.f32.vlgmr.msra.gmra.mxu2 %vm333_vm1, %v5291_v60  ;;  %v5313_v45 = vpop.f32.mrf.mxu0 }
 0x2c6   :  { %2463 = vmatpush.msra.mxu3 %v2382_v41  ;;  %4272 = vmatmul.msk.f32.vlgmr.msra.gmra.mxu1 %vm333_vm1, %v5291_v60  ;;  %v2512_v60 = vld [vmem:[#allocation10 + $0x4f0] sm:$0xff] }
 0x2c7   :  { %2550 = vmatpush.msrb.mxu2 %v2526_v46  ;;  %2590 = vmatpush.msrb.mxu1 %v2527_v43  ;;  %v2678_v41 = vld [vmem:[#allocation10 + $0x770] sm:$0xff]  ;;  %v2663_v46 = vld [vmem:[#allocation10 + $0x6f8] sm:$0xff] }
 0x2c8   :  { %2424 = vmatpush.msrb.mxu0 %v2379_v19  ;;  %2464 = vmatpush.msra.mxu3 %v2380_v42  ;;  %v2679_v43 = vld [vmem:[#allocation10 + $0x778] sm:$0xff]  ;;  %v2660_v19 = vld [vmem:[#allocation10 + $0x6e0] sm:$0xff] }
 0x2c9   :  { %2551 = vmatpush.msrb.mxu2 %v2524_v37  ;;  %2591 = vmatpush.msrb.mxu1 %v2525_v12  ;;  %v2676_v42 = vld [vmem:[#allocation10 + $0x760] sm:$0xff]  ;;  %v2661_v37 = vld [vmem:[#allocation10 + $0x6e8] sm:$0xff] }
 0x2ca   :  { %2425 = vmatpush.msrb.mxu0 %v2377_v49  ;;  %2465 = vmatpush.msra.mxu3 %v2378_v48  ;;  %v2677_v12 = vld [vmem:[#allocation10 + $0x768] sm:$0xff]  ;;  %v2658_v49 = vld [vmem:[#allocation10 + $0x6d0] sm:$0xff] }
 0x2cb   :  { %2552 = vmatpush.msrb.mxu2 %v2522_v8  ;;  %2592 = vmatpush.msrb.mxu1 %v2523_v6  ;;  %v2674_v48 = vld [vmem:[#allocation10 + $0x750] sm:$0xff]  ;;  %v2659_v8 = vld [vmem:[#allocation10 + $0x6d8] sm:$0xff] }
 0x2cc   :  { %2426 = vmatpush.msrb.mxu0 %v2375_v34  ;;  %2466 = vmatpush.msra.mxu3 %v2376_v51  ;;  %v2675_v6 = vld [vmem:[#allocation10 + $0x758] sm:$0xff]  ;;  %v2656_v34 = vld [vmem:[#allocation10 + $0x6c0] sm:$0xff] }
 0x2cd   :  { %2553 = vmatpush.msrb.mxu2 %v2520_v24  ;;  %2593 = vmatpush.msrb.mxu1 %v2521_v27  ;;  %v2672_v51 = vld [vmem:[#allocation10 + $0x740] sm:$0xff]  ;;  %v2657_v24 = vld [vmem:[#allocation10 + $0x6c8] sm:$0xff] }
 0x2ce   :  { %2427 = vmatpush.msrb.mxu0 %v2373_v57  ;;  %2467 = vmatpush.msra.mxu3 %v2374_v31  ;;  %v2673_v27 = vld [vmem:[#allocation10 + $0x748] sm:$0xff]  ;;  %v2654_v57 = vld [vmem:[#allocation10 + $0x6b0] sm:$0xff] }
 0x2cf   :  { %2554 = vmatpush.msrb.mxu2 %v2518_v52  ;;  %2594 = vmatpush.msrb.mxu1 %v2519_v47  ;;  %v2670_v31 = vld [vmem:[#allocation10 + $0x730] sm:$0xff]  ;;  %v2655_v52 = vld [vmem:[#allocation10 + $0x6b8] sm:$0xff] }
 0x2d0   :  { %2428 = vmatpush.msrb.mxu0 %v2371_v9  ;;  %2468 = vmatpush.msra.mxu3 %v2372_v50  ;;  %v2671_v47 = vld [vmem:[#allocation10 + $0x738] sm:$0xff]  ;;  %v2652_v9 = vld [vmem:[#allocation10 + $0x6a0] sm:$0xff] }
 0x2d1   :  { %2555 = vmatpush.msrb.mxu2 %v2516_v10  ;;  %2595 = vmatpush.msrb.mxu1 %v2517_v56  ;;  %v2668_v50 = vld [vmem:[#allocation10 + $0x720] sm:$0xff]  ;;  %v2653_v10 = vld [vmem:[#allocation10 + $0x6a8] sm:$0xff] }
 0x2d2   :  { %2429 = vmatpush.msrb.mxu0 %v2369_v25  ;;  %2469 = vmatpush.msra.mxu3 %v2370_v54  ;;  %v2669_v56 = vld [vmem:[#allocation10 + $0x728] sm:$0xff]  ;;  %v2650_v25 = vld [vmem:[#allocation10 + $0x690] sm:$0xff] }
 0x2d3   :  { %2556 = vmatpush.msrb.mxu2 %v2514_v16  ;;  %2596 = vmatpush.msrb.mxu1 %v2515_v0  ;;  %v2666_v54 = vld [vmem:[#allocation10 + $0x710] sm:$0xff]  ;;  %v2651_v16 = vld [vmem:[#allocation10 + $0x698] sm:$0xff] }
 0x2d4   :  { %2430 = vmatpush.msrb.mxu0 %v2367_v33  ;;  %2470 = vmatpush.msra.mxu3 %v2368_v39  ;;  %v2667_v0 = vld [vmem:[#allocation10 + $0x718] sm:$0xff]  ;;  %v2648_v33 = vld [vmem:[#allocation10 + $0x680] sm:$0xff] }
 0x2d5   :  { %2431 = vmatmul.f32.vlgmr.msrb.gmra.mxu0 %v5289_v21  ;;  %2471 = vmatmul.f32.vlgmr.msra.gmra.mxu3 %v5289_v21  ;;  %v2507_v21 = vld [vmem:[#allocation10 + $0x4c8] sm:$0xff]  ;;  %v2664_v39 = vld [vmem:[#allocation10 + $0x700] sm:$0xff] }
 0x2d6   :  { %2557 = vmatpush.msrb.mxu2 %v2512_v60  ;;  %2577 = vmatpush.msra.mxu0 %v2544_v32  ;;  %v2649_v60 = vld [vmem:[#allocation10 + $0x688] sm:$0xff] }
 0x2d7   :  { %2597 = vmatpush.msrb.mxu1 %v2513_v59  ;;  %2617 = vmatpush.msrb.mxu3 %v2545_v58  ;;  %v2665_v32 = vld [vmem:[#allocation10 + $0x708] sm:$0xff]  ;;  %v2793_v59 = vld [vmem:[#allocation10 + $0x870] sm:$0xff]  ;;  %v2794_v58 = vld [vmem:[#allocation10 + $0x878] sm:$0xff] }
 0x2d8   :  { %2558 = vmatpush.msrb.mxu2 %v2510_v38  ;;  %2578 = vmatpush.msra.mxu0 %v2542_v30  ;;  %v2646_v38 = vld [vmem:[#allocation10 + $0x670] sm:$0xff]  ;;  %v2647_v30 = vld [vmem:[#allocation10 + $0x678] sm:$0xff] }
 0x2d9   :  { %2598 = vmatpush.msrb.mxu1 %v2511_v53  ;;  %2618 = vmatpush.msrb.mxu3 %v2543_v1  ;;  %v2791_v53 = vld [vmem:[#allocation10 + $0x860] sm:$0xff]  ;;  %v2792_v1 = vld [vmem:[#allocation10 + $0x868] sm:$0xff] }
 0x2da   :  { %2559 = vmatpush.msrb.mxu2 %v2508_v22  ;;  %2579 = vmatpush.msra.mxu0 %v2540_v26  ;;  %v2644_v22 = vld [vmem:[#allocation10 + $0x660] sm:$0xff]  ;;  %v2645_v26 = vld [vmem:[#allocation10 + $0x668] sm:$0xff] }
 0x2db   :  { %2599 = vmatpush.msrb.mxu1 %v2509_v35  ;;  %2619 = vmatpush.msrb.mxu3 %v2541_v62  ;;  %v2789_v35 = vld [vmem:[#allocation10 + $0x850] sm:$0xff]  ;;  %v2790_v62 = vld [vmem:[#allocation10 + $0x858] sm:$0xff] }
 0x2dc   :  { %2560 = vmatpush.msrb.mxu2 %v2506_v40  ;;  %2580 = vmatpush.msra.mxu0 %v2538_v61  ;;  %v2642_v40 = vld [vmem:[#allocation10 + $0x650] sm:$0xff]  ;;  %v2643_v61 = vld [vmem:[#allocation10 + $0x658] sm:$0xff] }
 0x2dd   :  { %2600 = vmatpush.msrb.mxu1 %v2507_v21  ;;  %2620 = vmatpush.msrb.mxu3 %v2539_v20  ;;  %v2787_v21 = vld [vmem:[#allocation10 + $0x840] sm:$0xff]  ;;  %v2788_v20 = vld [vmem:[#allocation10 + $0x848] sm:$0xff] }
 0x2de   :  { %2561 = vmatpush.msrb.mxu2 %v2504_v36  ;;  %2581 = vmatpush.msra.mxu0 %v2536_v63  ;;  %v2640_v36 = vld [vmem:[#allocation10 + $0x640] sm:$0xff]  ;;  %v2641_v63 = vld [vmem:[#allocation10 + $0x648] sm:$0xff] }
 0x2df   :  { %2601 = vmatpush.msrb.mxu1 %v2505_v13  ;;  %2621 = vmatpush.msrb.mxu3 %v2537_v4  ;;  %v2785_v13 = vld [vmem:[#allocation10 + $0x830] sm:$0xff]  ;;  %v2786_v4 = vld [vmem:[#allocation10 + $0x838] sm:$0xff] }
 0x2e0   :  { %2562 = vmatpush.msrb.mxu2 %v2502_v11  ;;  %2582 = vmatpush.msra.mxu0 %v2534_v18  ;;  %v2638_v11 = vld [vmem:[#allocation10 + $0x630] sm:$0xff]  ;;  %v2639_v18 = vld [vmem:[#allocation10 + $0x638] sm:$0xff] }
 0x2e1   :  { %2602 = vmatpush.msrb.mxu1 %v2503_v55  ;;  %2622 = vmatpush.msrb.mxu3 %v2535_v28  ;;  %v2784_v55 = vld [vmem:[#allocation10 + $0x828] sm:$0xff]  ;;  %v2783_v28 = vld [vmem:[#allocation10 + $0x820] sm:$0xff] }
 0x2e2   :  { %2563 = vmatpush.msrb.mxu2 %v2500_v3  ;;  %2583 = vmatpush.msra.mxu0 %v2532_v44  ;;  %v2636_v3 = vld [vmem:[#allocation10 + $0x620] sm:$0xff]  ;;  %v2637_v44 = vld [vmem:[#allocation10 + $0x628] sm:$0xff] }
 0x2e3   :  { %2603 = vmatpush.msrb.mxu1 %v2501_v7  ;;  %2623 = vmatpush.msrb.mxu3 %v2533_v2  ;;  %v2782_v7 = vld [vmem:[#allocation10 + $0x818] sm:$0xff]  ;;  %v2781_v2 = vld [vmem:[#allocation10 + $0x810] sm:$0xff] }
 0x2e4   :  { %2564 = vmatpush.msrb.mxu2 %v2498_v5  ;;  %2584 = vmatpush.msra.mxu0 %v2530_v23  ;;  %v2634_v5 = vld [vmem:[#allocation10 + $0x610] sm:$0xff]  ;;  %v2635_v23 = vld [vmem:[#allocation10 + $0x618] sm:$0xff] }
 0x2e5   :  { %2604 = vmatpush.msrb.mxu1 %v2499_v17  ;;  %2624 = vmatpush.msrb.mxu3 %v2531_v14  ;;  %v2780_v17 = vld [vmem:[#allocation10 + $0x808] sm:$0xff]  ;;  %v2779_v14 = vld [vmem:[#allocation10 + $0x800] sm:$0xff] }
 0x2e6   :  { %2565 = vmatmul.f32.vlgmr.msrb.gmra.mxu2 %v5311_v29  ;;  %4274 = vmatmul.msk.f32.vlgmr.msrb.gmra.mxu3 %vm333_vm1, %v5313_v45 }
 0x2e7   :  { %2680 = vmatpush.msrb.mxu0 %v2662_v15  ;;  %2708 = vmatpush.msra.mxu2 %v2678_v41  ;;  %v2632_v15 = vld [vmem:[#allocation10 + $0x600] sm:$0xff]  ;;  %v2633_v41 = vld [vmem:[#allocation10 + $0x608] sm:$0xff] }
 0x2e8   :  { %2720 = vmatpush.msra.mxu3 %v2663_v46  ;;  %2748 = vmatpush.msra.mxu1 %v2679_v43  ;;  %v2777_v46 = vld [vmem:[#allocation10 + $0x7f0] sm:$0xff] }
 0x2e9   :  { %2681 = vmatpush.msrb.mxu0 %v2660_v19  ;;  %2709 = vmatpush.msra.mxu2 %v2676_v42  ;;  %v2809_v43 = vld [vmem:[#allocation10 + $0x8f0] sm:$0xff]  ;;  %v2778_v19 = vld [vmem:[#allocation10 + $0x7f8] sm:$0xff] }
 0x2ea   :  { %2721 = vmatpush.msra.mxu3 %v2661_v37  ;;  %2749 = vmatpush.msra.mxu1 %v2677_v12  ;;  %v2810_v42 = vld [vmem:[#allocation10 + $0x8f8] sm:$0xff]  ;;  %v2775_v37 = vld [vmem:[#allocation10 + $0x7e0] sm:$0xff] }
 0x2eb   :  { %2682 = vmatpush.msrb.mxu0 %v2658_v49  ;;  %2710 = vmatpush.msra.mxu2 %v2674_v48  ;;  %v2807_v12 = vld [vmem:[#allocation10 + $0x8e0] sm:$0xff]  ;;  %v2776_v49 = vld [vmem:[#allocation10 + $0x7e8] sm:$0xff] }
 0x2ec   :  { %2722 = vmatpush.msra.mxu3 %v2659_v8  ;;  %2750 = vmatpush.msra.mxu1 %v2675_v6  ;;  %v2808_v48 = vld [vmem:[#allocation10 + $0x8e8] sm:$0xff]  ;;  %v2773_v8 = vld [vmem:[#allocation10 + $0x7d0] sm:$0xff] }
 0x2ed   :  { %4273 = vmatmul.msk.f32.vlgmr.msra.gmra.mxu0 %vm333_vm1, %v5313_v45  ;;  %2605 = vmatmul.f32.vlgmr.msrb.gmra.mxu1 %v5311_v29  ;;  %v2805_v6 = vld [vmem:[#allocation10 + $0x8d0] sm:$0xff] }
 0x2ee   :  { %2683 = vmatpush.msrb.mxu0 %v2656_v34  ;;  %2711 = vmatpush.msra.mxu2 %v2672_v51  ;;  %v2774_v34 = vld [vmem:[#allocation10 + $0x7d8] sm:$0xff] }
 0x2ef   :  { %2723 = vmatpush.msra.mxu3 %v2657_v24  ;;  %2751 = vmatpush.msra.mxu1 %v2673_v27  ;;  %v2806_v51 = vld [vmem:[#allocation10 + $0x8d8] sm:$0xff]  ;;  %v2771_v24 = vld [vmem:[#allocation10 + $0x7c0] sm:$0xff] }
 0x2f0   :  { %2684 = vmatpush.msrb.mxu0 %v2654_v57  ;;  %2712 = vmatpush.msra.mxu2 %v2670_v31  ;;  %v2803_v27 = vld [vmem:[#allocation10 + $0x8c0] sm:$0xff]  ;;  %v2772_v57 = vld [vmem:[#allocation10 + $0x7c8] sm:$0xff] }
 0x2f1   :  { %2724 = vmatpush.msra.mxu3 %v2655_v52  ;;  %2752 = vmatpush.msra.mxu1 %v2671_v47  ;;  %v2804_v31 = vld [vmem:[#allocation10 + $0x8c8] sm:$0xff]  ;;  %v2769_v52 = vld [vmem:[#allocation10 + $0x7b0] sm:$0xff] }
 0x2f2   :  { %2685 = vmatpush.msrb.mxu0 %v2652_v9  ;;  %2713 = vmatpush.msra.mxu2 %v2668_v50  ;;  %v2801_v47 = vld [vmem:[#allocation10 + $0x8b0] sm:$0xff]  ;;  %v2770_v9 = vld [vmem:[#allocation10 + $0x7b8] sm:$0xff] }
 0x2f3   :  { %2725 = vmatpush.msra.mxu3 %v2653_v10  ;;  %2753 = vmatpush.msra.mxu1 %v2669_v56  ;;  %v2802_v50 = vld [vmem:[#allocation10 + $0x8b8] sm:$0xff]  ;;  %v2767_v10 = vld [vmem:[#allocation10 + $0x7a0] sm:$0xff] }
 0x2f4   :  { %2686 = vmatpush.msrb.mxu0 %v2650_v25  ;;  %2714 = vmatpush.msra.mxu2 %v2666_v54  ;;  %v2799_v56 = vld [vmem:[#allocation10 + $0x8a0] sm:$0xff]  ;;  %v2768_v25 = vld [vmem:[#allocation10 + $0x7a8] sm:$0xff] }
 0x2f5   :  { %2726 = vmatpush.msra.mxu3 %v2651_v16  ;;  %2754 = vmatpush.msra.mxu1 %v2667_v0  ;;  %v2800_v54 = vld [vmem:[#allocation10 + $0x8a8] sm:$0xff]  ;;  %v2765_v16 = vld [vmem:[#allocation10 + $0x790] sm:$0xff] }
 0x2f6   :  { %2687 = vmatpush.msrb.mxu0 %v2648_v33  ;;  %2715 = vmatpush.msra.mxu2 %v2664_v39  ;;  %v2797_v0 = vld [vmem:[#allocation10 + $0x890] sm:$0xff]  ;;  %v2766_v33 = vld [vmem:[#allocation10 + $0x798] sm:$0xff] }
 0x2f7   :  { %2727 = vmatpush.msra.mxu3 %v2649_v60  ;;  %2755 = vmatpush.msra.mxu1 %v2665_v32  ;;  %v2798_v39 = vld [vmem:[#allocation10 + $0x898] sm:$0xff]  ;;  %v2763_v60 = vld [vmem:[#allocation10 + $0x780] sm:$0xff] }
 0x2f8   :  { %2811 = vmatpush.msrb.mxu2 %v2793_v59  ;;  %2688 = vmatpush.msrb.mxu0 %v2646_v38  ;;  %v2795_v32 = vld [vmem:[#allocation10 + $0x880] sm:$0xff]  ;;  %v2764_v59 = vld [vmem:[#allocation10 + $0x788] sm:$0xff]  ;;  %v2924_v38 = vld [vmem:[#allocation10 + $0x9f0] sm:$0xff] }
 0x2f9   :  { %2851 = vmatpush.msrb.mxu1 %v2794_v58  ;;  %2728 = vmatpush.msra.mxu3 %v2647_v30  ;;  %v2796_v58 = vld [vmem:[#allocation10 + $0x888] sm:$0xff]  ;;  %v2940_v30 = vld [vmem:[#allocation10 + $0xa70] sm:$0xff] }
 0x2fa   :  { %2812 = vmatpush.msrb.mxu2 %v2791_v53  ;;  %2689 = vmatpush.msrb.mxu0 %v2644_v22  ;;  %v2925_v53 = vld [vmem:[#allocation10 + $0x9f8] sm:$0xff]  ;;  %v2922_v22 = vld [vmem:[#allocation10 + $0x9e0] sm:$0xff] }
 0x2fb   :  { %2852 = vmatpush.msrb.mxu1 %v2792_v1  ;;  %2729 = vmatpush.msra.mxu3 %v2645_v26  ;;  %v2941_v1 = vld [vmem:[#allocation10 + $0xa78] sm:$0xff]  ;;  %v2938_v26 = vld [vmem:[#allocation10 + $0xa60] sm:$0xff] }
 0x2fc   :  { %2813 = vmatpush.msrb.mxu2 %v2789_v35  ;;  %2690 = vmatpush.msrb.mxu0 %v2642_v40  ;;  %v2923_v35 = vld [vmem:[#allocation10 + $0x9e8] sm:$0xff]  ;;  %v2920_v40 = vld [vmem:[#allocation10 + $0x9d0] sm:$0xff] }
 0x2fd   :  { %2853 = vmatpush.msrb.mxu1 %v2790_v62  ;;  %2730 = vmatpush.msra.mxu3 %v2643_v61  ;;  %v2939_v62 = vld [vmem:[#allocation10 + $0xa68] sm:$0xff]  ;;  %v2936_v61 = vld [vmem:[#allocation10 + $0xa50] sm:$0xff] }
 0x2fe   :  { %2814 = vmatpush.msrb.mxu2 %v2787_v21  ;;  %2691 = vmatpush.msrb.mxu0 %v2640_v36  ;;  %v2921_v21 = vld [vmem:[#allocation10 + $0x9d8] sm:$0xff]  ;;  %v2934_v36 = vld [vmem:[#allocation10 + $0xa40] sm:$0xff] }
 0x2ff   :  { %2854 = vmatpush.msrb.mxu1 %v2788_v20  ;;  %2731 = vmatpush.msra.mxu3 %v2641_v63  ;;  %v2937_v20 = vld [vmem:[#allocation10 + $0xa58] sm:$0xff]  ;;  %v2935_v63 = vld [vmem:[#allocation10 + $0xa48] sm:$0xff] }
 0x300   :  { %2815 = vmatpush.msrb.mxu2 %v2785_v13  ;;  %2692 = vmatpush.msrb.mxu0 %v2638_v11  ;;  %v2916_v13 = vld [vmem:[#allocation10 + $0x9b0] sm:$0xff]  ;;  %v2917_v11 = vld [vmem:[#allocation10 + $0x9b8] sm:$0xff] }
 0x301   :  { %2855 = vmatpush.msrb.mxu1 %v2786_v4  ;;  %2732 = vmatpush.msra.mxu3 %v2639_v18  ;;  %v2932_v4 = vld [vmem:[#allocation10 + $0xa30] sm:$0xff]  ;;  %v2933_v18 = vld [vmem:[#allocation10 + $0xa38] sm:$0xff] }
 0x302   :  { %4275 = vmatmul.msk.f32.vlgmr.msra.gmra.mxu2 %vm333_vm1, %v5313_v45  ;;  %2693 = vmatpush.msrb.mxu0 %v2636_v3  ;;  %v2915_v3 = vld [vmem:[#allocation10 + $0x9a8] sm:$0xff] }
 0x303   :  { %2856 = vmatpush.msrb.mxu1 %v2784_v55  ;;  %2816 = vmatpush.msrb.mxu2 %v2783_v28  ;;  %v2914_v55 = vld [vmem:[#allocation10 + $0x9a0] sm:$0xff] }
 0x304   :  { %2733 = vmatpush.msra.mxu3 %v2637_v44  ;;  %2694 = vmatpush.msrb.mxu0 %v2634_v5  ;;  %v2930_v28 = vld [vmem:[#allocation10 + $0xa20] sm:$0xff]  ;;  %v2931_v44 = vld [vmem:[#allocation10 + $0xa28] sm:$0xff]  ;;  %v2913_v5 = vld [vmem:[#allocation10 + $0x998] sm:$0xff] }
 0x305   :  { %2857 = vmatpush.msrb.mxu1 %v2782_v7  ;;  %2817 = vmatpush.msrb.mxu2 %v2781_v2  ;;  %v2912_v7 = vld [vmem:[#allocation10 + $0x990] sm:$0xff] }
 0x306   :  { %2734 = vmatpush.msra.mxu3 %v2635_v23  ;;  %2695 = vmatpush.msrb.mxu0 %v2632_v15  ;;  %v2928_v2 = vld [vmem:[#allocation10 + $0xa10] sm:$0xff]  ;;  %v2929_v23 = vld [vmem:[#allocation10 + $0xa18] sm:$0xff]  ;;  %v2911_v15 = vld [vmem:[#allocation10 + $0x988] sm:$0xff] }
 0x307   :  { %2858 = vmatpush.msrb.mxu1 %v2780_v17  ;;  %2818 = vmatpush.msrb.mxu2 %v2779_v14  ;;  %v2910_v17 = vld [vmem:[#allocation10 + $0x980] sm:$0xff] }
 0x308   :  { %2735 = vmatpush.msra.mxu3 %v2633_v41  ;;  %2696 = vmatmul.f32.vlgmr.msrb.gmra.mxu0 %v5311_v29  ;;  %v2926_v14 = vld [vmem:[#allocation10 + $0xa00] sm:$0xff]  ;;  %v2927_v41 = vld [vmem:[#allocation10 + $0xa08] sm:$0xff] }
 0x309   :  { %2736 = vmatmul.f32.vlgmr.msra.gmra.mxu3 %v5311_v29  ;;  %4276 = vmatmul.msk.f32.vlgmr.msra.gmra.mxu1 %vm333_vm1, %v5313_v45 }
 0x30a   :  { %2819 = vmatpush.msrb.mxu2 %v2777_v46  ;;  %2839 = vmatpush.msra.mxu0 %v2809_v43  ;;  %v3058_v46 = vld [vmem:[#allocation10 + $0xb70] sm:$0xff]  ;;  %v3059_v43 = vld [vmem:[#allocation10 + $0xb78] sm:$0xff] }
 0x30b   :  { %2859 = vmatpush.msrb.mxu1 %v2778_v19  ;;  %2879 = vmatpush.msrb.mxu3 %v2810_v42  ;;  %v2908_v19 = vld [vmem:[#allocation10 + $0x970] sm:$0xff]  ;;  %v2909_v42 = vld [vmem:[#allocation10 + $0x978] sm:$0xff] }
 0x30c   :  { %2820 = vmatpush.msrb.mxu2 %v2775_v37  ;;  %2840 = vmatpush.msra.mxu0 %v2807_v12  ;;  %v3056_v37 = vld [vmem:[#allocation10 + $0xb60] sm:$0xff]  ;;  %v3057_v12 = vld [vmem:[#allocation10 + $0xb68] sm:$0xff] }
 0x30d   :  { %2860 = vmatpush.msrb.mxu1 %v2776_v49  ;;  %2880 = vmatpush.msrb.mxu3 %v2808_v48  ;;  %v2906_v49 = vld [vmem:[#allocation10 + $0x960] sm:$0xff]  ;;  %v2907_v48 = vld [vmem:[#allocation10 + $0x968] sm:$0xff] }
 0x30e   :  { %2821 = vmatpush.msrb.mxu2 %v2773_v8  ;;  %2841 = vmatpush.msra.mxu0 %v2805_v6  ;;  %v3054_v8 = vld [vmem:[#allocation10 + $0xb50] sm:$0xff]  ;;  %v3055_v6 = vld [vmem:[#allocation10 + $0xb58] sm:$0xff] }
 0x30f   :  { %2861 = vmatpush.msrb.mxu1 %v2774_v34  ;;  %2881 = vmatpush.msrb.mxu3 %v2806_v51  ;;  %v2904_v34 = vld [vmem:[#allocation10 + $0x950] sm:$0xff]  ;;  %v2905_v51 = vld [vmem:[#allocation10 + $0x958] sm:$0xff] }
 0x310   :  { %2822 = vmatpush.msrb.mxu2 %v2771_v24  ;;  %2842 = vmatpush.msra.mxu0 %v2803_v27  ;;  %v3052_v24 = vld [vmem:[#allocation10 + $0xb40] sm:$0xff]  ;;  %v3053_v27 = vld [vmem:[#allocation10 + $0xb48] sm:$0xff] }
 0x311   :  { %2862 = vmatpush.msrb.mxu1 %v2772_v57  ;;  %2882 = vmatpush.msrb.mxu3 %v2804_v31  ;;  %v2902_v57 = vld [vmem:[#allocation10 + $0x940] sm:$0xff]  ;;  %v2903_v31 = vld [vmem:[#allocation10 + $0x948] sm:$0xff] }
 0x312   :  { %2823 = vmatpush.msrb.mxu2 %v2769_v52  ;;  %2843 = vmatpush.msra.mxu0 %v2801_v47  ;;  %v3050_v52 = vld [vmem:[#allocation10 + $0xb30] sm:$0xff]  ;;  %v3051_v47 = vld [vmem:[#allocation10 + $0xb38] sm:$0xff] }
 0x313   :  { %2863 = vmatpush.msrb.mxu1 %v2770_v9  ;;  %2883 = vmatpush.msrb.mxu3 %v2802_v50  ;;  %v2900_v9 = vld [vmem:[#allocation10 + $0x930] sm:$0xff]  ;;  %v2901_v50 = vld [vmem:[#allocation10 + $0x938] sm:$0xff] }
 0x314   :  { %2824 = vmatpush.msrb.mxu2 %v2767_v10  ;;  %2844 = vmatpush.msra.mxu0 %v2799_v56  ;;  %v5333_v10 = vpop.f32.mrf.mxu0  ;;  %v3049_v56 = vld [vmem:[#allocation10 + $0xb28] sm:$0xff] }
 0x315   :  { %2864 = vmatpush.msrb.mxu1 %v2768_v25  ;;  %2884 = vmatpush.msrb.mxu3 %v2800_v54  ;;  %v3048_v25 = vld [vmem:[#allocation10 + $0xb20] sm:$0xff] }
 0x316   :  { %2825 = vmatpush.msrb.mxu2 %v2765_v16  ;;  %2845 = vmatpush.msra.mxu0 %v2797_v0  ;;  %v2898_v54 = vld [vmem:[#allocation10 + $0x920] sm:$0xff]  ;;  %v2899_v16 = vld [vmem:[#allocation10 + $0x928] sm:$0xff]  ;;  %v3046_v0 = vld [vmem:[#allocation10 + $0xb10] sm:$0xff] }
 0x317   :  { %2865 = vmatpush.msrb.mxu1 %v2766_v33  ;;  %2885 = vmatpush.msrb.mxu3 %v2798_v39  ;;  %v3047_v33 = vld [vmem:[#allocation10 + $0xb18] sm:$0xff]  ;;  %v2896_v39 = vld [vmem:[#allocation10 + $0x910] sm:$0xff] }
 0x318   :  { %2826 = vmatpush.msrb.mxu2 %v2763_v60  ;;  %2846 = vmatpush.msra.mxu0 %v2795_v32  ;;  %v2897_v60 = vld [vmem:[#allocation10 + $0x918] sm:$0xff]  ;;  %v3044_v32 = vld [vmem:[#allocation10 + $0xb00] sm:$0xff] }
 0x319   :  { %2866 = vmatpush.msrb.mxu1 %v2764_v59  ;;  %2886 = vmatpush.msrb.mxu3 %v2796_v58  ;;  %v3045_v59 = vld [vmem:[#allocation10 + $0xb08] sm:$0xff]  ;;  %v2894_v58 = vld [vmem:[#allocation10 + $0x900] sm:$0xff] }
 0x31a   :  { %2827 = vmatmul.f32.vlgmr.msrb.gmra.mxu2 %v5311_v29  ;;  %4277 = vmatmul.msk.f32.vlgmr.msra.gmra.mxu0 %vm333_vm1, %v5313_v45 }
 0x31b   :  { %2867 = vmatmul.f32.vlgmr.msrb.gmra.mxu1 %v5311_v29  ;;  %4278 = vmatmul.msk.f32.vlgmr.msrb.gmra.mxu3 %vm333_vm1, %v5313_v45  ;;  %v2918_v29 = vld [vmem:[#allocation10 + $0x9c0] sm:$0xff]  ;;  %v2919_v45 = vld [vmem:[#allocation10 + $0x9c8] sm:$0xff] }
 0x31c   :  { %2945 = vmatpush.msrb.mxu0 %v2924_v38  ;;  %2973 = vmatpush.msra.mxu2 %v2940_v30  ;;  %v2895_v38 = vld [vmem:[#allocation10 + $0x908] sm:$0xff]  ;;  %v5339_v30 = vpop.f32.mrf.mxu3 }
 0x31d   :  { %2985 = vmatpush.msra.mxu3 %v2925_v53  ;;  %3013 = vmatpush.msra.mxu1 %v2941_v1  ;;  %v3042_v53 = vld [vmem:[#allocation10 + $0xaf0] sm:$0xff] }
 0x31e   :  { %2946 = vmatpush.msrb.mxu0 %v2922_v22  ;;  %2974 = vmatpush.msra.mxu2 %v2938_v26  ;;  %v3074_v1 = vld [vmem:[#allocation10 + $0xbf0] sm:$0xff]  ;;  %v3043_v22 = vld [vmem:[#allocation10 + $0xaf8] sm:$0xff] }
 0x31f   :  { %2986 = vmatpush.msra.mxu3 %v2923_v35  ;;  %3014 = vmatpush.msra.mxu1 %v2939_v62  ;;  %v3075_v26 = vld [vmem:[#allocation10 + $0xbf8] sm:$0xff]  ;;  %v3040_v35 = vld [vmem:[#allocation10 + $0xae0] sm:$0xff] }
 0x320   :  { %2947 = vmatpush.msrb.mxu0 %v2920_v40  ;;  %2975 = vmatpush.msra.mxu2 %v2936_v61  ;;  %v3072_v62 = vld [vmem:[#allocation10 + $0xbe0] sm:$0xff]  ;;  %v3041_v40 = vld [vmem:[#allocation10 + $0xae8] sm:$0xff] }
 0x321   :  { %2987 = vmatpush.msra.mxu3 %v2921_v21  ;;  %3015 = vmatpush.msra.mxu1 %v2937_v20  ;;  %v3073_v61 = vld [vmem:[#allocation10 + $0xbe8] sm:$0xff]  ;;  %v3038_v21 = vld [vmem:[#allocation10 + $0xad0] sm:$0xff] }
 0x322   :  { %2948 = vmatpush.msrb.mxu0 %v2918_v29  ;;  %2976 = vmatpush.msra.mxu2 %v2934_v36  ;;  %v3070_v20 = vld [vmem:[#allocation10 + $0xbd0] sm:$0xff]  ;;  %v3039_v29 = vld [vmem:[#allocation10 + $0xad8] sm:$0xff] }
 0x323   :  { %2988 = vmatpush.msra.mxu3 %v2919_v45  ;;  %3016 = vmatpush.msra.mxu1 %v2935_v63  ;;  %v3071_v36 = vld [vmem:[#allocation10 + $0xbd8] sm:$0xff]  ;;  %v3036_v45 = vld [vmem:[#allocation10 + $0xac0] sm:$0xff] }
 0x324   :  { %2949 = vmatpush.msrb.mxu0 %v2916_v13  ;;  %2977 = vmatpush.msra.mxu2 %v2932_v4  ;;  %v3068_v63 = vld [vmem:[#allocation10 + $0xbc0] sm:$0xff]  ;;  %v3037_v13 = vld [vmem:[#allocation10 + $0xac8] sm:$0xff] }
 0x325   :  { %2989 = vmatpush.msra.mxu3 %v2917_v11  ;;  %3017 = vmatpush.msra.mxu1 %v2933_v18  ;;  %v3069_v4 = vld [vmem:[#allocation10 + $0xbc8] sm:$0xff]  ;;  %v3034_v11 = vld [vmem:[#allocation10 + $0xab0] sm:$0xff] }
 0x326   :  { %2950 = vmatpush.msrb.mxu0 %v2914_v55  ;;  %2978 = vmatpush.msra.mxu2 %v2930_v28  ;;  %v3066_v18 = vld [vmem:[#allocation10 + $0xbb0] sm:$0xff]  ;;  %v3035_v55 = vld [vmem:[#allocation10 + $0xab8] sm:$0xff] }
 0x327   :  { %2990 = vmatpush.msra.mxu3 %v2915_v3  ;;  %3018 = vmatpush.msra.mxu1 %v2931_v44  ;;  %v3067_v28 = vld [vmem:[#allocation10 + $0xbb8] sm:$0xff]  ;;  %v3032_v3 = vld [vmem:[#allocation10 + $0xaa0] sm:$0xff] }
 0x328   :  { %2951 = vmatpush.msrb.mxu0 %v2912_v7  ;;  %2979 = vmatpush.msra.mxu2 %v2928_v2  ;;  %v3064_v44 = vld [vmem:[#allocation10 + $0xba0] sm:$0xff]  ;;  %v3033_v7 = vld [vmem:[#allocation10 + $0xaa8] sm:$0xff] }
 0x329   :  { %2991 = vmatpush.msra.mxu3 %v2913_v5  ;;  %3019 = vmatpush.msra.mxu1 %v2929_v23  ;;  %v3065_v2 = vld [vmem:[#allocation10 + $0xba8] sm:$0xff]  ;;  %v3030_v5 = vld [vmem:[#allocation10 + $0xa90] sm:$0xff] }
 0x32a   :  { %2952 = vmatpush.msrb.mxu0 %v2910_v17  ;;  %2980 = vmatpush.msra.mxu2 %v2926_v14  ;;  %v3062_v23 = vld [vmem:[#allocation10 + $0xb90] sm:$0xff]  ;;  %v3031_v17 = vld [vmem:[#allocation10 + $0xa98] sm:$0xff] }
 0x32b   :  { %2992 = vmatpush.msra.mxu3 %v2911_v15  ;;  %3020 = vmatpush.msra.mxu1 %v2927_v41  ;;  %v3063_v14 = vld [vmem:[#allocation10 + $0xb98] sm:$0xff]  ;;  %v3028_v15 = vld [vmem:[#allocation10 + $0xa80] sm:$0xff] }
 0x32c   :  { %3076 = vmatpush.msrb.mxu2 %v3058_v46  ;;  %2953 = vmatpush.msrb.mxu0 %v2908_v19  ;;  %v3060_v41 = vld [vmem:[#allocation10 + $0xb80] sm:$0xff]  ;;  %v3029_v46 = vld [vmem:[#allocation10 + $0xa88] sm:$0xff]  ;;  %v3189_v19 = vld [vmem:[#allocation10 + $0xcf0] sm:$0xff] }
 0x32d   :  { %3116 = vmatpush.msrb.mxu1 %v3059_v43  ;;  %2993 = vmatpush.msra.mxu3 %v2909_v42  ;;  %v3061_v43 = vld [vmem:[#allocation10 + $0xb88] sm:$0xff]  ;;  %v3205_v42 = vld [vmem:[#allocation10 + $0xd70] sm:$0xff] }
 0x32e   :  { %3077 = vmatpush.msrb.mxu2 %v3056_v37  ;;  %2954 = vmatpush.msrb.mxu0 %v2906_v49  ;;  %v3190_v37 = vld [vmem:[#allocation10 + $0xcf8] sm:$0xff]  ;;  %v3187_v49 = vld [vmem:[#allocation10 + $0xce0] sm:$0xff] }
 0x32f   :  { %3117 = vmatpush.msrb.mxu1 %v3057_v12  ;;  %2994 = vmatpush.msra.mxu3 %v2907_v48  ;;  %v3206_v12 = vld [vmem:[#allocation10 + $0xd78] sm:$0xff]  ;;  %v3203_v48 = vld [vmem:[#allocation10 + $0xd60] sm:$0xff] }
 0x330   :  { %3078 = vmatpush.msrb.mxu2 %v3054_v8  ;;  %2955 = vmatpush.msrb.mxu0 %v2904_v34  ;;  %v3188_v8 = vld [vmem:[#allocation10 + $0xce8] sm:$0xff]  ;;  %v3185_v34 = vld [vmem:[#allocation10 + $0xcd0] sm:$0xff] }
 0x331   :  { %3118 = vmatpush.msrb.mxu1 %v3055_v6  ;;  %2995 = vmatpush.msra.mxu3 %v2905_v51  ;;  %v3204_v6 = vld [vmem:[#allocation10 + $0xd68] sm:$0xff]  ;;  %v3201_v51 = vld [vmem:[#allocation10 + $0xd50] sm:$0xff] }
 0x332   :  { %3079 = vmatpush.msrb.mxu2 %v3052_v24  ;;  %2956 = vmatpush.msrb.mxu0 %v2902_v57  ;;  %v3186_v24 = vld [vmem:[#allocation10 + $0xcd8] sm:$0xff]  ;;  %v3183_v57 = vld [vmem:[#allocation10 + $0xcc0] sm:$0xff] }
 0x333   :  { %3119 = vmatpush.msrb.mxu1 %v3053_v27  ;;  %2996 = vmatpush.msra.mxu3 %v2903_v31  ;;  %v3202_v27 = vld [vmem:[#allocation10 + $0xd58] sm:$0xff]  ;;  %v3199_v31 = vld [vmem:[#allocation10 + $0xd40] sm:$0xff] }
 0x334   :  { %3080 = vmatpush.msrb.mxu2 %v3050_v52  ;;  %2957 = vmatpush.msrb.mxu0 %v2900_v9  ;;  %v3184_v52 = vld [vmem:[#allocation10 + $0xcc8] sm:$0xff]  ;;  %v3181_v9 = vld [vmem:[#allocation10 + $0xcb0] sm:$0xff] }
 0x335   :  { %3120 = vmatpush.msrb.mxu1 %v3051_v47  ;;  %2997 = vmatpush.msra.mxu3 %v2901_v50  ;;  %v3200_v47 = vld [vmem:[#allocation10 + $0xd48] sm:$0xff]  ;;  %v3197_v50 = vld [vmem:[#allocation10 + $0xd30] sm:$0xff] }
 0x336   :  { %4279 = vmatmul.msk.f32.vlgmr.msra.gmra.mxu2 %vm333_vm1, %v5333_v10  ;;  %2958 = vmatpush.msrb.mxu0 %v2898_v54  ;;  %v3179_v54 = vld [vmem:[#allocation10 + $0xca0] sm:$0xff] }
 0x337   :  { %3121 = vmatpush.msrb.mxu1 %v3049_v56  ;;  %3081 = vmatpush.msrb.mxu2 %v3048_v25  ;;  %v3182_v56 = vld [vmem:[#allocation10 + $0xcb8] sm:$0xff] }
 0x338   :  { %2998 = vmatpush.msra.mxu3 %v2899_v16  ;;  %4280 = vmatmul.msk.f32.vlgmr.msra.gmra.mxu1 %vm333_vm1, %v5333_v10  ;;  %v3198_v25 = vld [vmem:[#allocation10 + $0xd38] sm:$0xff]  ;;  %v3195_v16 = vld [vmem:[#allocation10 + $0xd20] sm:$0xff] }
 0x339   :  { %3082 = vmatpush.msrb.mxu2 %v3046_v0  ;;  %3122 = vmatpush.msrb.mxu1 %v3047_v33  ;;  %v3180_v0 = vld [vmem:[#allocation10 + $0xca8] sm:$0xff] }
 0x33a   :  { %2959 = vmatpush.msrb.mxu0 %v2896_v39  ;;  %2999 = vmatpush.msra.mxu3 %v2897_v60  ;;  %v3196_v33 = vld [vmem:[#allocation10 + $0xd28] sm:$0xff]  ;;  %v3177_v39 = vld [vmem:[#allocation10 + $0xc90] sm:$0xff] }
 0x33b   :  { %3083 = vmatpush.msrb.mxu2 %v3044_v32  ;;  %3123 = vmatpush.msrb.mxu1 %v3045_v59  ;;  %v3193_v60 = vld [vmem:[#allocation10 + $0xd10] sm:$0xff]  ;;  %v3178_v32 = vld [vmem:[#allocation10 + $0xc98] sm:$0xff] }
 0x33c   :  { %2960 = vmatpush.msrb.mxu0 %v2894_v58  ;;  %3000 = vmatpush.msra.mxu3 %v2895_v38  ;;  %v3194_v59 = vld [vmem:[#allocation10 + $0xd18] sm:$0xff]  ;;  %v3175_v58 = vld [vmem:[#allocation10 + $0xc80] sm:$0xff] }
 0x33d   :  { %2961 = vmatmul.f32.vlgmr.msrb.gmra.mxu0 %v5339_v30  ;;  %3001 = vmatmul.f32.vlgmr.msra.gmra.mxu3 %v5339_v30  ;;  %v3191_v38 = vld [vmem:[#allocation10 + $0xd00] sm:$0xff] }
 0x33e   :  { %3084 = vmatpush.msrb.mxu2 %v3042_v53  ;;  %3104 = vmatpush.msra.mxu0 %v3074_v1  ;;  %v3176_v53 = vld [vmem:[#allocation10 + $0xc88] sm:$0xff] }
 0x33f   :  { %3124 = vmatpush.msrb.mxu1 %v3043_v22  ;;  %3144 = vmatpush.msrb.mxu3 %v3075_v26  ;;  %v3192_v1 = vld [vmem:[#allocation10 + $0xd08] sm:$0xff]  ;;  %v3173_v22 = vld [vmem:[#allocation10 + $0xc70] sm:$0xff]  ;;  %v3174_v26 = vld [vmem:[#allocation10 + $0xc78] sm:$0xff] }
 0x340   :  { %3085 = vmatpush.msrb.mxu2 %v3040_v35  ;;  %3105 = vmatpush.msra.mxu0 %v3072_v62  ;;  %v3171_v35 = vld [vmem:[#allocation10 + $0xc60] sm:$0xff]  ;;  %v3172_v62 = vld [vmem:[#allocation10 + $0xc68] sm:$0xff] }
 0x341   :  { %3125 = vmatpush.msrb.mxu1 %v3041_v40  ;;  %3145 = vmatpush.msrb.mxu3 %v3073_v61  ;;  %v3169_v40 = vld [vmem:[#allocation10 + $0xc50] sm:$0xff]  ;;  %v3170_v61 = vld [vmem:[#allocation10 + $0xc58] sm:$0xff] }
 0x342   :  { %3086 = vmatpush.msrb.mxu2 %v3038_v21  ;;  %3106 = vmatpush.msra.mxu0 %v3070_v20  ;;  %v3167_v21 = vld [vmem:[#allocation10 + $0xc40] sm:$0xff]  ;;  %v3168_v20 = vld [vmem:[#allocation10 + $0xc48] sm:$0xff] }
 0x343   :  { %3126 = vmatpush.msrb.mxu1 %v3039_v29  ;;  %3146 = vmatpush.msrb.mxu3 %v3071_v36  ;;  %v3165_v29 = vld [vmem:[#allocation10 + $0xc30] sm:$0xff]  ;;  %v3166_v36 = vld [vmem:[#allocation10 + $0xc38] sm:$0xff] }
 0x344   :  { %3087 = vmatpush.msrb.mxu2 %v3036_v45  ;;  %3107 = vmatpush.msra.mxu0 %v3068_v63  ;;  %v3163_v45 = vld [vmem:[#allocation10 + $0xc20] sm:$0xff]  ;;  %v3164_v63 = vld [vmem:[#allocation10 + $0xc28] sm:$0xff] }
 0x345   :  { %3127 = vmatpush.msrb.mxu1 %v3037_v13  ;;  %3147 = vmatpush.msrb.mxu3 %v3069_v4  ;;  %v3162_v13 = vld [vmem:[#allocation10 + $0xc18] sm:$0xff]  ;;  %v3159_v4 = vld [vmem:[#allocation10 + $0xc00] sm:$0xff] }
 0x346   :  { %3088 = vmatpush.msrb.mxu2 %v3034_v11  ;;  %3108 = vmatpush.msra.mxu0 %v3066_v18  ;;  %v3160_v11 = vld [vmem:[#allocation10 + $0xc08] sm:$0xff]  ;;  %v2185_v18 = vpop.f32.mrf.mxu2 }
 0x347   :  { %3128 = vmatpush.msrb.mxu1 %v3035_v55  ;;  %3148 = vmatpush.msrb.mxu3 %v3067_v28  ;;  %v2225_v55 = vpop.f32.mrf.mxu0  ;;  %v2165_v28 = vpop.f32.mrf.mxu1 }
 0x348   :  { %3089 = vmatpush.msrb.mxu2 %v3032_v3  ;;  %3109 = vmatpush.msra.mxu0 %v3064_v44  ;;  %v2205_v3 = vpop.f32.mrf.mxu3 }
 0x349   :  { %3129 = vmatpush.msrb.mxu1 %v3033_v7  ;;  %3149 = vmatpush.msrb.mxu3 %v3065_v2 }
 0x34a   :  { %3090 = vmatpush.msrb.mxu2 %v3030_v5  ;;  %3110 = vmatpush.msra.mxu0 %v3062_v23 }
 0x34b   :  { %3130 = vmatpush.msrb.mxu1 %v3031_v17  ;;  %3150 = vmatpush.msrb.mxu3 %v3063_v14 }
 0x34c   :  { %3091 = vmatpush.msrb.mxu2 %v3028_v15  ;;  %3111 = vmatpush.msra.mxu0 %v3060_v41 }
 0x34d   :  { %3131 = vmatpush.msrb.mxu1 %v3029_v46  ;;  %3151 = vmatpush.msrb.mxu3 %v3061_v43 }
 0x34e   :  { %3092 = vmatmul.f32.vlgmr.msrb.gmra.mxu2 %v5339_v30  ;;  %4281 = vmatmul.msk.f32.vlgmr.msra.gmra.mxu0 %vm333_vm1, %v5333_v10  ;;  %v2301_v44 = vpop.f32.mrf.mxu2 }
 0x34f   :  { %3132 = vmatmul.f32.vlgmr.msrb.gmra.mxu1 %v5339_v30  ;;  %4282 = vmatmul.msk.f32.vlgmr.msrb.gmra.mxu3 %vm333_vm1, %v5333_v10  ;;  %v2321_v7 = vpop.f32.mrf.mxu0  ;;  %v2341_v2 = vpop.f32.mrf.mxu1 }
 0x350   :  { %3207 = vmatpush.msrb.mxu0 %v3189_v19  ;;  %3235 = vmatpush.msra.mxu2 %v3205_v42  ;;  %v2361_v5 = vpop.f32.mrf.mxu3 }
 0x351   :  { %3247 = vmatpush.msra.mxu3 %v3190_v37  ;;  %3275 = vmatpush.msra.mxu1 %v3206_v12 }
 0x352   :  { %3208 = vmatpush.msrb.mxu0 %v3187_v49  ;;  %3236 = vmatpush.msra.mxu2 %v3203_v48 }
 0x353   :  { %3248 = vmatpush.msra.mxu3 %v3188_v8  ;;  %3276 = vmatpush.msra.mxu1 %v3204_v6  ;;  %v2096_v8 = vld [vmem:[#allocation11] sm:$0x3] }
 0x354   :  { %3209 = vmatpush.msrb.mxu0 %v3185_v34  ;;  %3237 = vmatpush.msra.mxu2 %v3201_v51  ;;  %v2186_v51 = vadd.f32 %v2185_v18, %v2165_v28  ;;  %v3447_v28 = vld [vmem:[#allocation14 + $0x168] sm:$0xff] }
 0x355   :  { %3249 = vmatpush.msra.mxu3 %v3186_v24  ;;  %3277 = vmatpush.msra.mxu1 %v3202_v27  ;;  %v2229_v24 = vperm.slane %v2096_v8, 0 }
 0x356   :  { %3210 = vmatpush.msrb.mxu0 %v3183_v57  ;;  %3238 = vmatpush.msra.mxu2 %v3199_v31  ;;  %v2452_v23 = vpop.f32.mrf.mxu2  ;;  %v2322_v31 = vadd.f32 %v2321_v7, %v2301_v44 }
 0x357   :  { %3250 = vmatpush.msra.mxu3 %v3184_v52  ;;  %3278 = vmatpush.msra.mxu1 %v3200_v47  ;;  %v2432_v17 = vpop.f32.mrf.mxu0  ;;  %v2492_v14 = vpop.f32.mrf.mxu1  ;;  %v2233_v52 = vadd.f32 %v2229_v24, %v2186_v51 }
 0x358   :  { %3211 = vmatpush.msrb.mxu0 %v3181_v9  ;;  %3239 = vmatpush.msra.mxu2 %v3197_v50  ;;  %v2472_v15 = vpop.f32.mrf.mxu3  ;;  %v2453_v47 = vadd.f32 %v2452_v23, %v2432_v17  ;;  %v2226_v9 = vadd.f32 %v2225_v55, %v2205_v3  ;;  %v2230_v50 = vperm.slane %v2096_v8, 1  ;;  %v3385_v55 = vld [vmem:[#allocation14 + $0xe0] sm:$0xff] }
 0x359   :  { %3251 = vmatpush.msra.mxu3 %v3182_v56  ;;  %3279 = vmatpush.msra.mxu1 %v3198_v25  ;;  %v2364_v56 = vadd.f32 %v2322_v31, %v2233_v52  ;;  %v3380_v31 = vld [vmem:[#allocation14 + $0xb8] sm:$0xff] }
 0x35a   :  { %3212 = vmatpush.msrb.mxu0 %v3179_v54  ;;  %3240 = vmatpush.msra.mxu2 %v3195_v16  ;;  %v2362_v54 = vadd.f32 %v2361_v5, %v2341_v2  ;;  %v3384_v2 = vld [vmem:[#allocation14 + $0xd8] sm:$0xff]  ;;  %v3446_v5 = vld [vmem:[#allocation14 + $0x160] sm:$0xff] }
 0x35b   :  { %3252 = vmatpush.msra.mxu3 %v3180_v0  ;;  %3280 = vmatpush.msra.mxu1 %v3196_v33  ;;  %v2495_v33 = vadd.f32 %v2453_v47, %v2364_v56  ;;  %v3442_v47 = vld [vmem:[#allocation14 + $0x140] sm:$0xff]  ;;  %v3379_v56 = vld [vmem:[#allocation14 + $0xb0] sm:$0xff] }
 0x35c   :  { %3213 = vmatpush.msrb.mxu0 %v3177_v39  ;;  %3241 = vmatpush.msra.mxu2 %v3193_v60  ;;  %v2234_v60 = vadd.f32 %v2230_v50, %v2226_v9  ;;  %v3370_v9 = vld [vmem:[#allocation14 + $0x68] sm:$0xff] }
 0x35d   :  { %3253 = vmatpush.msra.mxu3 %v3178_v32  ;;  %3281 = vmatpush.msra.mxu1 %v3194_v59  ;;  %v2493_v32 = vadd.f32 %v2492_v14, %v2472_v15  ;;  %v3383_v15 = vld [vmem:[#allocation14 + $0xd0] sm:$0xff] }
 0x35e   :  { %3214 = vmatpush.msrb.mxu0 %v3175_v58  ;;  %3242 = vmatpush.msra.mxu2 %v3191_v38  ;;  %v3388_v38 = vld [vmem:[#allocation14 + $0xf8] sm:$0xff] }
 0x35f   :  { %3254 = vmatpush.msra.mxu3 %v3176_v53  ;;  %3282 = vmatpush.msra.mxu1 %v3192_v1 }
 0x360   :  { %4283 = vmatmul.msk.f32.vlgmr.msra.gmra.mxu2 %vm333_vm1, %v5333_v10  ;;  %4284 = vmatmul.msk.f32.vlgmr.msra.gmra.mxu1 %vm333_vm1, %v5333_v10  ;;  %v3161_v10 = vld [vmem:[#allocation10 + $0xc10] sm:$0xff] }
 0x361   :  { %3215 = vmatpush.msrb.mxu0 %v3173_v22  ;;  %3255 = vmatpush.msra.mxu3 %v3174_v26  ;;  %v3387_v22 = vld [vmem:[#allocation14 + $0xf0] sm:$0xff]  ;;  %v3449_v26 = vld [vmem:[#allocation14 + $0x178] sm:$0xff] }
 0x362   :  { %3409 = vmatpush.msrb.mxu1 %v3388_v38  ;;  %v3377_v38 = vld [vmem:[#allocation14 + $0xa0] sm:$0xff] }
 0x363   :  { %3216 = vmatpush.msrb.mxu0 %v3171_v35  ;;  %3256 = vmatpush.msra.mxu3 %v3172_v62  ;;  %v2365_v35 = vadd.f32 %v2362_v54, %v2234_v60  ;;  %v3465_v54 = vld [vmem:[#allocation14 + $0x1f8] sm:$0xff]  ;;  %v3378_v60 = vld [vmem:[#allocation14 + $0xa8] sm:$0xff] }
 0x364   :  { %3410 = vmatpush.msrb.mxu1 %v3387_v22  ;;  %v3462_v22 = vld [vmem:[#allocation14 + $0x1e0] sm:$0xff] }
 0x365   :  { %3217 = vmatpush.msrb.mxu0 %v3169_v40  ;;  %3257 = vmatpush.msra.mxu3 %v3170_v61 }
 0x367   :  { %3218 = vmatpush.msrb.mxu0 %v3167_v21  ;;  %3258 = vmatpush.msra.mxu3 %v3168_v20  ;;  %v2496_v21 = vadd.f32 %v2493_v32, %v2365_v35  ;;  %v3440_v32 = vld [vmem:[#allocation14 + $0x130] sm:$0xff]  ;;  %v3365_v35 = vld [vmem:[#allocation14 + $0x40] sm:$0xff] }
 0x369   :  { %3219 = vmatpush.msrb.mxu0 %v3165_v29  ;;  %3259 = vmatpush.msra.mxu3 %v3166_v36  ;;  %v2566_v41 = vpop.f32.mrf.mxu2  ;;  %v2626_v19 = vpop.f32.mrf.mxu3 }
 0x36a   :  { %v2586_v46 = vpop.f32.mrf.mxu0  ;;  %v2606_v43 = vpop.f32.mrf.mxu1 }
 0x36b   :  { %3220 = vmatpush.msrb.mxu0 %v3163_v45  ;;  %3260 = vmatpush.msra.mxu3 %v3164_v63  ;;  %v2587_v25 = vadd.f32 %v2586_v46, %v2566_v41  ;;  %v2627_v62 = vadd.f32 %v2626_v19, %v2606_v43  ;;  %v3445_v41 = vld [vmem:[#allocation14 + $0x158] sm:$0xff] }
 0x36d   :  { %3221 = vmatpush.msrb.mxu0 %v3161_v10  ;;  %3261 = vmatpush.msra.mxu3 %v3162_v13  ;;  %v2629_v53 = vadd.f32 %v2587_v25, %v2495_v33  ;;  %v2630_v45 = vadd.f32 %v2627_v62, %v2496_v21  ;;  %v3386_v13 = vld [vmem:[#allocation14 + $0xe8] sm:$0xff]  ;;  %v3369_v25 = vld [vmem:[#allocation14 + $0x60] sm:$0xff]  ;;  %v3368_v33 = vld [vmem:[#allocation14 + $0x58] sm:$0xff] }
 0x36e   :  { %3411 = vmatpush.msrb.mxu1 %v3386_v13  ;;  %v3461_v62 = vld [vmem:[#allocation14 + $0x1d8] sm:$0xff]  ;;  %v3436_v13 = vld [vmem:[#allocation14 + $0x110] sm:$0xff] }
 0x36f   :  { %3222 = vmatpush.msrb.mxu0 %v3159_v4  ;;  %3262 = vmatpush.msra.mxu3 %v3160_v11  ;;  %v3448_v4 = vld [vmem:[#allocation14 + $0x170] sm:$0xff]  ;;  %v3364_v21 = vld [vmem:[#allocation14 + $0x38] sm:$0xff] }
 0x370   :  { %3223 = vmatmul.f32.vlgmr.msrb.gmra.mxu0 %v5339_v30  ;;  %3263 = vmatmul.f32.vlgmr.msra.gmra.mxu3 %v5339_v30 }
 0x371   :  { %3466 = vmatpush.msrb.mxu3 %v3449_v26  ;;  %3412 = vmatpush.msrb.mxu1 %v3385_v55  ;;  %v3376_v26 = vld [vmem:[#allocation14 + $0x98] sm:$0xff]  ;;  %v3361_v55 = vld [vmem:[#allocation14 + $0x20] sm:$0xff] }
 0x373   :  { %3467 = vmatpush.msrb.mxu3 %v3448_v4  ;;  %3413 = vmatpush.msrb.mxu1 %v3384_v2  ;;  %v3362_v4 = vld [vmem:[#allocation14 + $0x28] sm:$0xff]  ;;  %v3456_v2 = vld [vmem:[#allocation14 + $0x1b0] sm:$0xff] }
 0x375   :  { %3468 = vmatpush.msrb.mxu3 %v3447_v28  ;;  %3414 = vmatpush.msrb.mxu1 %v3383_v15  ;;  %v3457_v28 = vld [vmem:[#allocation14 + $0x1b8] sm:$0xff] }
 0x376   :  { %v3597_v15 = vld [vmem:[#allocation14 + $0x378] sm:$0xff] }
 0x377   :  { %3469 = vmatpush.msrb.mxu3 %v3446_v5  ;;  %v3434_v5 = vld [vmem:[#allocation14 + $0x100] sm:$0xff] }
 0x379   :  { %3470 = vmatpush.msrb.mxu3 %v3445_v41  ;;  %v3537_v41 = vld [vmem:[#allocation14 + $0x2e8] sm:$0xff] }
 0x385   :  { %v2697_v42 = vpop.f32.mrf.mxu0  ;;  %v2717_v37 = vpop.f32.mrf.mxu2 }
 0x386   :  { %v2757_v12 = vpop.f32.mrf.mxu1  ;;  %v2718_v39 = vadd.f32 %v2717_v37, %v2697_v42  ;;  %v3382_v42 = vld [vmem:[#allocation14 + $0xc8] sm:$0xff] }
 0x387   :  { %3415 = vmatpush.msrb.mxu1 %v3382_v42  ;;  %v3536_v42 = vld [vmem:[#allocation14 + $0x2e0] sm:$0xff] }
 0x388   :  { %v2760_v40 = vadd.f32 %v2718_v39, %v2629_v53  ;;  %v3464_v39 = vld [vmem:[#allocation14 + $0x1f0] sm:$0xff]  ;;  %v3439_v53 = vld [vmem:[#allocation14 + $0x128] sm:$0xff] }
 0x38c   :  { %v2737_v30 = vpop.f32.mrf.mxu3 }
 0x38d   :  { %v2758_v20 = vadd.f32 %v2757_v12, %v2737_v30  ;;  %v3291_v30 = vld [vmem:[#allocation13] sm:$0xff] }
 0x38f   :  { %v2761_v3 = vadd.f32 %v2758_v20, %v2630_v45  ;;  %v3460_v20 = vld [vmem:[#allocation14 + $0x1d0] sm:$0xff] }
 0x390   :  { %v3363_v45 = vld [vmem:[#allocation14 + $0x30] sm:$0xff] }
 0x397   :  { %v2848_v49 = vpop.f32.mrf.mxu0 }
 0x398   :  { %v2868_v6 = vpop.f32.mrf.mxu1 }
 0x39d   :  { %v2828_v48 = vpop.f32.mrf.mxu2 }
 0x39e   :  { %v2888_v34 = vpop.f32.mrf.mxu3  ;;  %v2849_v1 = vadd.f32 %v2848_v49, %v2828_v48  ;;  %v3444_v49 = vld [vmem:[#allocation14 + $0x150] sm:$0xff] }
 0x39f   :  { %v2889_v11 = vadd.f32 %v2888_v34, %v2868_v6  ;;  %v3372_v6 = vld [vmem:[#allocation14 + $0x78] sm:$0xff]  ;;  %v3381_v34 = vld [vmem:[#allocation14 + $0xc0] sm:$0xff]  ;;  %3471 = vmatpush.msrb.mxu3 %v3444_v49  ;;  %v3595_v49 = vld [vmem:[#allocation14 + $0x368] sm:$0xff] }
 0x3a0   :  { %v2891_v29 = vadd.f32 %v2849_v1, %v2760_v40  ;;  %3416 = vmatpush.msrb.mxu1 %v3381_v34  ;;  %v3366_v1 = vld [vmem:[#allocation14 + $0x48] sm:$0xff]  ;;  %v3293_v40 = vld [vmem:[#allocation13 + $0x10] sm:$0xff]  ;;  %v3594_v34 = vld [vmem:[#allocation14 + $0x360] sm:$0xff] }
 0x3a1   :  { %v2892_v46 = vadd.f32 %v2889_v11, %v2761_v3  ;;  %v3458_v11 = vld [vmem:[#allocation14 + $0x1c0] sm:$0xff]  ;;  %v3435_v3 = vld [vmem:[#allocation14 + $0x108] sm:$0xff] }
 0x3a2   :  { %3417 = vmatpush.msrb.mxu1 %v3380_v31  ;;  %v3450_v31 = vld [vmem:[#allocation14 + $0x180] sm:$0xff] }
 0x3a4   :  { %3418 = vmatpush.msrb.mxu1 %v3379_v56  ;;  %v3532_v56 = vld [vmem:[#allocation14 + $0x2c0] sm:$0xff] }
 0x3a6   :  { %3419 = vmatpush.msrb.mxu1 %v3378_v60  ;;  %v3590_v60 = vld [vmem:[#allocation14 + $0x340] sm:$0xff] }
 0x3a8   :  { %3420 = vmatpush.msrb.mxu1 %v3377_v38  ;;  %v3589_v38 = vld [vmem:[#allocation14 + $0x338] sm:$0xff] }
 0x3aa   :  { %3421 = vmatpush.msrb.mxu1 %v3376_v26  ;;  %v3588_v26 = vld [vmem:[#allocation14 + $0x330] sm:$0xff] }
 0x3b5   :  { %v3022_v16 = vpop.f32.mrf.mxu1 }
 0x3b9   :  { %v2982_v57 = vpop.f32.mrf.mxu2 }
 0x3ba   :  { %v2962_v27 = vpop.f32.mrf.mxu0 }
 0x3bb   :  { %v2983_v61 = vadd.f32 %v2982_v57, %v2962_v27  ;;  %v3443_v27 = vld [vmem:[#allocation14 + $0x148] sm:$0xff]  ;;  %v3371_v57 = vld [vmem:[#allocation14 + $0x70] sm:$0xff] }
 0x3bc   :  { %3472 = vmatpush.msrb.mxu3 %v3443_v27  ;;  %v3521_v27 = vld [vmem:[#allocation14 + $0x268] sm:$0xff] }
 0x3bd   :  { %v3025_v18 = vadd.f32 %v2983_v61, %v2891_v29  ;;  %v3438_v61 = vld [vmem:[#allocation14 + $0x120] sm:$0xff]  ;;  %v3375_v29 = vld [vmem:[#allocation14 + $0x90] sm:$0xff] }
 0x3be   :  { %3473 = vmatpush.msrb.mxu3 %v3442_v47  ;;  %3422 = vmatpush.msrb.mxu1 %v3375_v29  ;;  %v3520_v47 = vld [vmem:[#allocation14 + $0x260] sm:$0xff]  ;;  %v3607_v29 = vld [vmem:[#allocation14 + $0x3c8] sm:$0xff] }
 0x3c0   :  { %v3002_v0 = vpop.f32.mrf.mxu3 }
 0x3c1   :  { %v3023_v23 = vadd.f32 %v3022_v16, %v3002_v0  ;;  %v3292_v16 = vld [vmem:[#allocation13 + $0x8] sm:$0xff]  ;;  %v3441_v0 = vld [vmem:[#allocation14 + $0x138] sm:$0xff] }
 0x3c2   :  { %3474 = vmatpush.msrb.mxu3 %v3441_v0  ;;  %v3531_v0 = vld [vmem:[#allocation14 + $0x2b8] sm:$0xff] }
 0x3c3   :  { %v3026_v37 = vadd.f32 %v3023_v23, %v2892_v46  ;;  %v3538_v23 = vld [vmem:[#allocation14 + $0x2f0] sm:$0xff]  ;;  %v3358_v46 = vld [vmem:[#allocation14 + $0x8] sm:$0xff] }
 0x3c4   :  { %3475 = vmatpush.msrb.mxu3 %v3440_v32  ;;  %v3530_v32 = vld [vmem:[#allocation14 + $0x2b0] sm:$0xff] }
 0x3c6   :  { %3476 = vmatpush.msrb.mxu3 %v3439_v53  ;;  %v3529_v53 = vld [vmem:[#allocation14 + $0x2a8] sm:$0xff] }
 0x3c8   :  { %3477 = vmatpush.msrb.mxu3 %v3438_v61  ;;  %v3587_v61 = vld [vmem:[#allocation14 + $0x328] sm:$0xff] }
 0x3cb   :  { %v3113_v59 = vpop.f32.mrf.mxu0 }
 0x3cc   :  { %v3133_v63 = vpop.f32.mrf.mxu1 }
 0x3d1   :  { %v3093_v58 = vpop.f32.mrf.mxu2 }
 0x3d2   :  { %v3114_v36 = vadd.f32 %v3113_v59, %v3093_v58  ;;  %v3153_v10 = vpop.f32.mrf.mxu3  ;;  %v3367_v59 = vld [vmem:[#allocation14 + $0x50] sm:$0xff]  ;;  %v3463_v58 = vld [vmem:[#allocation14 + $0x1e8] sm:$0xff] }
 0x3d3   :  { %v3154_v43 = vadd.f32 %v3153_v10, %v3133_v63  ;;  %v3459_v63 = vld [vmem:[#allocation14 + $0x1c8] sm:$0xff] }
 0x3d4   :  { %v3156_v17 = vadd.f32 %v3114_v36, %v3025_v18  ;;  %v3437_v36 = vld [vmem:[#allocation14 + $0x118] sm:$0xff]  ;;  %v3374_v10 = vld [vmem:[#allocation14 + $0x88] sm:$0xff]  ;;  %v3373_v18 = vld [vmem:[#allocation14 + $0x80] sm:$0xff] }
 0x3d5   :  { %v3157_v51 = vadd.f32 %v3154_v43, %v3026_v37  ;;  %3478 = vmatpush.msrb.mxu3 %v3437_v36  ;;  %3423 = vmatpush.msrb.mxu1 %v3374_v10  ;;  %v3454_v43 = vld [vmem:[#allocation14 + $0x1a0] sm:$0xff] }
 0x3d6   :  { %v3357_v37 = vld [vmem:[#allocation14] sm:$0xff] }
 0x3d7   :  { %3479 = vmatpush.msrb.mxu3 %v3436_v13  ;;  %3424 = vmatpush.msrb.mxu1 %v3373_v18  ;;  %v3586_v36 = vld [vmem:[#allocation14 + $0x320] sm:$0xff]  ;;  %v3585_v13 = vld [vmem:[#allocation14 + $0x318] sm:$0xff] }
 0x3d8   :  { %v3606_v10 = vld [vmem:[#allocation14 + $0x3c0] sm:$0xff]  ;;  %v3605_v18 = vld [vmem:[#allocation14 + $0x3b8] sm:$0xff] }
 0x3d9   :  { %3480 = vmatpush.msrb.mxu3 %v3435_v3  ;;  %v3604_v3 = vld [vmem:[#allocation14 + $0x3b0] sm:$0xff] }
 0x3db   :  { %3481 = vmatpush.msrb.mxu3 %v3434_v5  ;;  %v3508_v5 = vld [vmem:[#allocation14 + $0x200] sm:$0xff] }
 0x3dd   :  { %v3284_v48 = vpop.f32.mrf.mxu1  ;;  %3614 = vmatpush.msra.mxu3 %v3597_v15  ;;  %v3582_v15 = vld [vmem:[#allocation14 + $0x300] sm:$0xff] }
 0x3e3   :  { %v3244_v44 = vpop.f32.mrf.mxu2 }
 0x3ed   :  { %v3224_v7 = vpop.f32.mrf.mxu0 }
 0x3ee   :  { %v3245_v14 = vadd.f32 %v3244_v44, %v3224_v7  ;;  %v3539_v44 = vld [vmem:[#allocation14 + $0x2f8] sm:$0xff] }
 0x3ef   :  { %v3360_v7 = vld [vmem:[#allocation14 + $0x18] sm:$0xff]  ;;  %3560 = vmatpush.msra.mxu1 %v3539_v44  ;;  %v3510_v44 = vld [vmem:[#allocation14 + $0x210] sm:$0xff] }
 0x3f0   :  { %v3287_v19 = vadd.f32 %v3245_v14, %v3156_v17  ;;  %v3359_v17 = vld [vmem:[#allocation14 + $0x10] sm:$0xff]  ;;  %v3455_v14 = vld [vmem:[#allocation14 + $0x1a8] sm:$0xff] }
 0x3f1   :  { %3561 = vmatpush.msra.mxu1 %v3538_v23  ;;  %v3524_v23 = vld [vmem:[#allocation14 + $0x280] sm:$0xff] }
 0x3f2   :  { %v3289_v12 = vmax.f32 %v3287_v19, 0.0  ;;  %v3596_v19 = vld [vmem:[#allocation14 + $0x370] sm:$0xff] }
 0x3f3   :  { %v3264_v8 = vpop.f32.mrf.mxu3  ;;  %3562 = vmatpush.msra.mxu1 %v3537_v41  ;;  %3615 = vmatpush.msra.mxu3 %v3596_v19  ;;  %v3601_v41 = vld [vmem:[#allocation14 + $0x398] sm:$0xff]  ;;  %v3598_v19 = vld [vmem:[#allocation14 + $0x380] sm:$0xff] }
 0x3f4   :  { %v3285_v24 = vadd.f32 %v3284_v48, %v3264_v8  ;;  %3319 = vmatpush.msrb.mxu2 %v3289_v12  ;;  %v3453_v12 = vld [vmem:[#allocation14 + $0x198] sm:$0xff]  ;;  %v3452_v48 = vld [vmem:[#allocation14 + $0x190] sm:$0xff] }
 0x3f5   :  { %4285 = vmatmul.msk.f32.vlgmr.msrb.gmra.mxu2 %vm3294_vm3, %v3291_v30  ;;  %3563 = vmatpush.msra.mxu1 %v3536_v42  ;;  %v3535_v8 = vld [vmem:[#allocation14 + $0x2d8] sm:$0xff] }
 0x3f6   :  { %v3288_v52 = vadd.f32 %v3285_v24, %v3157_v51  ;;  %3389 = vmatpush.msra.mxu2 %v3372_v6  ;;  %v3522_v6 = vld [vmem:[#allocation14 + $0x270] sm:$0xff]  ;;  %v3451_v51 = vld [vmem:[#allocation14 + $0x188] sm:$0xff]  ;;  %3616 = vmatpush.msra.mxu3 %v3595_v49  ;;  %v3671_v42 = vld [vmem:[#allocation14 + $0x478] sm:$0xff] }
 0x3f7   :  { %v3534_v24 = vld [vmem:[#allocation14 + $0x2d0] sm:$0xff]  ;;  %3564 = vmatpush.msra.mxu1 %v3535_v8  ;;  %v3745_v49 = vld [vmem:[#allocation14 + $0x578] sm:$0xff] }
 0x3f8   :  { %v3290_v50 = vmax.f32 %v3288_v52, 0.0  ;;  %3390 = vmatpush.msra.mxu2 %v3371_v57  ;;  %v3593_v57 = vld [vmem:[#allocation14 + $0x358] sm:$0xff]  ;;  %3617 = vmatpush.msra.mxu3 %v3594_v34  ;;  %v3533_v52 = vld [vmem:[#allocation14 + $0x2c8] sm:$0xff]  ;;  %v3686_v8 = vld [vmem:[#allocation14 + $0x4f0] sm:$0xff] }
 0x3f9   :  { %3565 = vmatpush.msra.mxu1 %v3534_v24  ;;  %v3669_v34 = vld [vmem:[#allocation14 + $0x468] sm:$0xff] }
 0x3fa   :  { %3345 = vmatpush.msra.mxu0 %v3290_v50  ;;  %3391 = vmatpush.msra.mxu2 %v3370_v9  ;;  %v3613_v9 = vld [vmem:[#allocation14 + $0x3f8] sm:$0xff]  ;;  %v3592_v50 = vld [vmem:[#allocation14 + $0x350] sm:$0xff]  ;;  %v3685_v24 = vld [vmem:[#allocation14 + $0x4e8] sm:$0xff] }
 0x3fb   :  { %4288 = vmatmul.msk.f32.vlgmr.msra.gmra.mxu0 %vm3294_vm3, %v3291_v30  ;;  %v3523_v30 = vld [vmem:[#allocation14 + $0x278] sm:$0xff]  ;;  %3618 = vmatpush.msra.mxu3 %v3593_v57  ;;  %v3668_v57 = vld [vmem:[#allocation14 + $0x460] sm:$0xff] }
 0x3fc   :  { %3392 = vmatpush.msra.mxu2 %v3369_v25  ;;  %3486 = vmatpush.msrb.mxu0 %v3465_v54  ;;  %v3519_v25 = vld [vmem:[#allocation14 + $0x258] sm:$0xff]  ;;  %v3612_v54 = vld [vmem:[#allocation14 + $0x3f0] sm:$0xff] }
 0x3fd   :  { %4286 = vmatmul.msk.f32.gmra.mxu2 %vm3294_vm3, %v3292_v16  ;;  %3566 = vmatpush.msra.mxu1 %v3533_v52  ;;  %v3684_v52 = vld [vmem:[#allocation14 + $0x4e0] sm:$0xff] }
 0x3fe   :  { %3393 = vmatpush.msra.mxu2 %v3368_v33  ;;  %3487 = vmatpush.msrb.mxu0 %v3464_v39  ;;  %v3518_v33 = vld [vmem:[#allocation14 + $0x250] sm:$0xff]  ;;  %v3611_v39 = vld [vmem:[#allocation14 + $0x3e8] sm:$0xff] }
 0x3ff   :  { %3619 = vmatpush.msra.mxu3 %v3592_v50  ;;  %3567 = vmatpush.msra.mxu1 %v3532_v56  ;;  %v3742_v50 = vld [vmem:[#allocation14 + $0x560] sm:$0xff] }
 0x400   :  { %3394 = vmatpush.msra.mxu2 %v3367_v59  ;;  %3488 = vmatpush.msrb.mxu0 %v3463_v58  ;;  %v3517_v59 = vld [vmem:[#allocation14 + $0x248] sm:$0xff]  ;;  %v3610_v58 = vld [vmem:[#allocation14 + $0x3e0] sm:$0xff] }
 0x401   :  { %3568 = vmatpush.msra.mxu1 %v3531_v0  ;;  %v3665_v0 = vld [vmem:[#allocation14 + $0x448] sm:$0xff] }
 0x402   :  { %3395 = vmatpush.msra.mxu2 %v3366_v1  ;;  %3489 = vmatpush.msrb.mxu0 %v3462_v22  ;;  %v3516_v1 = vld [vmem:[#allocation14 + $0x240] sm:$0xff]  ;;  %v3609_v22 = vld [vmem:[#allocation14 + $0x3d8] sm:$0xff] }
 0x403   :  { %4289 = vmatmul.msk.f32.gmra.mxu0 %vm3294_vm3, %v3292_v16  ;;  %v3591_v16 = vld [vmem:[#allocation14 + $0x348] sm:$0xff]  ;;  %3569 = vmatpush.msra.mxu1 %v3530_v32  ;;  %v3664_v32 = vld [vmem:[#allocation14 + $0x440] sm:$0xff] }
 0x404   :  { %3396 = vmatpush.msra.mxu2 %v3365_v35  ;;  %3490 = vmatpush.msrb.mxu0 %v3461_v62  ;;  %v3528_v35 = vld [vmem:[#allocation14 + $0x2a0] sm:$0xff]  ;;  %v3515_v62 = vld [vmem:[#allocation14 + $0x238] sm:$0xff] }
 0x405   :  { %4287 = vmatmul.msk.f32.gmra.mxu2 %vm3294_vm3, %v3293_v40  ;;  %3620 = vmatpush.msra.mxu3 %v3591_v16  ;;  %v3741_v16 = vld [vmem:[#allocation14 + $0x558] sm:$0xff] }
 0x406   :  { %3397 = vmatpush.msra.mxu2 %v3364_v21  ;;  %3491 = vmatpush.msrb.mxu0 %v3460_v20  ;;  %v3527_v21 = vld [vmem:[#allocation14 + $0x298] sm:$0xff]  ;;  %v3514_v20 = vld [vmem:[#allocation14 + $0x230] sm:$0xff] }
 0x407   :  { %3621 = vmatpush.msra.mxu3 %v3590_v60  ;;  %3570 = vmatpush.msra.mxu1 %v3529_v53  ;;  %v3740_v60 = vld [vmem:[#allocation14 + $0x550] sm:$0xff] }
 0x408   :  { %3398 = vmatpush.msra.mxu2 %v3363_v45  ;;  %3492 = vmatpush.msrb.mxu0 %v3459_v63  ;;  %v3526_v45 = vld [vmem:[#allocation14 + $0x290] sm:$0xff]  ;;  %v3513_v63 = vld [vmem:[#allocation14 + $0x228] sm:$0xff] }
 0x409   :  { %3622 = vmatpush.msra.mxu3 %v3589_v38  ;;  %3571 = vmatpush.msra.mxu1 %v3528_v35  ;;  %v3739_v38 = vld [vmem:[#allocation14 + $0x548] sm:$0xff]  ;;  %v3757_v35 = vld [vmem:[#allocation14 + $0x5d8] sm:$0xff] }
 0x40a   :  { %3399 = vmatpush.msra.mxu2 %v3362_v4  ;;  %3493 = vmatpush.msrb.mxu0 %v3458_v11  ;;  %v3525_v4 = vld [vmem:[#allocation14 + $0x288] sm:$0xff]  ;;  %v3512_v11 = vld [vmem:[#allocation14 + $0x220] sm:$0xff] }
 0x40b   :  { %4290 = vmatmul.msk.f32.gmra.mxu0 %vm3294_vm3, %v3293_v40  ;;  %v3608_v40 = vld [vmem:[#allocation14 + $0x3d0] sm:$0xff]  ;;  %3623 = vmatpush.msra.mxu3 %v3588_v26  ;;  %v3738_v26 = vld [vmem:[#allocation14 + $0x540] sm:$0xff] }
 0x40c   :  { %3400 = vmatpush.msra.mxu2 %v3361_v55  ;;  %3494 = vmatpush.msrb.mxu0 %v3457_v28  ;;  %v3584_v55 = vld [vmem:[#allocation14 + $0x310] sm:$0xff]  ;;  %v3511_v28 = vld [vmem:[#allocation14 + $0x218] sm:$0xff] }
 0x40d   :  { %3624 = vmatpush.msra.mxu3 %v3587_v61  ;;  %3572 = vmatpush.msra.mxu1 %v3527_v21  ;;  %v3737_v61 = vld [vmem:[#allocation14 + $0x538] sm:$0xff]  ;;  %v3756_v21 = vld [vmem:[#allocation14 + $0x5d0] sm:$0xff] }
 0x40e   :  { %3401 = vmatpush.msra.mxu2 %v3360_v7  ;;  %3495 = vmatpush.msrb.mxu0 %v3456_v2  ;;  %v3603_v7 = vld [vmem:[#allocation14 + $0x3a8] sm:$0xff] }
 0x40f   :  { %3625 = vmatpush.msra.mxu3 %v3586_v36  ;;  %3573 = vmatpush.msra.mxu1 %v3526_v45  ;;  %v3509_v2 = vld [vmem:[#allocation14 + $0x208] sm:$0xff]  ;;  %v3736_v36 = vld [vmem:[#allocation14 + $0x530] sm:$0xff] }
 0x410   :  { %3402 = vmatpush.msra.mxu2 %v3359_v17  ;;  %3496 = vmatpush.msrb.mxu0 %v3455_v14  ;;  %v3583_v17 = vld [vmem:[#allocation14 + $0x308] sm:$0xff]  ;;  %v3602_v14 = vld [vmem:[#allocation14 + $0x3a0] sm:$0xff] }
 0x411   :  { %3626 = vmatpush.msra.mxu3 %v3585_v13  ;;  %3574 = vmatpush.msra.mxu1 %v3525_v4  ;;  %v3755_v45 = vld [vmem:[#allocation14 + $0x5c8] sm:$0xff]  ;;  %v3754_v4 = vld [vmem:[#allocation14 + $0x5c0] sm:$0xff] }
 0x412   :  { %3403 = vmatpush.msra.mxu2 %v3358_v46  ;;  %3497 = vmatpush.msrb.mxu0 %v3454_v43  ;;  %v3600_v46 = vld [vmem:[#allocation14 + $0x390] sm:$0xff]  ;;  %v3599_v43 = vld [vmem:[#allocation14 + $0x388] sm:$0xff] }
 0x413   :  { %3627 = vmatpush.msra.mxu3 %v3584_v55  ;;  %3575 = vmatpush.msra.mxu1 %v3524_v23  ;;  %v3735_v13 = vld [vmem:[#allocation14 + $0x528] sm:$0xff]  ;;  %v3734_v55 = vld [vmem:[#allocation14 + $0x520] sm:$0xff] }
 0x414   :  { %3404 = vmatpush.msra.mxu2 %v3357_v37  ;;  %3498 = vmatpush.msrb.mxu0 %v3453_v12  ;;  %v3673_v23 = vld [vmem:[#allocation14 + $0x488] sm:$0xff] }
 0x415   :  { %3628 = vmatpush.msra.mxu3 %v3583_v17  ;;  %v3732_v17 = vld [vmem:[#allocation14 + $0x510] sm:$0xff] }
 0x416   :  { %3540 = vmatpush.msrb.mxu2 %v3523_v30  ;;  %3499 = vmatpush.msrb.mxu0 %v3452_v48  ;;  %v3687_v30 = vld [vmem:[#allocation14 + $0x4f8] sm:$0xff]  ;;  %v3670_v48 = vld [vmem:[#allocation14 + $0x470] sm:$0xff] }
 0x417   :  { %3629 = vmatpush.msra.mxu3 %v3582_v15  ;;  %v3656_v15 = vld [vmem:[#allocation14 + $0x400] sm:$0xff] }
 0x418   :  { %3541 = vmatpush.msrb.mxu2 %v3522_v6  ;;  %3500 = vmatpush.msrb.mxu0 %v3451_v51  ;;  %v3744_v6 = vld [vmem:[#allocation14 + $0x570] sm:$0xff]  ;;  %v3761_v51 = vld [vmem:[#allocation14 + $0x5f8] sm:$0xff] }
 0x41a   :  { %3542 = vmatpush.msrb.mxu2 %v3521_v27  ;;  %3501 = vmatpush.msrb.mxu0 %v3450_v31  ;;  %v3743_v27 = vld [vmem:[#allocation14 + $0x568] sm:$0xff]  ;;  %v3760_v31 = vld [vmem:[#allocation14 + $0x5f0] sm:$0xff] }
 0x41c   :  { %3543 = vmatpush.msrb.mxu2 %v3520_v47  ;;  %3634 = vmatpush.msra.mxu0 %v3613_v9  ;;  %v3667_v47 = vld [vmem:[#allocation14 + $0x458] sm:$0xff] }
 0x41d   :  { %v3683_v9 = vld [vmem:[#allocation14 + $0x4d8] sm:$0xff] }
 0x41e   :  { %3544 = vmatpush.msrb.mxu2 %v3519_v25  ;;  %3635 = vmatpush.msra.mxu0 %v3612_v54  ;;  %v3666_v25 = vld [vmem:[#allocation14 + $0x450] sm:$0xff] }
 0x41f   :  { %v3682_v54 = vld [vmem:[#allocation14 + $0x4d0] sm:$0xff] }
 0x420   :  { %3545 = vmatpush.msrb.mxu2 %v3518_v33  ;;  %3636 = vmatpush.msra.mxu0 %v3611_v39  ;;  %v3759_v33 = vld [vmem:[#allocation14 + $0x5e8] sm:$0xff] }
 0x421   :  { %v3681_v39 = vld [vmem:[#allocation14 + $0x4c8] sm:$0xff] }
 0x422   :  { %3546 = vmatpush.msrb.mxu2 %v3517_v59  ;;  %3637 = vmatpush.msra.mxu0 %v3610_v58  ;;  %v3758_v59 = vld [vmem:[#allocation14 + $0x5e0] sm:$0xff] }
 0x423   :  { %v3680_v58 = vld [vmem:[#allocation14 + $0x4c0] sm:$0xff] }
 0x424   :  { %3547 = vmatpush.msrb.mxu2 %v3516_v1  ;;  %3638 = vmatpush.msra.mxu0 %v3609_v22  ;;  %v3663_v1 = vld [vmem:[#allocation14 + $0x438] sm:$0xff] }
 0x425   :  { %v3679_v22 = vld [vmem:[#allocation14 + $0x4b8] sm:$0xff] }
 0x426   :  { %3548 = vmatpush.msrb.mxu2 %v3515_v62  ;;  %3639 = vmatpush.msra.mxu0 %v3608_v40  ;;  %v3662_v62 = vld [vmem:[#allocation14 + $0x430] sm:$0xff] }
 0x427   :  { %v3678_v40 = vld [vmem:[#allocation14 + $0x4b0] sm:$0xff] }
 0x428   :  { %3549 = vmatpush.msrb.mxu2 %v3514_v20  ;;  %3640 = vmatpush.msra.mxu0 %v3607_v29  ;;  %v3661_v20 = vld [vmem:[#allocation14 + $0x428] sm:$0xff] }
 0x429   :  { %v3677_v29 = vld [vmem:[#allocation14 + $0x4a8] sm:$0xff] }
 0x42a   :  { %3550 = vmatpush.msrb.mxu2 %v3513_v63  ;;  %3641 = vmatpush.msra.mxu0 %v3606_v10  ;;  %v3660_v63 = vld [vmem:[#allocation14 + $0x420] sm:$0xff] }
 0x42b   :  { %v3676_v10 = vld [vmem:[#allocation14 + $0x4a0] sm:$0xff] }
 0x42c   :  { %3551 = vmatpush.msrb.mxu2 %v3512_v11  ;;  %3642 = vmatpush.msra.mxu0 %v3605_v18  ;;  %v3659_v11 = vld [vmem:[#allocation14 + $0x418] sm:$0xff] }
 0x42d   :  { %v3675_v18 = vld [vmem:[#allocation14 + $0x498] sm:$0xff] }
 0x42e   :  { %3552 = vmatpush.msrb.mxu2 %v3511_v28  ;;  %3643 = vmatpush.msra.mxu0 %v3604_v3  ;;  %v3753_v28 = vld [vmem:[#allocation14 + $0x5b8] sm:$0xff]  ;;  %v3658_v3 = vld [vmem:[#allocation14 + $0x410] sm:$0xff] }
 0x430   :  { %3553 = vmatpush.msrb.mxu2 %v3510_v44  ;;  %3644 = vmatpush.msra.mxu0 %v3603_v7  ;;  %v3674_v44 = vld [vmem:[#allocation14 + $0x490] sm:$0xff]  ;;  %v3733_v7 = vld [vmem:[#allocation14 + $0x518] sm:$0xff] }
 0x432   :  { %3554 = vmatpush.msrb.mxu2 %v3509_v2  ;;  %3645 = vmatpush.msra.mxu0 %v3602_v14  ;;  %v3752_v2 = vld [vmem:[#allocation14 + $0x5b0] sm:$0xff]  ;;  %v3751_v14 = vld [vmem:[#allocation14 + $0x5a8] sm:$0xff] }
 0x434   :  { %3555 = vmatpush.msrb.mxu2 %v3508_v5  ;;  %3646 = vmatpush.msra.mxu0 %v3601_v41  ;;  %v3657_v5 = vld [vmem:[#allocation14 + $0x408] sm:$0xff]  ;;  %v3672_v41 = vld [vmem:[#allocation14 + $0x480] sm:$0xff] }
 0x436   :  { %3647 = vmatpush.msra.mxu0 %v3600_v46  ;;  %v3731_v46 = vld [vmem:[#allocation14 + $0x508] sm:$0xff] }
 0x438   :  { %3648 = vmatpush.msra.mxu0 %v3599_v43  ;;  %v3750_v43 = vld [vmem:[#allocation14 + $0x5a0] sm:$0xff] }
 0x43a   :  { %3649 = vmatpush.msra.mxu0 %v3598_v19  ;;  %v3819_v19 = vld [vmem:[#allocation14 + $0x678] sm:$0xff] }
 0x478   :  { %v3321_v37 = vpop.f32.mrf.mxu2  ;;  %v3347_v12 = vpop.f32.mrf.mxu0 }
 0x479   :  { %3405 = vmatmul.f32.vlgmr.msra.gmra.mxu2 %v3321_v37  ;;  %3425 = vmatmul.f32.vlgmr.msrb.gmra.mxu1 %v3347_v12 }
 0x47a   :  { %3482 = vmatmul.f32.vlgmr.msrb.gmra.mxu3 %v3321_v37  ;;  %3688 = vmatpush.msra.mxu2 %v3671_v42  ;;  %v3835_v42 = vld [vmem:[#allocation14 + $0x6f8] sm:$0xff] }
 0x47b   :  { %3708 = vmatpush.msrb.mxu1 %v3687_v30  ;;  %3762 = vmatpush.msrb.mxu3 %v3745_v49  ;;  %v3818_v30 = vld [vmem:[#allocation14 + $0x670] sm:$0xff] }
 0x47c   :  { %3689 = vmatpush.msra.mxu2 %v3670_v48  ;;  %3502 = vmatmul.f32.vlgmr.msrb.gmra.mxu0 %v3347_v12  ;;  %v3834_v49 = vld [vmem:[#allocation14 + $0x6f0] sm:$0xff]  ;;  %v3893_v48 = vld [vmem:[#allocation14 + $0x778] sm:$0xff] }
 0x47d   :  { %3709 = vmatpush.msrb.mxu1 %v3686_v8  ;;  %3763 = vmatpush.msrb.mxu3 %v3744_v6  ;;  %v3748_v8 = vld [vmem:[#allocation14 + $0x590] sm:$0xff]  ;;  %v3817_v6 = vld [vmem:[#allocation14 + $0x668] sm:$0xff] }
 0x47e   :  { %3690 = vmatpush.msra.mxu2 %v3669_v34  ;;  %3782 = vmatpush.msrb.mxu0 %v3761_v51  ;;  %v3833_v34 = vld [vmem:[#allocation14 + $0x6e8] sm:$0xff]  ;;  %v3892_v51 = vld [vmem:[#allocation14 + $0x770] sm:$0xff] }
 0x47f   :  { %3710 = vmatpush.msrb.mxu1 %v3685_v24  ;;  %3764 = vmatpush.msrb.mxu3 %v3743_v27  ;;  %v3747_v24 = vld [vmem:[#allocation14 + $0x588] sm:$0xff]  ;;  %v3816_v27 = vld [vmem:[#allocation14 + $0x660] sm:$0xff] }
 0x480   :  { %3691 = vmatpush.msra.mxu2 %v3668_v57  ;;  %3783 = vmatpush.msrb.mxu0 %v3760_v31  ;;  %v5361_v56 = vpop.f32.mrf.mxu2  ;;  %v5364_v53 = vpop.f32.mrf.mxu0  ;;  %v3832_v57 = vld [vmem:[#allocation14 + $0x6e0] sm:$0xff]  ;;  %v3891_v31 = vld [vmem:[#allocation14 + $0x768] sm:$0xff] }
 0x481   :  { %3711 = vmatpush.msrb.mxu1 %v3684_v52  ;;  %3556 = vmatmul.f32.vlgmr.msrb.gmra.mxu2 %v3321_v37  ;;  %v3730_v37 = vld [vmem:[#allocation14 + $0x500] sm:$0xff] }
 0x482   :  { %3576 = vmatmul.f32.vlgmr.msra.gmra.mxu1 %v3347_v12  ;;  %3692 = vmatpush.msra.mxu2 %v3667_v47  ;;  %v3749_v12 = vld [vmem:[#allocation14 + $0x598] sm:$0xff]  ;;  %v3746_v52 = vld [vmem:[#allocation14 + $0x580] sm:$0xff] }
 0x483   :  { %3712 = vmatpush.msrb.mxu1 %v3683_v9  ;;  %3765 = vmatpush.msrb.mxu3 %v3742_v50  ;;  %v3815_v47 = vld [vmem:[#allocation14 + $0x658] sm:$0xff]  ;;  %v3890_v50 = vld [vmem:[#allocation14 + $0x760] sm:$0xff] }
 0x484   :  { %3630 = vmatmul.f32.vlgmr.msra.gmra.mxu3 %v5361_v56  ;;  %3693 = vmatpush.msra.mxu2 %v3666_v25  ;;  %v3831_v9 = vld [vmem:[#allocation14 + $0x6d8] sm:$0xff]  ;;  %v3814_v25 = vld [vmem:[#allocation14 + $0x650] sm:$0xff] }
 0x485   :  { %3713 = vmatpush.msrb.mxu1 %v3682_v54  ;;  %3766 = vmatpush.msrb.mxu3 %v3741_v16  ;;  %v3830_v54 = vld [vmem:[#allocation14 + $0x6d0] sm:$0xff]  ;;  %v3889_v16 = vld [vmem:[#allocation14 + $0x758] sm:$0xff] }
 0x486   :  { %3694 = vmatpush.msra.mxu2 %v3665_v0  ;;  %3784 = vmatpush.msrb.mxu0 %v3759_v33  ;;  %v3908_v0 = vld [vmem:[#allocation14 + $0x7f0] sm:$0xff]  ;;  %v3813_v33 = vld [vmem:[#allocation14 + $0x648] sm:$0xff] }
 0x487   :  { %3714 = vmatpush.msrb.mxu1 %v3681_v39  ;;  %3767 = vmatpush.msrb.mxu3 %v3740_v60  ;;  %v3829_v39 = vld [vmem:[#allocation14 + $0x6c8] sm:$0xff]  ;;  %v3888_v60 = vld [vmem:[#allocation14 + $0x750] sm:$0xff] }
 0x488   :  { %3695 = vmatpush.msra.mxu2 %v3664_v32  ;;  %3785 = vmatpush.msrb.mxu0 %v3758_v59  ;;  %v3907_v32 = vld [vmem:[#allocation14 + $0x7e8] sm:$0xff]  ;;  %v3812_v59 = vld [vmem:[#allocation14 + $0x640] sm:$0xff] }
 0x489   :  { %3715 = vmatpush.msrb.mxu1 %v3680_v58  ;;  %3768 = vmatpush.msrb.mxu3 %v3739_v38  ;;  %v3828_v58 = vld [vmem:[#allocation14 + $0x6c0] sm:$0xff]  ;;  %v3887_v38 = vld [vmem:[#allocation14 + $0x748] sm:$0xff] }
 0x48a   :  { %3650 = vmatmul.f32.vlgmr.msra.gmra.mxu0 %v5364_v53  ;;  %3696 = vmatpush.msra.mxu2 %v3663_v1  ;;  %v3811_v1 = vld [vmem:[#allocation14 + $0x638] sm:$0xff] }
 0x48b   :  { %3716 = vmatpush.msrb.mxu1 %v3679_v22  ;;  %3769 = vmatpush.msrb.mxu3 %v3738_v26  ;;  %v3827_v22 = vld [vmem:[#allocation14 + $0x6b8] sm:$0xff]  ;;  %v3886_v26 = vld [vmem:[#allocation14 + $0x740] sm:$0xff] }
 0x48c   :  { %3786 = vmatpush.msrb.mxu0 %v3757_v35  ;;  %3697 = vmatpush.msra.mxu2 %v3662_v62  ;;  %v3905_v35 = vld [vmem:[#allocation14 + $0x7d8] sm:$0xff]  ;;  %v3810_v62 = vld [vmem:[#allocation14 + $0x630] sm:$0xff] }
 0x48d   :  { %3717 = vmatpush.msrb.mxu1 %v3678_v40  ;;  %3770 = vmatpush.msrb.mxu3 %v3737_v61  ;;  %v3826_v40 = vld [vmem:[#allocation14 + $0x6b0] sm:$0xff]  ;;  %v3885_v61 = vld [vmem:[#allocation14 + $0x738] sm:$0xff] }
 0x48e   :  { %3787 = vmatpush.msrb.mxu0 %v3756_v21  ;;  %3698 = vmatpush.msra.mxu2 %v3661_v20  ;;  %v3904_v21 = vld [vmem:[#allocation14 + $0x7d0] sm:$0xff]  ;;  %v3809_v20 = vld [vmem:[#allocation14 + $0x628] sm:$0xff] }
 0x48f   :  { %3718 = vmatpush.msrb.mxu1 %v3677_v29  ;;  %3771 = vmatpush.msrb.mxu3 %v3736_v36  ;;  %v3825_v29 = vld [vmem:[#allocation14 + $0x6a8] sm:$0xff]  ;;  %v3884_v36 = vld [vmem:[#allocation14 + $0x730] sm:$0xff] }
 0x490   :  { %3788 = vmatpush.msrb.mxu0 %v3755_v45  ;;  %3699 = vmatpush.msra.mxu2 %v3660_v63  ;;  %v3903_v45 = vld [vmem:[#allocation14 + $0x7c8] sm:$0xff]  ;;  %v3808_v63 = vld [vmem:[#allocation14 + $0x620] sm:$0xff] }
 0x491   :  { %3719 = vmatpush.msrb.mxu1 %v3676_v10  ;;  %3772 = vmatpush.msrb.mxu3 %v3735_v13  ;;  %v3824_v10 = vld [vmem:[#allocation14 + $0x6a0] sm:$0xff]  ;;  %v3883_v13 = vld [vmem:[#allocation14 + $0x728] sm:$0xff] }
 0x492   :  { %3789 = vmatpush.msrb.mxu0 %v3754_v4  ;;  %3700 = vmatpush.msra.mxu2 %v3659_v11  ;;  %v3902_v4 = vld [vmem:[#allocation14 + $0x7c0] sm:$0xff]  ;;  %v3807_v11 = vld [vmem:[#allocation14 + $0x618] sm:$0xff] }
 0x493   :  { %3720 = vmatpush.msrb.mxu1 %v3675_v18  ;;  %3773 = vmatpush.msrb.mxu3 %v3734_v55  ;;  %v3823_v18 = vld [vmem:[#allocation14 + $0x698] sm:$0xff]  ;;  %v3882_v55 = vld [vmem:[#allocation14 + $0x720] sm:$0xff] }
 0x494   :  { %3790 = vmatpush.msrb.mxu0 %v3753_v28  ;;  %3701 = vmatpush.msra.mxu2 %v3658_v3  ;;  %v3901_v28 = vld [vmem:[#allocation14 + $0x7b8] sm:$0xff]  ;;  %v3806_v3 = vld [vmem:[#allocation14 + $0x610] sm:$0xff] }
 0x495   :  { %3721 = vmatpush.msrb.mxu1 %v3674_v44  ;;  %3774 = vmatpush.msrb.mxu3 %v3733_v7  ;;  %v3822_v44 = vld [vmem:[#allocation14 + $0x690] sm:$0xff]  ;;  %v3881_v7 = vld [vmem:[#allocation14 + $0x718] sm:$0xff] }
 0x496   :  { %3791 = vmatpush.msrb.mxu0 %v3752_v2  ;;  %3702 = vmatpush.msra.mxu2 %v3657_v5  ;;  %v3900_v2 = vld [vmem:[#allocation14 + $0x7b0] sm:$0xff]  ;;  %v3805_v5 = vld [vmem:[#allocation14 + $0x608] sm:$0xff] }
 0x497   :  { %3722 = vmatpush.msrb.mxu1 %v3673_v23  ;;  %3775 = vmatpush.msrb.mxu3 %v3732_v17  ;;  %v3821_v23 = vld [vmem:[#allocation14 + $0x688] sm:$0xff]  ;;  %v3880_v17 = vld [vmem:[#allocation14 + $0x710] sm:$0xff] }
 0x498   :  { %3792 = vmatpush.msrb.mxu0 %v3751_v14  ;;  %3703 = vmatpush.msra.mxu2 %v3656_v15  ;;  %v3899_v14 = vld [vmem:[#allocation14 + $0x7a8] sm:$0xff]  ;;  %v3804_v15 = vld [vmem:[#allocation14 + $0x600] sm:$0xff] }
 0x499   :  { %3723 = vmatpush.msrb.mxu1 %v3672_v41  ;;  %3776 = vmatpush.msrb.mxu3 %v3731_v46  ;;  %v3820_v41 = vld [vmem:[#allocation14 + $0x680] sm:$0xff]  ;;  %v3879_v46 = vld [vmem:[#allocation14 + $0x708] sm:$0xff] }
 0x49a   :  { %3793 = vmatpush.msrb.mxu0 %v3750_v43  ;;  %3704 = vmatmul.f32.vlgmr.msra.gmra.mxu2 %v5361_v56  ;;  %v5371_v43 = vpop.f32.mrf.mxu2 }
 0x49b   :  { %3836 = vmatpush.msrb.mxu2 %v3819_v19  ;;  %3856 = vmatpush.msra.mxu1 %v3835_v42  ;;  %v3898_v19 = vld [vmem:[#allocation14 + $0x7a0] sm:$0xff]  ;;  %v3967_v42 = vld [vmem:[#allocation14 + $0x878] sm:$0xff] }
 0x49c   :  { %3777 = vmatpush.msrb.mxu3 %v3730_v37  ;;  %3794 = vmatpush.msrb.mxu0 %v3749_v12  ;;  %v3983_v37 = vld [vmem:[#allocation14 + $0x8f8] sm:$0xff]  ;;  %v3878_v12 = vld [vmem:[#allocation14 + $0x700] sm:$0xff] }
 0x49d   :  { %3778 = vmatmul.f32.vlgmr.msrb.gmra.mxu3 %v5361_v56  ;;  %3837 = vmatpush.msrb.mxu2 %v3818_v30  ;;  %v3909_v56 = vld [vmem:[#allocation14 + $0x7f8] sm:$0xff] }
 0x49e   :  { %3857 = vmatpush.msra.mxu1 %v3834_v49  ;;  %3910 = vmatpush.msra.mxu3 %v3893_v48  ;;  %v3897_v30 = vld [vmem:[#allocation14 + $0x798] sm:$0xff]  ;;  %v3966_v49 = vld [vmem:[#allocation14 + $0x870] sm:$0xff] }
 0x49f   :  { %3795 = vmatpush.msrb.mxu0 %v3748_v8  ;;  %3838 = vmatpush.msrb.mxu2 %v3817_v6  ;;  %v3982_v48 = vld [vmem:[#allocation14 + $0x8f0] sm:$0xff]  ;;  %v3965_v6 = vld [vmem:[#allocation14 + $0x868] sm:$0xff] }
 0x4a0   :  { %3858 = vmatpush.msra.mxu1 %v3833_v34  ;;  %3911 = vmatpush.msra.mxu3 %v3892_v51  ;;  %v3896_v8 = vld [vmem:[#allocation14 + $0x790] sm:$0xff]  ;;  %v5374_v34 = vpop.f32.mrf.mxu0  ;;  %v3981_v51 = vld [vmem:[#allocation14 + $0x8e8] sm:$0xff] }
 0x4a1   :  { %3796 = vmatpush.msrb.mxu0 %v3747_v24  ;;  %3724 = vmatmul.f32.vlgmr.msrb.gmra.mxu1 %v5364_v53  ;;  %v3895_v24 = vld [vmem:[#allocation14 + $0x788] sm:$0xff] }
 0x4a2   :  { %3839 = vmatpush.msrb.mxu2 %v3816_v27  ;;  %3859 = vmatpush.msra.mxu1 %v3832_v57  ;;  %v3964_v27 = vld [vmem:[#allocation14 + $0x860] sm:$0xff] }
 0x4a3   :  { %3912 = vmatpush.msra.mxu3 %v3891_v31  ;;  %3797 = vmatpush.msrb.mxu0 %v3746_v52  ;;  %v3980_v57 = vld [vmem:[#allocation14 + $0x8e0] sm:$0xff]  ;;  %v3963_v52 = vld [vmem:[#allocation14 + $0x858] sm:$0xff] }
 0x4a4   :  { %3798 = vmatmul.f32.vlgmr.msrb.gmra.mxu0 %v5364_v53  ;;  %3840 = vmatpush.msrb.mxu2 %v3815_v47  ;;  %v3906_v53 = vld [vmem:[#allocation14 + $0x7e0] sm:$0xff]  ;;  %v3979_v47 = vld [vmem:[#allocation14 + $0x8d8] sm:$0xff] }
 0x4a5   :  { %3860 = vmatpush.msra.mxu1 %v3831_v9  ;;  %3913 = vmatpush.msra.mxu3 %v3890_v50  ;;  %v3894_v31 = vld [vmem:[#allocation14 + $0x780] sm:$0xff]  ;;  %v3962_v9 = vld [vmem:[#allocation14 + $0x850] sm:$0xff] }
 0x4a6   :  { %3930 = vmatpush.msra.mxu0 %v3909_v56  ;;  %3841 = vmatpush.msrb.mxu2 %v3814_v25  ;;  %v3978_v50 = vld [vmem:[#allocation14 + $0x8d0] sm:$0xff]  ;;  %v3961_v56 = vld [vmem:[#allocation14 + $0x848] sm:$0xff] }
 0x4a7   :  { %3861 = vmatpush.msra.mxu1 %v3830_v54  ;;  %3914 = vmatpush.msra.mxu3 %v3889_v16  ;;  %v3977_v25 = vld [vmem:[#allocation14 + $0x8c8] sm:$0xff]  ;;  %v3960_v54 = vld [vmem:[#allocation14 + $0x840] sm:$0xff] }
 0x4a8   :  { %3931 = vmatpush.msra.mxu0 %v3908_v0  ;;  %3842 = vmatpush.msrb.mxu2 %v3813_v33  ;;  %v3976_v16 = vld [vmem:[#allocation14 + $0x8c0] sm:$0xff]  ;;  %v3959_v0 = vld [vmem:[#allocation14 + $0x838] sm:$0xff] }
 0x4a9   :  { %3862 = vmatpush.msra.mxu1 %v3829_v39  ;;  %3915 = vmatpush.msra.mxu3 %v3888_v60  ;;  %v3975_v33 = vld [vmem:[#allocation14 + $0x8b8] sm:$0xff]  ;;  %v3958_v39 = vld [vmem:[#allocation14 + $0x830] sm:$0xff] }
 0x4aa   :  { %3932 = vmatpush.msra.mxu0 %v3907_v32  ;;  %3843 = vmatpush.msrb.mxu2 %v3812_v59  ;;  %v3974_v60 = vld [vmem:[#allocation14 + $0x8b0] sm:$0xff]  ;;  %v3957_v32 = vld [vmem:[#allocation14 + $0x828] sm:$0xff] }
 0x4ab   :  { %3863 = vmatpush.msra.mxu1 %v3828_v58  ;;  %3916 = vmatpush.msra.mxu3 %v3887_v38  ;;  %v3973_v59 = vld [vmem:[#allocation14 + $0x8a8] sm:$0xff]  ;;  %v3956_v58 = vld [vmem:[#allocation14 + $0x820] sm:$0xff] }
 0x4ac   :  { %3933 = vmatpush.msra.mxu0 %v3906_v53  ;;  %3844 = vmatpush.msrb.mxu2 %v3811_v1  ;;  %v3972_v38 = vld [vmem:[#allocation14 + $0x8a0] sm:$0xff]  ;;  %v3955_v53 = vld [vmem:[#allocation14 + $0x818] sm:$0xff] }
 0x4ad   :  { %3864 = vmatpush.msra.mxu1 %v3827_v22  ;;  %3917 = vmatpush.msra.mxu3 %v3886_v26  ;;  %v3971_v1 = vld [vmem:[#allocation14 + $0x898] sm:$0xff]  ;;  %v3954_v22 = vld [vmem:[#allocation14 + $0x810] sm:$0xff] }
 0x4ae   :  { %3934 = vmatpush.msra.mxu0 %v3905_v35  ;;  %3845 = vmatpush.msrb.mxu2 %v3810_v62  ;;  %v3970_v26 = vld [vmem:[#allocation14 + $0x890] sm:$0xff]  ;;  %v3953_v35 = vld [vmem:[#allocation14 + $0x808] sm:$0xff] }
 0x4af   :  { %3865 = vmatpush.msra.mxu1 %v3826_v40  ;;  %3918 = vmatpush.msra.mxu3 %v3885_v61  ;;  %v3969_v62 = vld [vmem:[#allocation14 + $0x888] sm:$0xff]  ;;  %v3952_v40 = vld [vmem:[#allocation14 + $0x800] sm:$0xff] }
 0x4b0   :  { %3935 = vmatpush.msra.mxu0 %v3904_v21  ;;  %3846 = vmatpush.msrb.mxu2 %v3809_v20  ;;  %v3968_v61 = vld [vmem:[#allocation14 + $0x880] sm:$0xff] }
 0x4b1   :  { %3866 = vmatpush.msra.mxu1 %v3825_v29  ;;  %3919 = vmatpush.msra.mxu3 %v3884_v36 }
 0x4b2   :  { %3936 = vmatpush.msra.mxu0 %v3903_v45  ;;  %3847 = vmatpush.msrb.mxu2 %v3808_v63 }
 0x4b3   :  { %3867 = vmatpush.msra.mxu1 %v3824_v10  ;;  %3920 = vmatpush.msra.mxu3 %v3883_v13  ;;  %v4312_v13 = vld [vmem:[#allocation16] ss:$0 sm:$0xff] }
 0x4b4   :  { %3937 = vmatpush.msra.mxu0 %v3902_v4  ;;  %3848 = vmatpush.msrb.mxu2 %v3807_v11 }
 0x4b5   :  { %3868 = vmatpush.msra.mxu1 %v3823_v18  ;;  %3921 = vmatpush.msra.mxu3 %v3882_v55 }
 0x4b6   :  { %3938 = vmatpush.msra.mxu0 %v3901_v28  ;;  %3849 = vmatpush.msrb.mxu2 %v3806_v3 }
 0x4b7   :  { %3869 = vmatpush.msra.mxu1 %v3822_v44  ;;  %3922 = vmatpush.msra.mxu3 %v3881_v7  ;;  %v4064_v7 = vld [vmem:[#allocation19 + $0x38] sm:$0xff] }
 0x4b8   :  { %3939 = vmatpush.msra.mxu0 %v3900_v2  ;;  %3850 = vmatpush.msrb.mxu2 %v3805_v5  ;;  %v4063_v2 = vld [vmem:[#allocation19 + $0x30] sm:$0xff] }
 0x4b9   :  { %3870 = vmatpush.msra.mxu1 %v3821_v23  ;;  %3923 = vmatpush.msra.mxu3 %v3880_v17  ;;  %v4062_v23 = vld [vmem:[#allocation19 + $0x28] sm:$0xff] }
 0x4ba   :  { %3940 = vmatpush.msra.mxu0 %v3899_v14  ;;  %3851 = vmatpush.msrb.mxu2 %v3804_v15 }
 0x4bb   :  { %3871 = vmatpush.msra.mxu1 %v3820_v41  ;;  %3924 = vmatpush.msra.mxu3 %v3879_v46  ;;  %v4061_v46 = vld [vmem:[#allocation19 + $0x20] sm:$0xff] }
 0x4bc   :  { %3941 = vmatpush.msra.mxu0 %v3898_v19  ;;  %3852 = vmatmul.f32.vlgmr.msrb.gmra.mxu2 %v5371_v43 }
 0x4bd   :  { %3984 = vmatpush.msra.mxu2 %v3967_v42  ;;  %4004 = vmatpush.msrb.mxu1 %v3983_v37 }
 0x4be   :  { %3925 = vmatpush.msra.mxu3 %v3878_v12  ;;  %3942 = vmatpush.msra.mxu0 %v3897_v30 }
 0x4bf   :  { %3926 = vmatmul.f32.vlgmr.msra.gmra.mxu3 %v5371_v43  ;;  %3985 = vmatpush.msra.mxu2 %v3966_v49 }
 0x4c0   :  { %4005 = vmatpush.msrb.mxu1 %v3982_v48  ;;  %3943 = vmatpush.msra.mxu0 %v3896_v8 }
 0x4c1   :  { %3986 = vmatpush.msra.mxu2 %v3965_v6  ;;  %3872 = vmatmul.f32.vlgmr.msra.gmra.mxu1 %v5374_v34 }
 0x4c2   :  { %4006 = vmatpush.msrb.mxu1 %v3981_v51  ;;  %3944 = vmatpush.msra.mxu0 %v3895_v24 }
 0x4c3   :  { %3987 = vmatpush.msra.mxu2 %v3964_v27 }
 0x4c4   :  { %4007 = vmatpush.msrb.mxu1 %v3980_v57  ;;  %3945 = vmatpush.msra.mxu0 %v3894_v31 }
 0x4c5   :  { %3946 = vmatmul.f32.vlgmr.msra.gmra.mxu0 %v5374_v34  ;;  %3988 = vmatpush.msra.mxu2 %v3963_v52 }
 0x4c6   :  { %4008 = vmatpush.msrb.mxu1 %v3979_v47  ;;  %4076 = vmatpush.msrb.mxu0 %v4064_v7  ;;  %v4025_v47 = vld [vmem:[#allocation17] sm:$0xff] }
 0x4c7   :  { %3989 = vmatpush.msra.mxu2 %v3962_v9  ;;  %v4100_v9 = vld [vmem:[#allocation19 + $0x78] sm:$0xff] }
 0x4c8   :  { %4009 = vmatpush.msrb.mxu1 %v3978_v50  ;;  %4077 = vmatpush.msrb.mxu0 %v4063_v2  ;;  %v4099_v50 = vld [vmem:[#allocation19 + $0x70] sm:$0xff] }
 0x4c9   :  { %3990 = vmatpush.msra.mxu2 %v3961_v56  ;;  %v4098_v56 = vld [vmem:[#allocation19 + $0x68] sm:$0xff] }
 0x4ca   :  { %4010 = vmatpush.msrb.mxu1 %v3977_v25  ;;  %4078 = vmatpush.msrb.mxu0 %v4062_v23  ;;  %v4026_v25 = vld [vmem:[#allocation17 + $0x8] sm:$0xff] }
 0x4cb   :  { %3991 = vmatpush.msra.mxu2 %v3960_v54  ;;  %v4060_v54 = vld [vmem:[#allocation19 + $0x18] sm:$0xff] }
 0x4cc   :  { %4011 = vmatpush.msrb.mxu1 %v3976_v16  ;;  %4079 = vmatpush.msrb.mxu0 %v4061_v46  ;;  %v4059_v16 = vld [vmem:[#allocation19 + $0x10] sm:$0xff] }
 0x4cd   :  { %3992 = vmatpush.msra.mxu2 %v3959_v0  ;;  %v4058_v0 = vld [vmem:[#allocation19 + $0x8] sm:$0xff] }
 0x4ce   :  { %4012 = vmatpush.msrb.mxu1 %v3975_v33  ;;  %4080 = vmatpush.msrb.mxu0 %v4060_v54  ;;  %v4097_v33 = vld [vmem:[#allocation19 + $0x60] sm:$0xff] }
 0x4cf   :  { %3993 = vmatpush.msra.mxu2 %v3958_v39  ;;  %v4096_v39 = vld [vmem:[#allocation19 + $0x58] sm:$0xff] }
 0x4d0   :  { %4013 = vmatpush.msrb.mxu1 %v3974_v60  ;;  %4081 = vmatpush.msrb.mxu0 %v4059_v16  ;;  %v4057_v60 = vld [vmem:[#allocation19] sm:$0xff] }
 0x4d1   :  { %3994 = vmatpush.msra.mxu2 %v3957_v32  ;;  %v4095_v32 = vld [vmem:[#allocation19 + $0x50] sm:$0xff] }
 0x4d2   :  { %4014 = vmatpush.msrb.mxu1 %v3973_v59  ;;  %4082 = vmatpush.msrb.mxu0 %v4058_v0  ;;  %v4094_v59 = vld [vmem:[#allocation19 + $0x48] sm:$0xff] }
 0x4d3   :  { %3995 = vmatpush.msra.mxu2 %v3956_v58  ;;  %v4093_v58 = vld [vmem:[#allocation19 + $0x40] sm:$0xff] }
 0x4d4   :  { %4015 = vmatpush.msrb.mxu1 %v3972_v38  ;;  %4083 = vmatpush.msrb.mxu0 %v4057_v60 }
 0x4d5   :  { %3996 = vmatpush.msra.mxu2 %v3955_v53 }
 0x4d6   :  { %4016 = vmatpush.msrb.mxu1 %v3971_v1  ;;  %v4313_v1 = vld [vmem:[#allocation20] ss:$0 sm:$0xff] }
 0x4d7   :  { %3997 = vmatpush.msra.mxu2 %v3954_v22 }
 0x4d8   :  { %4017 = vmatpush.msrb.mxu1 %v3970_v26 }
 0x4d9   :  { %3998 = vmatpush.msra.mxu2 %v3953_v35 }
 0x4da   :  { %4018 = vmatpush.msrb.mxu1 %v3969_v62 }
 0x4db   :  { %3999 = vmatpush.msra.mxu2 %v3952_v40 }
 0x4dc   :  { %4019 = vmatpush.msrb.mxu1 %v3968_v61  ;;  %4000 = vmatmul.f32.vlgmr.msra.gmra.mxu2 %v5371_v43 }
 0x4dd   :  { %4020 = vmatmul.f32.vlgmr.msrb.gmra.mxu1 %v5374_v34 }
 0x4f6   :  { %v3426_v21 = vpop.f32.mrf.mxu1 }
 0x4f9   :  { %v3503_v36 = vpop.f32.mrf.mxu0 }
 0x4fc   :  { %v3406_v20 = vpop.f32.mrf.mxu2 }
 0x4fd   :  { %v3483_v29 = vpop.f32.mrf.mxu3  ;;  %v3427_v10 = vadd.f32 %v3426_v21, %v3406_v20 }
 0x4fe   :  { %v3504_v55 = vadd.f32 %v3503_v36, %v3483_v29 }
 0x4ff   :  { %v3577_v45 = vpop.f32.mrf.mxu1  ;;  %v3432_v18 = vadd.f32 %v4312_v13, %v3427_v10 }
 0x501   :  { %v3506_v5 = vadd.f32 %v3504_v55, %v3432_v18 }
 0x504   :  { %v3557_v63 = vpop.f32.mrf.mxu2 }
 0x505   :  { %v3578_v28 = vadd.f32 %v3577_v45, %v3557_v63 }
 0x507   :  { %v3631_v4 = vpop.f32.mrf.mxu3  ;;  %v3651_v11 = vpop.f32.mrf.mxu0  ;;  %v3580_v17 = vadd.f32 %v3578_v28, %v3506_v5 }
 0x508   :  { %v3652_v14 = vadd.f32 %v3651_v11, %v3631_v4 }
 0x50a   :  { %v3654_v19 = vadd.f32 %v3652_v14, %v3580_v17 }
 0x51d   :  { %v3705_v3 = vpop.f32.mrf.mxu2 }
 0x51e   :  { %v3725_v44 = vpop.f32.mrf.mxu1 }
 0x51f   :  { %v3726_v43 = vadd.f32 %v3725_v44, %v3705_v3 }
 0x520   :  { %v3779_v15 = vpop.f32.mrf.mxu3 }
 0x521   :  { %v3799_v41 = vpop.f32.mrf.mxu0  ;;  %v3728_v12 = vadd.f32 %v3726_v43, %v3654_v19 }
 0x522   :  { %v3800_v30 = vadd.f32 %v3799_v41, %v3779_v15 }
 0x524   :  { %v3802_v6 = vadd.f32 %v3800_v30, %v3728_v12 }
 0x53e   :  { %v3873_v37 = vpop.f32.mrf.mxu1 }
 0x53f   :  { %v3853_v42 = vpop.f32.mrf.mxu2 }
 0x540   :  { %v3874_v49 = vadd.f32 %v3873_v37, %v3853_v42 }
 0x542   :  { %v3927_v48 = vpop.f32.mrf.mxu3  ;;  %v3947_v8 = vpop.f32.mrf.mxu0  ;;  %v3876_v34 = vadd.f32 %v3874_v49, %v3802_v6 }
 0x543   :  { %v3948_v51 = vadd.f32 %v3947_v8, %v3927_v48 }
 0x545   :  { %v3950_v57 = vadd.f32 %v3948_v51, %v3876_v34 }
 0x55a   :  { %v4021_v24 = vpop.f32.mrf.mxu1 }
 0x55f   :  { %v4001_v27 = vpop.f32.mrf.mxu2 }
 0x560   :  { %v4022_v31 = vadd.f32 %v4021_v24, %v4001_v27 }
 0x562   :  { %v4024_v52 = vadd.f32 %v4022_v31, %v3950_v57 }
 0x564   :  { %4048 = vmatpush.msrb.mxu3 %v4024_v52 }
 0x565   :  { %4291 = vmatmul.msk.f32.vlgmr.msrb.gmra.mxu3 %vm3294_vm3, %v4025_v47 }
 0x566   :  { %4112 = vmatpush.msra.mxu3 %v4100_v9 }
 0x568   :  { %4113 = vmatpush.msra.mxu3 %v4099_v50 }
 0x56a   :  { %4114 = vmatpush.msra.mxu3 %v4098_v56 }
 0x56c   :  { %4115 = vmatpush.msra.mxu3 %v4097_v33 }
 0x56d   :  { %4292 = vmatmul.msk.f32.gmra.mxu3 %vm3294_vm3, %v4026_v25 }
 0x56e   :  { %4116 = vmatpush.msra.mxu3 %v4096_v39 }
 0x570   :  { %4117 = vmatpush.msra.mxu3 %v4095_v32 }
 0x572   :  { %4118 = vmatpush.msra.mxu3 %v4094_v59 }
 0x574   :  { %4119 = vmatpush.msra.mxu3 %v4093_v58 }
 0x5e8   :  { %v4050_v38 = vpop.f32.mrf.mxu3 }
 0x5e9   :  { %4293 = vmatmul.msk.f32.vlgmr.msrb.gmra.mxu0 %vm333_vm1, %v4050_v38 }
 0x5f0   :  { %v4053_v53 = vpop.f32.mrf.mxu3 }
 0x5f1   :  { %4294 = vmatmul.msk.f32.vlgmr.msra.gmra.mxu3 %vm333_vm1, %v4053_v53 }
 0x666   :  { %v4085_v22 = vpop.f32.mrf.mxu0 }
 0x667   :  { %v4091_v26 = vadd.f32 %v4313_v1, %v4085_v22 }
 0x674   :  { %v4121_v35 = vpop.f32.mrf.mxu3 }
 0x675   :  { %v4124_v62 = vadd.f32 %v4121_v35, %v4091_v26 }
 0x677   :  { %v4125_v40 = vmax.f32 %v4124_v62, 0.0 }
 0x679   :  { %4127 = vst.msk [vmem:[#allocation22] sm:$0x3] %vm4126_vm4, %v4125_v40 }
 0x67a   :  { %4138 = dma.vmem_to_hbm [thread:$0]  %s4134_s6, 32, %s4136_s3, [#allocation4]  }
 0x67b   :  { %4640 = dma.done.wait [#allocation4], 32  }
 0x67c   :  { %4641 = vsyncadd [#allocation4], 4294967264 }
 0x67d   :  { %4143 = vsyncpa [#allocation3], 1 }
 0x67e   :  { %4144 = vsyncpa [#allocation6], 1 }
 0x67f   :  { %4145 = vsyncpa [#allocation9], 1 }
 0x680   :  { %4146 = vsyncpa [#allocation12], 1 }
 0x681   :  { %4147 = vsyncpa [#allocation15], 1 }
 0x682   :  { %4148 = vsyncpa [#allocation18], 1 }
 0x683   :  { %4149 = vsyncpa [#allocation21], 1 }
 0x684   :  { %4150 = vsyncpa [#allocation4], 1 }

</bundles_post_ra>
